<compile_context>
chip_gen: v7x
topology: tpu7x:2x2x1
jax: 0.10.0
libtpu: 0.0.40
codegen_flags: <defaults>
</compile_context>

<pallas_src>
import functools

import jax
import jax.numpy as jnp
from jax.experimental import pallas as pl
from jax.experimental.pallas import tpu as pltpu

NEG_SLOPE = 0.2  # the module uses nn.LeakyReLU(0.2) / F.leaky_relu(., 0.2)


def _leaky_relu(x):
    return jnp.where(x >= 0, x, NEG_SLOPE * x)


def _softplus(x):
    # mirrors torch.nn.functional.softplus (beta=1, threshold=20); log(1+exp) form
    # (instead of log1p) for guaranteed Mosaic lowering — shared by kernel & reference.
    return jnp.where(x > 20.0, x, jnp.log(1.0 + jnp.exp(jnp.minimum(x, 20.0))))


def _sigmoid(x):
    return 1.0 / (1.0 + jnp.exp(-x))


# ---------------------------------------------------------------------------
# Packed-parameter slab layout (see pack_params):
#   mats (max(in_dim,D), 14*D):
#     [wih 3D | whh 3D | we4 4D | wpa D | wp2 2D | w1 D (first in_dim rows)]
#   vecs (1, 21*D + 2):
#     [b1 D | bih 3D | bhh 3D | wem D | bem D | wes D | bes D | be4 4D |
#      wdm D | wds D | q D | bpa D | bp2 2D | bdm 1 | bds 1]
# ---------------------------------------------------------------------------
def model_kernel(x_ref, y_ref, mats_ref, vecs_ref, stats_ref, scalars_ref):
    B = y_ref.shape[0]
    TB, in_dim = x_ref.shape
    T = TB // B
    D = mats_ref.shape[1] // 14
    f32 = jnp.float32

    # ---------------- unpack parameter slabs (static slices) -----------------
    wih = mats_ref[0:D, 0:3 * D]
    whh = mats_ref[0:D, 3 * D:6 * D]
    we4 = mats_ref[0:D, 6 * D:10 * D]
    wpa = mats_ref[0:D, 10 * D:11 * D]
    wp2 = mats_ref[0:D, 11 * D:13 * D]
    w1 = mats_ref[0:in_dim, 13 * D:14 * D]

    b1 = vecs_ref[:, 0:D]
    bih = vecs_ref[:, D:4 * D]
    bhh = vecs_ref[:, 4 * D:7 * D]
    wem = vecs_ref[:, 7 * D:8 * D]
    bem = vecs_ref[:, 8 * D:9 * D]
    wes = vecs_ref[:, 9 * D:10 * D]
    bes = vecs_ref[:, 10 * D:11 * D]
    be4 = vecs_ref[:, 11 * D:15 * D]
    wdm = vecs_ref[:, 15 * D:16 * D]
    wds = vecs_ref[:, 16 * D:17 * D]
    q = vecs_ref[:, 17 * D:18 * D]
    bpa = vecs_ref[:, 18 * D:19 * D]
    bp2 = vecs_ref[:, 19 * D:21 * D]
    bdm = vecs_ref[:, 21 * D:21 * D + 1]
    bds = vecs_ref[:, 21 * D + 1:21 * D + 2]

    # ---------------- FeatureExtractor: hoisted input-side work ---------------
    # u = LeakyReLU(x @ W1 + b1) and the full input-gate projection (incl. b_ih)
    # for ALL timesteps at once; only the h-dependent matmul stays in the loop.
    x = x_ref[...]                                                     # (B*T, in), (b,t)-major
    u_all = _leaky_relu(jnp.dot(x, w1, preferred_element_type=f32) + b1)      # (B*T, D)
    gates = jnp.dot(u_all, wih, preferred_element_type=f32) + bih             # (B*T, 3D)
    gates = gates.reshape(B, T, 3 * D)                                 # vreg relabel (T=8)

    # ---------------- GRU recurrence (T static & tiny): fully unrolled --------
    h = jnp.zeros((B, D), dtype=f32)
    for t in range(T):
        g = gates[:, t, :]                                             # (B, 3D) static slice
        hh = jnp.dot(h, whh, preferred_element_type=f32) + bhh         # (B, 3D)
        rz = _sigmoid(g[:, 0:2 * D] + hh[:, 0:2 * D])                  # fused r|z sigmoid
        r = rz[:, 0:D]
        z = rz[:, D:2 * D]
        n = jnp.tanh(g[:, 2 * D:3 * D] + r * hh[:, 2 * D:3 * D])
        h = (1.0 - z) * n + z * h
    e = h                                                              # (B, D) == h_n

    # ---------------- feature_encoder_mu / feature_encoder_sigma --------------
    y = y_ref[...]                                                     # (B, 1)
    mu_post = y * wem + bem                                            # (B, D)
    sigma_post = _softplus(y * wes + bes)                              # (B, D)

    # ---------------- fused e-projections: [dec-alpha | beta | key | value] ---
    e4 = jnp.dot(e, we4, preferred_element_type=f32) + be4             # (B, 4D)
    ha = _leaky_relu(e4[:, 0:D])
    beta = e4[:, D:2 * D]
    key = e4[:, 2 * D:3 * D]
    value = e4[:, 3 * D:4 * D]

    # decoder e-only terms, computed once and shared by both decodes
    a_mu = jnp.sum(ha * wdm, axis=1, keepdims=True) + bdm              # (B, 1)
    a_sig = _softplus(jnp.sum(ha * wds, axis=1, keepdims=True) + bds)  # (B, 1)
    a_sig2 = a_sig * a_sig
    beta2 = beta * beta

    # ---------------- FeaturePredictor ----------------------------------------
    att_logit = jnp.sum(key * q, axis=1, keepdims=True)                # (B, 1)
    nk2 = jnp.sum(key * key, keepdims=True)                            # (1, 1) Frobenius^2
    nv2 = jnp.sum(value * value, keepdims=True)                        # (1, 1)
    # approx reciprocal is safe here: this positive scale cancels exactly in the
    # renormalization below.
    inv_norm = pl.reciprocal(jnp.sqrt(nk2 * nv2), approx=True)
    att = jnp.maximum(att_logit * inv_norm, 0.0)
    # NOTE: divides by zero if all logits <= 0 — matches the PyTorch reference.
    att = att / jnp.sum(att, axis=0, keepdims=True)                    # (B, 1)
    # torch broadcast (B,1)*(B,1,D) summed over dim 0 == att[b] * sum_i value[i, :]
    h_att = att * jnp.sum(value, axis=0, keepdims=True)                # (B, D)
    hp = _leaky_relu(jnp.dot(h_att, wpa, preferred_element_type=f32) + bpa)
    p2 = jnp.dot(hp, wp2, preferred_element_type=f32) + bp2            # (B, 2D)
    z_mu = p2[:, 0:D]
    z_sigma = _softplus(p2[:, D:2 * D])

    # ---------------- FeatureDecoder (posterior + prior decode) ---------------
    y_mu = a_mu + jnp.sum(beta * mu_post, axis=1, keepdims=True)
    y_sigma = jnp.sqrt(a_sig2 + jnp.sum(beta2 * sigma_post * sigma_post,
                                        axis=1, keepdims=True))
    y_pred_mu = a_mu + jnp.sum(beta * z_mu, axis=1, keepdims=True)
    y_pred_sigma = jnp.sqrt(a_sig2 + jnp.sum(beta2 * z_sigma * z_sigma,
                                             axis=1, keepdims=True))

    # ---------------- lane-dense packed outputs (one full store each) ---------
    stats_ref[...] = jnp.concatenate([mu_post, sigma_post, z_mu, z_sigma], axis=1)
    scalars_ref[...] = jnp.concatenate([y_mu, y_sigma, y_pred_mu, y_pred_sigma], axis=1)


# ---------------------------------------------------------------------------
# Parameter init (deterministic, synthetic, PyTorch-layout per-gate weights)
# ---------------------------------------------------------------------------
def init_params(key, in_dim, d_model, scale=0.1):
    names_shapes = [
        # FeatureExtractor
        ("w1", (in_dim, d_model)), ("b1", (1, d_model)),
        ("wir", (d_model, d_model)), ("wiz", (d_model, d_model)), ("win", (d_model, d_model)),
        ("bir", (1, d_model)), ("biz", (1, d_model)), ("bin", (1, d_model)),
        ("whr", (d_model, d_model)), ("whz", (d_model, d_model)), ("whn", (d_model, d_model)),
        ("bhr", (1, d_model)), ("bhz", (1, d_model)), ("bhn", (1, d_model)),
        # feature_encoder_mu / sigma : Linear(1, D)
        ("wem", (1, d_model)), ("bem", (1, d_model)),
        ("wes", (1, d_model)), ("bes", (1, d_model)),
        # FeatureDecoder: Alpha(D, D, 1) + beta Linear(D, D)
        ("wda", (d_model, d_model)), ("bda", (1, d_model)),
        ("wdm", (1, d_model)), ("bdm", (1, 1)),
        ("wds", (1, d_model)), ("bds", (1, 1)),
        ("wdb", (d_model, d_model)), ("bdb", (1, d_model)),
        # FeaturePredictor: key/value nets, query, Alpha(D, D, D)
        ("wpk", (d_model, d_model)), ("bpk", (1, d_model)),
        ("wpv", (d_model, d_model)), ("bpv", (1, d_model)),
        ("q", (1, d_model)),
        ("wpa", (d_model, d_model)), ("bpa", (1, d_model)),
        ("wpm", (d_model, d_model)), ("bpm", (1, d_model)),
        ("wps", (d_model, d_model)), ("bps", (1, d_model)),
    ]
    keys = jax.random.split(key, len(names_shapes))
    p = {name: (scale * jax.random.normal(k, shape)).astype(jnp.float32)
         for (name, shape), k in zip(names_shapes, keys)}
    # Keep the synthetic attention logits away from the all-nonpositive degenerate case,
    # where the reference model itself divides by zero (pre-existing model behaviour).
    p["q"] = p["q"] + 0.2
    p["bpk"] = p["bpk"] + 0.2
    return p


def pack_params(p):
    """Host-side one-time packing of all parameters into two contiguous slabs."""
    in_dim, D = p["w1"].shape
    R = max(in_dim, D)
    mats = jnp.zeros((R, 14 * D), jnp.float32)
    mats = mats.at[0:D, 0:3 * D].set(jnp.concatenate([p["wir"], p["wiz"], p["win"]], axis=1))
    mats = mats.at[0:D, 3 * D:6 * D].set(jnp.concatenate([p["whr"], p["whz"], p["whn"]], axis=1))
    mats = mats.at[0:D, 6 * D:10 * D].set(
        jnp.concatenate([p["wda"], p["wdb"], p["wpk"], p["wpv"]], axis=1))
    mats = mats.at[0:D, 10 * D:11 * D].set(p["wpa"])
    mats = mats.at[0:D, 11 * D:13 * D].set(jnp.concatenate([p["wpm"], p["wps"]], axis=1))
    mats = mats.at[0:in_dim, 13 * D:14 * D].set(p["w1"])

    vecs = jnp.concatenate(
        [p["b1"],
         p["bir"], p["biz"], p["bin"],
         p["bhr"], p["bhz"], p["bhn"],
         p["wem"], p["bem"], p["wes"], p["bes"],
         p["bda"], p["bdb"], p["bpk"], p["bpv"],   # be4
         p["wdm"], p["wds"], p["q"], p["bpa"],
         p["bpm"], p["bps"],                        # bp2
         p["bdm"], p["bds"]], axis=1)               # (1, 21D + 2)
    return {"mats": mats, "vecs": vecs}


# ---------------------------------------------------------------------------
# Wrapper
# ---------------------------------------------------------------------------
_VMEM = pl.BlockSpec(memory_space=pltpu.MemorySpace.VMEM)


@functools.partial(jax.jit, static_argnames=("test",))
def model_forward(packed, x, y, test=False):
    """x: (B, T, in_dim) batch_first (as in the PyTorch module), y: (B, 1)."""
    x = x.astype(jnp.float32)
    y = y.astype(jnp.float32)
    B, T, in_dim = x.shape
    D = packed["mats"].shape[1] // 14

    # Free reshape (no transpose, no extra HBM pass): rows stay (b, t)-major.
    x_flat = x.reshape(B * T, in_dim)

    stats, scalars = pl.pallas_call(
        model_kernel,
        out_shape=(jax.ShapeDtypeStruct((B, 4 * D), jnp.float32),
                   jax.ShapeDtypeStruct((B, 4), jnp.float32)),
        in_specs=[_VMEM, _VMEM, _VMEM, _VMEM],
        out_specs=(_VMEM, _VMEM),
    )(x_flat, y, packed["mats"], packed["vecs"])

    mu_post = stats[:, 0 * D:1 * D]
    sigma_post = stats[:, 1 * D:2 * D]
    z_prior_mu = stats[:, 2 * D:3 * D]
    z_prior_sigma = stats[:, 3 * D:4 * D]
    y_mu, y_sigma = scalars[:, 0:1], scalars[:, 1:2]
    y_pred_mu, y_pred_sigma = scalars[:, 2:3], scalars[:, 3:4]

    if test:
        return y_pred_mu, y_pred_sigma
    return y_mu, y_sigma, mu_post, sigma_post, z_prior_mu, z_prior_sigma


# ---------------------------------------------------------------------------
# Pure-JAX reference (mirrors the PyTorch module), for validation only
# ---------------------------------------------------------------------------
def reference_forward(p, x, y):
    hi = jax.lax.Precision.HIGHEST
    dot = lambda a, w: jnp.dot(a, w, precision=hi)
    lrelu = _leaky_relu
    sp = _softplus

    B, T, _ = x.shape
    D = p["w1"].shape[1]

    u = lrelu(jnp.einsum("bti,id->btd", x, p["w1"], precision=hi) + p["b1"])

    def gru_step(h, u_t):
        r = _sigmoid(dot(u_t, p["wir"]) + p["bir"] + dot(h, p["whr"]) + p["bhr"])
        z = _sigmoid(dot(u_t, p["wiz"]) + p["biz"] + dot(h, p["whz"]) + p["bhz"])
        n = jnp.tanh(dot(u_t, p["win"]) + p["bin"] + r * (dot(h, p["whn"]) + p["bhn"]))
        return (1.0 - z) * n + z * h, None

    e, _ = jax.lax.scan(gru_step, jnp.zeros((B, D), jnp.float32),
                        jnp.transpose(u, (1, 0, 2)))

    mu_post = y * p["wem"] + p["bem"]
    sigma_post = sp(y * p["wes"] + p["bes"])

    ha = lrelu(dot(e, p["wda"]) + p["bda"])
    a_mu = jnp.sum(ha * p["wdm"], axis=1, keepdims=True) + p["bdm"]
    a_sig = sp(jnp.sum(ha * p["wds"], axis=1, keepdims=True) + p["bds"])
    beta = dot(e, p["wdb"]) + p["bdb"]

    key = dot(e, p["wpk"]) + p["bpk"]
    value = dot(e, p["wpv"]) + p["bpv"]
    att = jnp.maximum(jnp.sum(key * p["q"], axis=1, keepdims=True)
                      / (jnp.sqrt(jnp.sum(key * key)) * jnp.sqrt(jnp.sum(value * value))), 0.0)
    att = att / jnp.sum(att, axis=0, keepdims=True)
    h_att = att * jnp.sum(value, axis=0, keepdims=True)
    hp = lrelu(dot(h_att, p["wpa"]) + p["bpa"])
    z_mu = dot(hp, p["wpm"]) + p["bpm"]
    z_sigma = sp(dot(hp, p["wps"]) + p["bps"])

    def dec(zm, zs):
        ym = a_mu + jnp.sum(beta * zm, axis=1, keepdims=True)
        ys = jnp.sqrt(a_sig * a_sig + jnp.sum(beta * beta * zs * zs, axis=1, keepdims=True))
        return ym, ys

    y_mu, y_sigma = dec(mu_post, sigma_post)
    y_pred_mu, y_pred_sigma = dec(z_mu, z_sigma)
    return (y_mu, y_sigma, mu_post, sigma_post, z_mu, z_sigma, y_pred_mu, y_pred_sigma)


if __name__ == "__main__":
    B, T, IN_DIM, D_MODEL = 8, 8, 16, 32   # enc_in=16, d_model=32

    root = jax.random.PRNGKey(0)
    k_params, k_x, k_y = jax.random.split(root, 3)
    params = init_params(k_params, IN_DIM, D_MODEL)
    packed = pack_params(params)

    x = jax.random.normal(k_x, (B, T, IN_DIM), dtype=jnp.float32)
    y = jax.random.normal(k_y, (B, 1), dtype=jnp.float32)

    outs = jax.block_until_ready(model_forward(packed, x, y, test=False))
    expected_shapes = [(B, 1), (B, 1), (B, D_MODEL), (B, D_MODEL), (B, D_MODEL), (B, D_MODEL)]
    assert len(outs) == 6
    for o, s in zip(outs, expected_shapes):
        assert o.shape == s, (o.shape, s)

    # validate against the pure-JAX reference of the PyTorch module
    refs = reference_forward(params, x, y)
    for got, ref in zip(outs, refs[:6]):
        err = float(jnp.max(jnp.abs(got - ref)))
        assert bool(jnp.allclose(got, ref, rtol=1e-2, atol=1e-2)), err

    # test=True branch (prior-decode outputs) — also validated against the reference
    yp = jax.block_until_ready(model_forward(packed, x, y, test=True))
    assert yp[0].shape == (B, 1) and yp[1].shape == (B, 1)
    for got, ref in zip(yp, refs[6:]):
        err = float(jnp.max(jnp.abs(got - ref)))
        assert bool(jnp.allclose(got, ref, rtol=1e-2, atol=1e-2)), err

    print("KERNEL_OK")
</pallas_src>

<mosaic_0001>
module attributes {stable_mosaic.version = 11 : i64} {
  func.func @model_kernel(%arg0: memref<64x16xf32, #tpu.memory_space<vmem>>, %arg1: memref<8x1xf32, #tpu.memory_space<vmem>>, %arg2: memref<32x448xf32, #tpu.memory_space<vmem>>, %arg3: memref<1x674xf32, #tpu.memory_space<vmem>>, %arg4: memref<8x128xf32, #tpu.memory_space<vmem>>, %arg5: memref<8x4xf32, #tpu.memory_space<vmem>>) attributes {dimension_semantics = [], scalar_prefetch = 0 : i64, scratch_operands = 0 : i64, tpu.core_type = #tpu.core_type<tc>} {
    %c0 = arith.constant 0 : index
    %c0_0 = arith.constant 0 : index
    %0 = vector.load %arg2[%c0, %c0_0] : memref<32x448xf32, #tpu.memory_space<vmem>>, vector<32x96xf32>
    %c0_1 = arith.constant 0 : index
    %c96 = arith.constant 96 : index
    %1 = vector.load %arg2[%c0_1, %c96] : memref<32x448xf32, #tpu.memory_space<vmem>>, vector<32x96xf32>
    %c0_2 = arith.constant 0 : index
    %c192 = arith.constant 192 : index
    %2 = vector.load %arg2[%c0_2, %c192] : memref<32x448xf32, #tpu.memory_space<vmem>>, vector<32x128xf32>
    %c0_3 = arith.constant 0 : index
    %c320 = arith.constant 320 : index
    %3 = vector.load %arg2[%c0_3, %c320] : memref<32x448xf32, #tpu.memory_space<vmem>>, vector<32x32xf32>
    %c0_4 = arith.constant 0 : index
    %c352 = arith.constant 352 : index
    %4 = vector.load %arg2[%c0_4, %c352] : memref<32x448xf32, #tpu.memory_space<vmem>>, vector<32x64xf32>
    %c0_5 = arith.constant 0 : index
    %c416 = arith.constant 416 : index
    %5 = vector.load %arg2[%c0_5, %c416] : memref<32x448xf32, #tpu.memory_space<vmem>>, vector<16x32xf32>
    %c0_6 = arith.constant 0 : index
    %c0_7 = arith.constant 0 : index
    %6 = vector.load %arg3[%c0_6, %c0_7] : memref<1x674xf32, #tpu.memory_space<vmem>>, vector<1x32xf32>
    %c0_8 = arith.constant 0 : index
    %c32 = arith.constant 32 : index
    %7 = vector.load %arg3[%c0_8, %c32] : memref<1x674xf32, #tpu.memory_space<vmem>>, vector<1x96xf32>
    %c0_9 = arith.constant 0 : index
    %c128 = arith.constant 128 : index
    %8 = vector.load %arg3[%c0_9, %c128] : memref<1x674xf32, #tpu.memory_space<vmem>>, vector<1x96xf32>
    %c0_10 = arith.constant 0 : index
    %c224 = arith.constant 224 : index
    %9 = vector.load %arg3[%c0_10, %c224] : memref<1x674xf32, #tpu.memory_space<vmem>>, vector<1x32xf32>
    %c0_11 = arith.constant 0 : index
    %c256 = arith.constant 256 : index
    %10 = vector.load %arg3[%c0_11, %c256] : memref<1x674xf32, #tpu.memory_space<vmem>>, vector<1x32xf32>
    %c0_12 = arith.constant 0 : index
    %c288 = arith.constant 288 : index
    %11 = vector.load %arg3[%c0_12, %c288] : memref<1x674xf32, #tpu.memory_space<vmem>>, vector<1x32xf32>
    %c0_13 = arith.constant 0 : index
    %c320_14 = arith.constant 320 : index
    %12 = vector.load %arg3[%c0_13, %c320_14] : memref<1x674xf32, #tpu.memory_space<vmem>>, vector<1x32xf32>
    %c0_15 = arith.constant 0 : index
    %c352_16 = arith.constant 352 : index
    %13 = vector.load %arg3[%c0_15, %c352_16] : memref<1x674xf32, #tpu.memory_space<vmem>>, vector<1x128xf32>
    %c0_17 = arith.constant 0 : index
    %c480 = arith.constant 480 : index
    %14 = vector.load %arg3[%c0_17, %c480] : memref<1x674xf32, #tpu.memory_space<vmem>>, vector<1x32xf32>
    %c0_18 = arith.constant 0 : index
    %c512 = arith.constant 512 : index
    %15 = vector.load %arg3[%c0_18, %c512] : memref<1x674xf32, #tpu.memory_space<vmem>>, vector<1x32xf32>
    %c0_19 = arith.constant 0 : index
    %c544 = arith.constant 544 : index
    %16 = vector.load %arg3[%c0_19, %c544] : memref<1x674xf32, #tpu.memory_space<vmem>>, vector<1x32xf32>
    %c0_20 = arith.constant 0 : index
    %c576 = arith.constant 576 : index
    %17 = vector.load %arg3[%c0_20, %c576] : memref<1x674xf32, #tpu.memory_space<vmem>>, vector<1x32xf32>
    %c0_21 = arith.constant 0 : index
    %c608 = arith.constant 608 : index
    %18 = vector.load %arg3[%c0_21, %c608] : memref<1x674xf32, #tpu.memory_space<vmem>>, vector<1x64xf32>
    %c0_22 = arith.constant 0 : index
    %c672 = arith.constant 672 : index
    %19 = vector.load %arg3[%c0_22, %c672] : memref<1x674xf32, #tpu.memory_space<vmem>>, vector<1x1xf32>
    %c0_23 = arith.constant 0 : index
    %c673 = arith.constant 673 : index
    %20 = vector.load %arg3[%c0_23, %c673] : memref<1x674xf32, #tpu.memory_space<vmem>>, vector<1x1xf32>
    %c0_24 = arith.constant 0 : index
    %c0_25 = arith.constant 0 : index
    %21 = vector.load %arg0[%c0_24, %c0_25] : memref<64x16xf32, #tpu.memory_space<vmem>>, vector<64x16xf32>
    %cst = arith.constant dense<0.000000e+00> : vector<64x32xf32>
    %22 = tpu.matmul %21, %5, %cst {dimension_numbers = #tpu.dot_dimension_numbers<[1], [0], [0], [1], [0, 0, 1, 1], [], []>} : vector<64x16xf32>, vector<16x32xf32>, vector<64x32xf32> -> vector<64x32xf32>
    %23 = vector.broadcast %6 : vector<1x32xf32> to vector<64x32xf32>
    %24 = arith.addf %22, %23 : vector<64x32xf32>
    %cst_26 = arith.constant 0.000000e+00 : f32
    %25 = vector.broadcast %cst_26 : f32 to vector<64x32xf32>
    %26 = arith.cmpf oge, %24, %25 : vector<64x32xf32>
    %cst_27 = arith.constant 2.000000e-01 : f32
    %27 = vector.broadcast %cst_27 : f32 to vector<64x32xf32>
    %28 = arith.mulf %27, %24 : vector<64x32xf32>
    %29 = arith.select %26, %24, %28 : vector<64x32xi1>, vector<64x32xf32>
    %cst_28 = arith.constant dense<0.000000e+00> : vector<64x96xf32>
    %30 = tpu.matmul %29, %0, %cst_28 {dimension_numbers = #tpu.dot_dimension_numbers<[1], [0], [0], [1], [0, 0, 1, 1], [], []>} : vector<64x32xf32>, vector<32x96xf32>, vector<64x96xf32> -> vector<64x96xf32>
    %31 = vector.broadcast %7 : vector<1x96xf32> to vector<64x96xf32>
    %32 = arith.addf %30, %31 : vector<64x96xf32>
    %33 = vector.shape_cast %32 : vector<64x96xf32> to vector<8x8x96xf32>
    %cst_29 = arith.constant 0.000000e+00 : f32
    %34 = vector.broadcast %cst_29 : f32 to vector<8x32xf32>
    %35 = vector.extract_strided_slice %33 {offsets = [0, 0, 0], sizes = [8, 1, 96], strides = [1, 1, 1]} : vector<8x8x96xf32> to vector<8x1x96xf32>
    %36 = vector.shape_cast %35 : vector<8x1x96xf32> to vector<8x96xf32>
    %cst_30 = arith.constant dense<0.000000e+00> : vector<8x96xf32>
    %37 = tpu.matmul %34, %1, %cst_30 {dimension_numbers = #tpu.dot_dimension_numbers<[1], [0], [0], [1], [0, 0, 1, 1], [], []>} : vector<8x32xf32>, vector<32x96xf32>, vector<8x96xf32> -> vector<8x96xf32>
    %38 = vector.broadcast %8 : vector<1x96xf32> to vector<8x96xf32>
    %39 = arith.addf %37, %38 : vector<8x96xf32>
    %40 = vector.extract_strided_slice %36 {offsets = [0, 0], sizes = [8, 64], strides = [1, 1]} : vector<8x96xf32> to vector<8x64xf32>
    %41 = vector.extract_strided_slice %39 {offsets = [0, 0], sizes = [8, 64], strides = [1, 1]} : vector<8x96xf32> to vector<8x64xf32>
    %42 = arith.addf %40, %41 : vector<8x64xf32>
    %cst_31 = arith.constant 0.000000e+00 : f32
    %43 = vector.broadcast %cst_31 : f32 to vector<8x64xf32>
    %44 = arith.subf %43, %42 : vector<8x64xf32>
    %45 = math.exp %44 : vector<8x64xf32>
    %cst_32 = arith.constant 1.000000e+00 : f32
    %46 = vector.broadcast %cst_32 : f32 to vector<8x64xf32>
    %47 = arith.addf %46, %45 : vector<8x64xf32>
    %cst_33 = arith.constant 1.000000e+00 : f32
    %48 = vector.broadcast %cst_33 : f32 to vector<8x64xf32>
    %49 = arith.divf %48, %47 : vector<8x64xf32>
    %50 = vector.extract_strided_slice %49 {offsets = [0, 0], sizes = [8, 32], strides = [1, 1]} : vector<8x64xf32> to vector<8x32xf32>
    %51 = vector.extract_strided_slice %49 {offsets = [0, 32], sizes = [8, 32], strides = [1, 1]} : vector<8x64xf32> to vector<8x32xf32>
    %52 = vector.extract_strided_slice %36 {offsets = [0, 64], sizes = [8, 32], strides = [1, 1]} : vector<8x96xf32> to vector<8x32xf32>
    %53 = vector.extract_strided_slice %39 {offsets = [0, 64], sizes = [8, 32], strides = [1, 1]} : vector<8x96xf32> to vector<8x32xf32>
    %54 = arith.mulf %50, %53 : vector<8x32xf32>
    %55 = arith.addf %52, %54 : vector<8x32xf32>
    %56 = math.tanh %55 : vector<8x32xf32>
    %cst_34 = arith.constant 1.000000e+00 : f32
    %57 = vector.broadcast %cst_34 : f32 to vector<8x32xf32>
    %58 = arith.subf %57, %51 : vector<8x32xf32>
    %59 = arith.mulf %58, %56 : vector<8x32xf32>
    %60 = arith.mulf %51, %34 : vector<8x32xf32>
    %61 = arith.addf %59, %60 : vector<8x32xf32>
    %62 = vector.extract_strided_slice %33 {offsets = [0, 1, 0], sizes = [8, 1, 96], strides = [1, 1, 1]} : vector<8x8x96xf32> to vector<8x1x96xf32>
    %63 = vector.shape_cast %62 : vector<8x1x96xf32> to vector<8x96xf32>
    %cst_35 = arith.constant dense<0.000000e+00> : vector<8x96xf32>
    %64 = tpu.matmul %61, %1, %cst_35 {dimension_numbers = #tpu.dot_dimension_numbers<[1], [0], [0], [1], [0, 0, 1, 1], [], []>} : vector<8x32xf32>, vector<32x96xf32>, vector<8x96xf32> -> vector<8x96xf32>
    %65 = vector.broadcast %8 : vector<1x96xf32> to vector<8x96xf32>
    %66 = arith.addf %64, %65 : vector<8x96xf32>
    %67 = vector.extract_strided_slice %63 {offsets = [0, 0], sizes = [8, 64], strides = [1, 1]} : vector<8x96xf32> to vector<8x64xf32>
    %68 = vector.extract_strided_slice %66 {offsets = [0, 0], sizes = [8, 64], strides = [1, 1]} : vector<8x96xf32> to vector<8x64xf32>
    %69 = arith.addf %67, %68 : vector<8x64xf32>
    %cst_36 = arith.constant 0.000000e+00 : f32
    %70 = vector.broadcast %cst_36 : f32 to vector<8x64xf32>
    %71 = arith.subf %70, %69 : vector<8x64xf32>
    %72 = math.exp %71 : vector<8x64xf32>
    %cst_37 = arith.constant 1.000000e+00 : f32
    %73 = vector.broadcast %cst_37 : f32 to vector<8x64xf32>
    %74 = arith.addf %73, %72 : vector<8x64xf32>
    %cst_38 = arith.constant 1.000000e+00 : f32
    %75 = vector.broadcast %cst_38 : f32 to vector<8x64xf32>
    %76 = arith.divf %75, %74 : vector<8x64xf32>
    %77 = vector.extract_strided_slice %76 {offsets = [0, 0], sizes = [8, 32], strides = [1, 1]} : vector<8x64xf32> to vector<8x32xf32>
    %78 = vector.extract_strided_slice %76 {offsets = [0, 32], sizes = [8, 32], strides = [1, 1]} : vector<8x64xf32> to vector<8x32xf32>
    %79 = vector.extract_strided_slice %63 {offsets = [0, 64], sizes = [8, 32], strides = [1, 1]} : vector<8x96xf32> to vector<8x32xf32>
    %80 = vector.extract_strided_slice %66 {offsets = [0, 64], sizes = [8, 32], strides = [1, 1]} : vector<8x96xf32> to vector<8x32xf32>
    %81 = arith.mulf %77, %80 : vector<8x32xf32>
    %82 = arith.addf %79, %81 : vector<8x32xf32>
    %83 = math.tanh %82 : vector<8x32xf32>
    %cst_39 = arith.constant 1.000000e+00 : f32
    %84 = vector.broadcast %cst_39 : f32 to vector<8x32xf32>
    %85 = arith.subf %84, %78 : vector<8x32xf32>
    %86 = arith.mulf %85, %83 : vector<8x32xf32>
    %87 = arith.mulf %78, %61 : vector<8x32xf32>
    %88 = arith.addf %86, %87 : vector<8x32xf32>
    %89 = vector.extract_strided_slice %33 {offsets = [0, 2, 0], sizes = [8, 1, 96], strides = [1, 1, 1]} : vector<8x8x96xf32> to vector<8x1x96xf32>
    %90 = vector.shape_cast %89 : vector<8x1x96xf32> to vector<8x96xf32>
    %cst_40 = arith.constant dense<0.000000e+00> : vector<8x96xf32>
    %91 = tpu.matmul %88, %1, %cst_40 {dimension_numbers = #tpu.dot_dimension_numbers<[1], [0], [0], [1], [0, 0, 1, 1], [], []>} : vector<8x32xf32>, vector<32x96xf32>, vector<8x96xf32> -> vector<8x96xf32>
    %92 = vector.broadcast %8 : vector<1x96xf32> to vector<8x96xf32>
    %93 = arith.addf %91, %92 : vector<8x96xf32>
    %94 = vector.extract_strided_slice %90 {offsets = [0, 0], sizes = [8, 64], strides = [1, 1]} : vector<8x96xf32> to vector<8x64xf32>
    %95 = vector.extract_strided_slice %93 {offsets = [0, 0], sizes = [8, 64], strides = [1, 1]} : vector<8x96xf32> to vector<8x64xf32>
    %96 = arith.addf %94, %95 : vector<8x64xf32>
    %cst_41 = arith.constant 0.000000e+00 : f32
    %97 = vector.broadcast %cst_41 : f32 to vector<8x64xf32>
    %98 = arith.subf %97, %96 : vector<8x64xf32>
    %99 = math.exp %98 : vector<8x64xf32>
    %cst_42 = arith.constant 1.000000e+00 : f32
    %100 = vector.broadcast %cst_42 : f32 to vector<8x64xf32>
    %101 = arith.addf %100, %99 : vector<8x64xf32>
    %cst_43 = arith.constant 1.000000e+00 : f32
    %102 = vector.broadcast %cst_43 : f32 to vector<8x64xf32>
    %103 = arith.divf %102, %101 : vector<8x64xf32>
    %104 = vector.extract_strided_slice %103 {offsets = [0, 0], sizes = [8, 32], strides = [1, 1]} : vector<8x64xf32> to vector<8x32xf32>
    %105 = vector.extract_strided_slice %103 {offsets = [0, 32], sizes = [8, 32], strides = [1, 1]} : vector<8x64xf32> to vector<8x32xf32>
    %106 = vector.extract_strided_slice %90 {offsets = [0, 64], sizes = [8, 32], strides = [1, 1]} : vector<8x96xf32> to vector<8x32xf32>
    %107 = vector.extract_strided_slice %93 {offsets = [0, 64], sizes = [8, 32], strides = [1, 1]} : vector<8x96xf32> to vector<8x32xf32>
    %108 = arith.mulf %104, %107 : vector<8x32xf32>
    %109 = arith.addf %106, %108 : vector<8x32xf32>
    %110 = math.tanh %109 : vector<8x32xf32>
    %cst_44 = arith.constant 1.000000e+00 : f32
    %111 = vector.broadcast %cst_44 : f32 to vector<8x32xf32>
    %112 = arith.subf %111, %105 : vector<8x32xf32>
    %113 = arith.mulf %112, %110 : vector<8x32xf32>
    %114 = arith.mulf %105, %88 : vector<8x32xf32>
    %115 = arith.addf %113, %114 : vector<8x32xf32>
    %116 = vector.extract_strided_slice %33 {offsets = [0, 3, 0], sizes = [8, 1, 96], strides = [1, 1, 1]} : vector<8x8x96xf32> to vector<8x1x96xf32>
    %117 = vector.shape_cast %116 : vector<8x1x96xf32> to vector<8x96xf32>
    %cst_45 = arith.constant dense<0.000000e+00> : vector<8x96xf32>
    %118 = tpu.matmul %115, %1, %cst_45 {dimension_numbers = #tpu.dot_dimension_numbers<[1], [0], [0], [1], [0, 0, 1, 1], [], []>} : vector<8x32xf32>, vector<32x96xf32>, vector<8x96xf32> -> vector<8x96xf32>
    %119 = vector.broadcast %8 : vector<1x96xf32> to vector<8x96xf32>
    %120 = arith.addf %118, %119 : vector<8x96xf32>
    %121 = vector.extract_strided_slice %117 {offsets = [0, 0], sizes = [8, 64], strides = [1, 1]} : vector<8x96xf32> to vector<8x64xf32>
    %122 = vector.extract_strided_slice %120 {offsets = [0, 0], sizes = [8, 64], strides = [1, 1]} : vector<8x96xf32> to vector<8x64xf32>
    %123 = arith.addf %121, %122 : vector<8x64xf32>
    %cst_46 = arith.constant 0.000000e+00 : f32
    %124 = vector.broadcast %cst_46 : f32 to vector<8x64xf32>
    %125 = arith.subf %124, %123 : vector<8x64xf32>
    %126 = math.exp %125 : vector<8x64xf32>
    %cst_47 = arith.constant 1.000000e+00 : f32
    %127 = vector.broadcast %cst_47 : f32 to vector<8x64xf32>
    %128 = arith.addf %127, %126 : vector<8x64xf32>
    %cst_48 = arith.constant 1.000000e+00 : f32
    %129 = vector.broadcast %cst_48 : f32 to vector<8x64xf32>
    %130 = arith.divf %129, %128 : vector<8x64xf32>
    %131 = vector.extract_strided_slice %130 {offsets = [0, 0], sizes = [8, 32], strides = [1, 1]} : vector<8x64xf32> to vector<8x32xf32>
    %132 = vector.extract_strided_slice %130 {offsets = [0, 32], sizes = [8, 32], strides = [1, 1]} : vector<8x64xf32> to vector<8x32xf32>
    %133 = vector.extract_strided_slice %117 {offsets = [0, 64], sizes = [8, 32], strides = [1, 1]} : vector<8x96xf32> to vector<8x32xf32>
    %134 = vector.extract_strided_slice %120 {offsets = [0, 64], sizes = [8, 32], strides = [1, 1]} : vector<8x96xf32> to vector<8x32xf32>
    %135 = arith.mulf %131, %134 : vector<8x32xf32>
    %136 = arith.addf %133, %135 : vector<8x32xf32>
    %137 = math.tanh %136 : vector<8x32xf32>
    %cst_49 = arith.constant 1.000000e+00 : f32
    %138 = vector.broadcast %cst_49 : f32 to vector<8x32xf32>
    %139 = arith.subf %138, %132 : vector<8x32xf32>
    %140 = arith.mulf %139, %137 : vector<8x32xf32>
    %141 = arith.mulf %132, %115 : vector<8x32xf32>
    %142 = arith.addf %140, %141 : vector<8x32xf32>
    %143 = vector.extract_strided_slice %33 {offsets = [0, 4, 0], sizes = [8, 1, 96], strides = [1, 1, 1]} : vector<8x8x96xf32> to vector<8x1x96xf32>
    %144 = vector.shape_cast %143 : vector<8x1x96xf32> to vector<8x96xf32>
    %cst_50 = arith.constant dense<0.000000e+00> : vector<8x96xf32>
    %145 = tpu.matmul %142, %1, %cst_50 {dimension_numbers = #tpu.dot_dimension_numbers<[1], [0], [0], [1], [0, 0, 1, 1], [], []>} : vector<8x32xf32>, vector<32x96xf32>, vector<8x96xf32> -> vector<8x96xf32>
    %146 = vector.broadcast %8 : vector<1x96xf32> to vector<8x96xf32>
    %147 = arith.addf %145, %146 : vector<8x96xf32>
    %148 = vector.extract_strided_slice %144 {offsets = [0, 0], sizes = [8, 64], strides = [1, 1]} : vector<8x96xf32> to vector<8x64xf32>
    %149 = vector.extract_strided_slice %147 {offsets = [0, 0], sizes = [8, 64], strides = [1, 1]} : vector<8x96xf32> to vector<8x64xf32>
    %150 = arith.addf %148, %149 : vector<8x64xf32>
    %cst_51 = arith.constant 0.000000e+00 : f32
    %151 = vector.broadcast %cst_51 : f32 to vector<8x64xf32>
    %152 = arith.subf %151, %150 : vector<8x64xf32>
    %153 = math.exp %152 : vector<8x64xf32>
    %cst_52 = arith.constant 1.000000e+00 : f32
    %154 = vector.broadcast %cst_52 : f32 to vector<8x64xf32>
    %155 = arith.addf %154, %153 : vector<8x64xf32>
    %cst_53 = arith.constant 1.000000e+00 : f32
    %156 = vector.broadcast %cst_53 : f32 to vector<8x64xf32>
    %157 = arith.divf %156, %155 : vector<8x64xf32>
    %158 = vector.extract_strided_slice %157 {offsets = [0, 0], sizes = [8, 32], strides = [1, 1]} : vector<8x64xf32> to vector<8x32xf32>
    %159 = vector.extract_strided_slice %157 {offsets = [0, 32], sizes = [8, 32], strides = [1, 1]} : vector<8x64xf32> to vector<8x32xf32>
    %160 = vector.extract_strided_slice %144 {offsets = [0, 64], sizes = [8, 32], strides = [1, 1]} : vector<8x96xf32> to vector<8x32xf32>
    %161 = vector.extract_strided_slice %147 {offsets = [0, 64], sizes = [8, 32], strides = [1, 1]} : vector<8x96xf32> to vector<8x32xf32>
    %162 = arith.mulf %158, %161 : vector<8x32xf32>
    %163 = arith.addf %160, %162 : vector<8x32xf32>
    %164 = math.tanh %163 : vector<8x32xf32>
    %cst_54 = arith.constant 1.000000e+00 : f32
    %165 = vector.broadcast %cst_54 : f32 to vector<8x32xf32>
    %166 = arith.subf %165, %159 : vector<8x32xf32>
    %167 = arith.mulf %166, %164 : vector<8x32xf32>
    %168 = arith.mulf %159, %142 : vector<8x32xf32>
    %169 = arith.addf %167, %168 : vector<8x32xf32>
    %170 = vector.extract_strided_slice %33 {offsets = [0, 5, 0], sizes = [8, 1, 96], strides = [1, 1, 1]} : vector<8x8x96xf32> to vector<8x1x96xf32>
    %171 = vector.shape_cast %170 : vector<8x1x96xf32> to vector<8x96xf32>
    %cst_55 = arith.constant dense<0.000000e+00> : vector<8x96xf32>
    %172 = tpu.matmul %169, %1, %cst_55 {dimension_numbers = #tpu.dot_dimension_numbers<[1], [0], [0], [1], [0, 0, 1, 1], [], []>} : vector<8x32xf32>, vector<32x96xf32>, vector<8x96xf32> -> vector<8x96xf32>
    %173 = vector.broadcast %8 : vector<1x96xf32> to vector<8x96xf32>
    %174 = arith.addf %172, %173 : vector<8x96xf32>
    %175 = vector.extract_strided_slice %171 {offsets = [0, 0], sizes = [8, 64], strides = [1, 1]} : vector<8x96xf32> to vector<8x64xf32>
    %176 = vector.extract_strided_slice %174 {offsets = [0, 0], sizes = [8, 64], strides = [1, 1]} : vector<8x96xf32> to vector<8x64xf32>
    %177 = arith.addf %175, %176 : vector<8x64xf32>
    %cst_56 = arith.constant 0.000000e+00 : f32
    %178 = vector.broadcast %cst_56 : f32 to vector<8x64xf32>
    %179 = arith.subf %178, %177 : vector<8x64xf32>
    %180 = math.exp %179 : vector<8x64xf32>
    %cst_57 = arith.constant 1.000000e+00 : f32
    %181 = vector.broadcast %cst_57 : f32 to vector<8x64xf32>
    %182 = arith.addf %181, %180 : vector<8x64xf32>
    %cst_58 = arith.constant 1.000000e+00 : f32
    %183 = vector.broadcast %cst_58 : f32 to vector<8x64xf32>
    %184 = arith.divf %183, %182 : vector<8x64xf32>
    %185 = vector.extract_strided_slice %184 {offsets = [0, 0], sizes = [8, 32], strides = [1, 1]} : vector<8x64xf32> to vector<8x32xf32>
    %186 = vector.extract_strided_slice %184 {offsets = [0, 32], sizes = [8, 32], strides = [1, 1]} : vector<8x64xf32> to vector<8x32xf32>
    %187 = vector.extract_strided_slice %171 {offsets = [0, 64], sizes = [8, 32], strides = [1, 1]} : vector<8x96xf32> to vector<8x32xf32>
    %188 = vector.extract_strided_slice %174 {offsets = [0, 64], sizes = [8, 32], strides = [1, 1]} : vector<8x96xf32> to vector<8x32xf32>
    %189 = arith.mulf %185, %188 : vector<8x32xf32>
    %190 = arith.addf %187, %189 : vector<8x32xf32>
    %191 = math.tanh %190 : vector<8x32xf32>
    %cst_59 = arith.constant 1.000000e+00 : f32
    %192 = vector.broadcast %cst_59 : f32 to vector<8x32xf32>
    %193 = arith.subf %192, %186 : vector<8x32xf32>
    %194 = arith.mulf %193, %191 : vector<8x32xf32>
    %195 = arith.mulf %186, %169 : vector<8x32xf32>
    %196 = arith.addf %194, %195 : vector<8x32xf32>
    %197 = vector.extract_strided_slice %33 {offsets = [0, 6, 0], sizes = [8, 1, 96], strides = [1, 1, 1]} : vector<8x8x96xf32> to vector<8x1x96xf32>
    %198 = vector.shape_cast %197 : vector<8x1x96xf32> to vector<8x96xf32>
    %cst_60 = arith.constant dense<0.000000e+00> : vector<8x96xf32>
    %199 = tpu.matmul %196, %1, %cst_60 {dimension_numbers = #tpu.dot_dimension_numbers<[1], [0], [0], [1], [0, 0, 1, 1], [], []>} : vector<8x32xf32>, vector<32x96xf32>, vector<8x96xf32> -> vector<8x96xf32>
    %200 = vector.broadcast %8 : vector<1x96xf32> to vector<8x96xf32>
    %201 = arith.addf %199, %200 : vector<8x96xf32>
    %202 = vector.extract_strided_slice %198 {offsets = [0, 0], sizes = [8, 64], strides = [1, 1]} : vector<8x96xf32> to vector<8x64xf32>
    %203 = vector.extract_strided_slice %201 {offsets = [0, 0], sizes = [8, 64], strides = [1, 1]} : vector<8x96xf32> to vector<8x64xf32>
    %204 = arith.addf %202, %203 : vector<8x64xf32>
    %cst_61 = arith.constant 0.000000e+00 : f32
    %205 = vector.broadcast %cst_61 : f32 to vector<8x64xf32>
    %206 = arith.subf %205, %204 : vector<8x64xf32>
    %207 = math.exp %206 : vector<8x64xf32>
    %cst_62 = arith.constant 1.000000e+00 : f32
    %208 = vector.broadcast %cst_62 : f32 to vector<8x64xf32>
    %209 = arith.addf %208, %207 : vector<8x64xf32>
    %cst_63 = arith.constant 1.000000e+00 : f32
    %210 = vector.broadcast %cst_63 : f32 to vector<8x64xf32>
    %211 = arith.divf %210, %209 : vector<8x64xf32>
    %212 = vector.extract_strided_slice %211 {offsets = [0, 0], sizes = [8, 32], strides = [1, 1]} : vector<8x64xf32> to vector<8x32xf32>
    %213 = vector.extract_strided_slice %211 {offsets = [0, 32], sizes = [8, 32], strides = [1, 1]} : vector<8x64xf32> to vector<8x32xf32>
    %214 = vector.extract_strided_slice %198 {offsets = [0, 64], sizes = [8, 32], strides = [1, 1]} : vector<8x96xf32> to vector<8x32xf32>
    %215 = vector.extract_strided_slice %201 {offsets = [0, 64], sizes = [8, 32], strides = [1, 1]} : vector<8x96xf32> to vector<8x32xf32>
    %216 = arith.mulf %212, %215 : vector<8x32xf32>
    %217 = arith.addf %214, %216 : vector<8x32xf32>
    %218 = math.tanh %217 : vector<8x32xf32>
    %cst_64 = arith.constant 1.000000e+00 : f32
    %219 = vector.broadcast %cst_64 : f32 to vector<8x32xf32>
    %220 = arith.subf %219, %213 : vector<8x32xf32>
    %221 = arith.mulf %220, %218 : vector<8x32xf32>
    %222 = arith.mulf %213, %196 : vector<8x32xf32>
    %223 = arith.addf %221, %222 : vector<8x32xf32>
    %224 = vector.extract_strided_slice %33 {offsets = [0, 7, 0], sizes = [8, 1, 96], strides = [1, 1, 1]} : vector<8x8x96xf32> to vector<8x1x96xf32>
    %225 = vector.shape_cast %224 : vector<8x1x96xf32> to vector<8x96xf32>
    %cst_65 = arith.constant dense<0.000000e+00> : vector<8x96xf32>
    %226 = tpu.matmul %223, %1, %cst_65 {dimension_numbers = #tpu.dot_dimension_numbers<[1], [0], [0], [1], [0, 0, 1, 1], [], []>} : vector<8x32xf32>, vector<32x96xf32>, vector<8x96xf32> -> vector<8x96xf32>
    %227 = vector.broadcast %8 : vector<1x96xf32> to vector<8x96xf32>
    %228 = arith.addf %226, %227 : vector<8x96xf32>
    %229 = vector.extract_strided_slice %225 {offsets = [0, 0], sizes = [8, 64], strides = [1, 1]} : vector<8x96xf32> to vector<8x64xf32>
    %230 = vector.extract_strided_slice %228 {offsets = [0, 0], sizes = [8, 64], strides = [1, 1]} : vector<8x96xf32> to vector<8x64xf32>
    %231 = arith.addf %229, %230 : vector<8x64xf32>
    %cst_66 = arith.constant 0.000000e+00 : f32
    %232 = vector.broadcast %cst_66 : f32 to vector<8x64xf32>
    %233 = arith.subf %232, %231 : vector<8x64xf32>
    %234 = math.exp %233 : vector<8x64xf32>
    %cst_67 = arith.constant 1.000000e+00 : f32
    %235 = vector.broadcast %cst_67 : f32 to vector<8x64xf32>
    %236 = arith.addf %235, %234 : vector<8x64xf32>
    %cst_68 = arith.constant 1.000000e+00 : f32
    %237 = vector.broadcast %cst_68 : f32 to vector<8x64xf32>
    %238 = arith.divf %237, %236 : vector<8x64xf32>
    %239 = vector.extract_strided_slice %238 {offsets = [0, 0], sizes = [8, 32], strides = [1, 1]} : vector<8x64xf32> to vector<8x32xf32>
    %240 = vector.extract_strided_slice %238 {offsets = [0, 32], sizes = [8, 32], strides = [1, 1]} : vector<8x64xf32> to vector<8x32xf32>
    %241 = vector.extract_strided_slice %225 {offsets = [0, 64], sizes = [8, 32], strides = [1, 1]} : vector<8x96xf32> to vector<8x32xf32>
    %242 = vector.extract_strided_slice %228 {offsets = [0, 64], sizes = [8, 32], strides = [1, 1]} : vector<8x96xf32> to vector<8x32xf32>
    %243 = arith.mulf %239, %242 : vector<8x32xf32>
    %244 = arith.addf %241, %243 : vector<8x32xf32>
    %245 = math.tanh %244 : vector<8x32xf32>
    %cst_69 = arith.constant 1.000000e+00 : f32
    %246 = vector.broadcast %cst_69 : f32 to vector<8x32xf32>
    %247 = arith.subf %246, %240 : vector<8x32xf32>
    %248 = arith.mulf %247, %245 : vector<8x32xf32>
    %249 = arith.mulf %240, %223 : vector<8x32xf32>
    %250 = arith.addf %248, %249 : vector<8x32xf32>
    %c0_70 = arith.constant 0 : index
    %c0_71 = arith.constant 0 : index
    %251 = vector.load %arg1[%c0_70, %c0_71] : memref<8x1xf32, #tpu.memory_space<vmem>>, vector<8x1xf32>
    %252 = vector.broadcast %251 : vector<8x1xf32> to vector<8x32xf32>
    %253 = vector.broadcast %9 : vector<1x32xf32> to vector<8x32xf32>
    %254 = arith.mulf %252, %253 : vector<8x32xf32>
    %255 = vector.broadcast %10 : vector<1x32xf32> to vector<8x32xf32>
    %256 = arith.addf %254, %255 : vector<8x32xf32>
    %257 = vector.broadcast %251 : vector<8x1xf32> to vector<8x32xf32>
    %258 = vector.broadcast %11 : vector<1x32xf32> to vector<8x32xf32>
    %259 = arith.mulf %257, %258 : vector<8x32xf32>
    %260 = vector.broadcast %12 : vector<1x32xf32> to vector<8x32xf32>
    %261 = arith.addf %259, %260 : vector<8x32xf32>
    %cst_72 = arith.constant 2.000000e+01 : f32
    %262 = vector.broadcast %cst_72 : f32 to vector<8x32xf32>
    %263 = arith.cmpf ogt, %261, %262 : vector<8x32xf32>
    %cst_73 = arith.constant 2.000000e+01 : f32
    %264 = vector.broadcast %cst_73 : f32 to vector<8x32xf32>
    %265 = arith.minimumf %261, %264 : vector<8x32xf32>
    %266 = math.exp %265 : vector<8x32xf32>
    %cst_74 = arith.constant 1.000000e+00 : f32
    %267 = vector.broadcast %cst_74 : f32 to vector<8x32xf32>
    %268 = arith.addf %267, %266 : vector<8x32xf32>
    %269 = math.log %268 : vector<8x32xf32>
    %270 = arith.select %263, %261, %269 : vector<8x32xi1>, vector<8x32xf32>
    %cst_75 = arith.constant dense<0.000000e+00> : vector<8x128xf32>
    %271 = tpu.matmul %250, %2, %cst_75 {dimension_numbers = #tpu.dot_dimension_numbers<[1], [0], [0], [1], [0, 0, 1, 1], [], []>} : vector<8x32xf32>, vector<32x128xf32>, vector<8x128xf32> -> vector<8x128xf32>
    %272 = vector.broadcast %13 : vector<1x128xf32> to vector<8x128xf32>
    %273 = arith.addf %271, %272 : vector<8x128xf32>
    %274 = vector.extract_strided_slice %273 {offsets = [0, 0], sizes = [8, 32], strides = [1, 1]} : vector<8x128xf32> to vector<8x32xf32>
    %cst_76 = arith.constant 0.000000e+00 : f32
    %275 = vector.broadcast %cst_76 : f32 to vector<8x32xf32>
    %276 = arith.cmpf oge, %274, %275 : vector<8x32xf32>
    %cst_77 = arith.constant 2.000000e-01 : f32
    %277 = vector.broadcast %cst_77 : f32 to vector<8x32xf32>
    %278 = arith.mulf %277, %274 : vector<8x32xf32>
    %279 = arith.select %276, %274, %278 : vector<8x32xi1>, vector<8x32xf32>
    %280 = vector.extract_strided_slice %273 {offsets = [0, 32], sizes = [8, 32], strides = [1, 1]} : vector<8x128xf32> to vector<8x32xf32>
    %281 = vector.extract_strided_slice %273 {offsets = [0, 64], sizes = [8, 32], strides = [1, 1]} : vector<8x128xf32> to vector<8x32xf32>
    %282 = vector.extract_strided_slice %273 {offsets = [0, 96], sizes = [8, 32], strides = [1, 1]} : vector<8x128xf32> to vector<8x32xf32>
    %283 = vector.broadcast %14 : vector<1x32xf32> to vector<8x32xf32>
    %284 = arith.mulf %279, %283 : vector<8x32xf32>
    %cst_78 = arith.constant dense<0.000000e+00> : vector<8xf32>
    %285 = vector.multi_reduction <add>, %284, %cst_78 [1] : vector<8x32xf32> to vector<8xf32>
    %286 = vector.shape_cast %285 : vector<8xf32> to vector<8x1xf32>
    %287 = vector.broadcast %19 : vector<1x1xf32> to vector<8x1xf32>
    %288 = arith.addf %286, %287 : vector<8x1xf32>
    %289 = vector.broadcast %15 : vector<1x32xf32> to vector<8x32xf32>
    %290 = arith.mulf %279, %289 : vector<8x32xf32>
    %cst_79 = arith.constant dense<0.000000e+00> : vector<8xf32>
    %291 = vector.multi_reduction <add>, %290, %cst_79 [1] : vector<8x32xf32> to vector<8xf32>
    %292 = vector.shape_cast %291 : vector<8xf32> to vector<8x1xf32>
    %293 = vector.broadcast %20 : vector<1x1xf32> to vector<8x1xf32>
    %294 = arith.addf %292, %293 : vector<8x1xf32>
    %cst_80 = arith.constant 2.000000e+01 : f32
    %295 = vector.broadcast %cst_80 : f32 to vector<8x1xf32>
    %296 = arith.cmpf ogt, %294, %295 : vector<8x1xf32>
    %cst_81 = arith.constant 2.000000e+01 : f32
    %297 = vector.broadcast %cst_81 : f32 to vector<8x1xf32>
    %298 = arith.minimumf %294, %297 : vector<8x1xf32>
    %299 = math.exp %298 : vector<8x1xf32>
    %cst_82 = arith.constant 1.000000e+00 : f32
    %300 = vector.broadcast %cst_82 : f32 to vector<8x1xf32>
    %301 = arith.addf %300, %299 : vector<8x1xf32>
    %302 = math.log %301 : vector<8x1xf32>
    %303 = arith.select %296, %294, %302 : vector<8x1xi1>, vector<8x1xf32>
    %304 = arith.mulf %303, %303 : vector<8x1xf32>
    %305 = arith.mulf %280, %280 : vector<8x32xf32>
    %306 = vector.broadcast %16 : vector<1x32xf32> to vector<8x32xf32>
    %307 = arith.mulf %281, %306 : vector<8x32xf32>
    %cst_83 = arith.constant dense<0.000000e+00> : vector<8xf32>
    %308 = vector.multi_reduction <add>, %307, %cst_83 [1] : vector<8x32xf32> to vector<8xf32>
    %309 = vector.shape_cast %308 : vector<8xf32> to vector<8x1xf32>
    %310 = arith.mulf %281, %281 : vector<8x32xf32>
    %311 = vector.shape_cast %310 : vector<8x32xf32> to vector<1x8x32xf32>
    %cst_84 = arith.constant dense<0.000000e+00> : vector<1xf32>
    %312 = vector.multi_reduction <add>, %311, %cst_84 [1, 2] : vector<1x8x32xf32> to vector<1xf32>
    %313 = vector.shape_cast %312 : vector<1xf32> to vector<1x1x1xf32>
    %314 = vector.extract %313[0, 0, 0] : f32 from vector<1x1x1xf32>
    %315 = vector.broadcast %314 : f32 to vector<1x1xf32>
    %316 = arith.mulf %282, %282 : vector<8x32xf32>
    %317 = vector.shape_cast %316 : vector<8x32xf32> to vector<1x8x32xf32>
    %cst_85 = arith.constant dense<0.000000e+00> : vector<1xf32>
    %318 = vector.multi_reduction <add>, %317, %cst_85 [1, 2] : vector<1x8x32xf32> to vector<1xf32>
    %319 = vector.shape_cast %318 : vector<1xf32> to vector<1x1x1xf32>
    %320 = vector.extract %319[0, 0, 0] : f32 from vector<1x1x1xf32>
    %321 = vector.broadcast %320 : f32 to vector<1x1xf32>
    %322 = arith.mulf %315, %321 : vector<1x1xf32>
    %323 = math.sqrt %322 : vector<1x1xf32>
    %324 = tpu.reciprocal %323 {approx = true} : vector<1x1xf32> -> vector<1x1xf32>
    %325 = vector.broadcast %324 : vector<1x1xf32> to vector<8x1xf32>
    %326 = arith.mulf %309, %325 : vector<8x1xf32>
    %cst_86 = arith.constant 0.000000e+00 : f32
    %327 = vector.broadcast %cst_86 : f32 to vector<8x1xf32>
    %328 = arith.maximumf %326, %327 : vector<8x1xf32>
    %cst_87 = arith.constant dense<0.000000e+00> : vector<1xf32>
    %329 = vector.multi_reduction <add>, %328, %cst_87 [0] : vector<8x1xf32> to vector<1xf32>
    %330 = vector.shape_cast %329 : vector<1xf32> to vector<1x1xf32>
    %331 = vector.broadcast %330 : vector<1x1xf32> to vector<8x1xf32>
    %332 = arith.divf %328, %331 : vector<8x1xf32>
    %cst_88 = arith.constant dense<0.000000e+00> : vector<32xf32>
    %333 = vector.multi_reduction <add>, %282, %cst_88 [0] : vector<8x32xf32> to vector<32xf32>
    %334 = vector.shape_cast %333 : vector<32xf32> to vector<1x32xf32>
    %335 = vector.broadcast %332 : vector<8x1xf32> to vector<8x32xf32>
    %336 = vector.broadcast %334 : vector<1x32xf32> to vector<8x32xf32>
    %337 = arith.mulf %335, %336 : vector<8x32xf32>
    %cst_89 = arith.constant dense<0.000000e+00> : vector<8x32xf32>
    %338 = tpu.matmul %337, %3, %cst_89 {dimension_numbers = #tpu.dot_dimension_numbers<[1], [0], [0], [1], [0, 0, 1, 1], [], []>} : vector<8x32xf32>, vector<32x32xf32>, vector<8x32xf32> -> vector<8x32xf32>
    %339 = vector.broadcast %17 : vector<1x32xf32> to vector<8x32xf32>
    %340 = arith.addf %338, %339 : vector<8x32xf32>
    %cst_90 = arith.constant 0.000000e+00 : f32
    %341 = vector.broadcast %cst_90 : f32 to vector<8x32xf32>
    %342 = arith.cmpf oge, %340, %341 : vector<8x32xf32>
    %cst_91 = arith.constant 2.000000e-01 : f32
    %343 = vector.broadcast %cst_91 : f32 to vector<8x32xf32>
    %344 = arith.mulf %343, %340 : vector<8x32xf32>
    %345 = arith.select %342, %340, %344 : vector<8x32xi1>, vector<8x32xf32>
    %cst_92 = arith.constant dense<0.000000e+00> : vector<8x64xf32>
    %346 = tpu.matmul %345, %4, %cst_92 {dimension_numbers = #tpu.dot_dimension_numbers<[1], [0], [0], [1], [0, 0, 1, 1], [], []>} : vector<8x32xf32>, vector<32x64xf32>, vector<8x64xf32> -> vector<8x64xf32>
    %347 = vector.broadcast %18 : vector<1x64xf32> to vector<8x64xf32>
    %348 = arith.addf %346, %347 : vector<8x64xf32>
    %349 = vector.extract_strided_slice %348 {offsets = [0, 0], sizes = [8, 32], strides = [1, 1]} : vector<8x64xf32> to vector<8x32xf32>
    %350 = vector.extract_strided_slice %348 {offsets = [0, 32], sizes = [8, 32], strides = [1, 1]} : vector<8x64xf32> to vector<8x32xf32>
    %cst_93 = arith.constant 2.000000e+01 : f32
    %351 = vector.broadcast %cst_93 : f32 to vector<8x32xf32>
    %352 = arith.cmpf ogt, %350, %351 : vector<8x32xf32>
    %cst_94 = arith.constant 2.000000e+01 : f32
    %353 = vector.broadcast %cst_94 : f32 to vector<8x32xf32>
    %354 = arith.minimumf %350, %353 : vector<8x32xf32>
    %355 = math.exp %354 : vector<8x32xf32>
    %cst_95 = arith.constant 1.000000e+00 : f32
    %356 = vector.broadcast %cst_95 : f32 to vector<8x32xf32>
    %357 = arith.addf %356, %355 : vector<8x32xf32>
    %358 = math.log %357 : vector<8x32xf32>
    %359 = arith.select %352, %350, %358 : vector<8x32xi1>, vector<8x32xf32>
    %360 = arith.mulf %280, %256 : vector<8x32xf32>
    %cst_96 = arith.constant dense<0.000000e+00> : vector<8xf32>
    %361 = vector.multi_reduction <add>, %360, %cst_96 [1] : vector<8x32xf32> to vector<8xf32>
    %362 = vector.shape_cast %361 : vector<8xf32> to vector<8x1xf32>
    %363 = arith.addf %288, %362 : vector<8x1xf32>
    %364 = arith.mulf %305, %270 : vector<8x32xf32>
    %365 = arith.mulf %364, %270 : vector<8x32xf32>
    %cst_97 = arith.constant dense<0.000000e+00> : vector<8xf32>
    %366 = vector.multi_reduction <add>, %365, %cst_97 [1] : vector<8x32xf32> to vector<8xf32>
    %367 = vector.shape_cast %366 : vector<8xf32> to vector<8x1xf32>
    %368 = arith.addf %304, %367 : vector<8x1xf32>
    %369 = math.sqrt %368 : vector<8x1xf32>
    %370 = arith.mulf %280, %349 : vector<8x32xf32>
    %cst_98 = arith.constant dense<0.000000e+00> : vector<8xf32>
    %371 = vector.multi_reduction <add>, %370, %cst_98 [1] : vector<8x32xf32> to vector<8xf32>
    %372 = vector.shape_cast %371 : vector<8xf32> to vector<8x1xf32>
    %373 = arith.addf %288, %372 : vector<8x1xf32>
    %374 = arith.mulf %305, %359 : vector<8x32xf32>
    %375 = arith.mulf %374, %359 : vector<8x32xf32>
    %cst_99 = arith.constant dense<0.000000e+00> : vector<8xf32>
    %376 = vector.multi_reduction <add>, %375, %cst_99 [1] : vector<8x32xf32> to vector<8xf32>
    %377 = vector.shape_cast %376 : vector<8xf32> to vector<8x1xf32>
    %378 = arith.addf %304, %377 : vector<8x1xf32>
    %379 = math.sqrt %378 : vector<8x1xf32>
    %380 = tpu.concatenate %256, %270, %349, %359 in 1 : vector<8x32xf32>, vector<8x32xf32>, vector<8x32xf32>, vector<8x32xf32> -> vector<8x128xf32>
    %c0_100 = arith.constant 0 : index
    %c0_101 = arith.constant 0 : index
    %381 = vector.load %arg4[%c0_100, %c0_101] : memref<8x128xf32, #tpu.memory_space<vmem>>, vector<8x128xf32>
    tpu.vector_store %arg4[%c0_100, %c0_101], %380 {strides = array<i32>} : memref<8x128xf32, #tpu.memory_space<vmem>>, vector<8x128xf32>,
    %382 = tpu.concatenate %363, %369, %373, %379 in 1 : vector<8x1xf32>, vector<8x1xf32>, vector<8x1xf32>, vector<8x1xf32> -> vector<8x4xf32>
    %c0_102 = arith.constant 0 : index
    %c0_103 = arith.constant 0 : index
    %383 = vector.load %arg5[%c0_102, %c0_103] : memref<8x4xf32, #tpu.memory_space<vmem>>, vector<8x4xf32>
    tpu.vector_store %arg5[%c0_102, %c0_103], %382 {strides = array<i32>} : memref<8x4xf32, #tpu.memory_space<vmem>>, vector<8x4xf32>,
    return
  }
}

</mosaic_0001>

<bundles_post_ra>
// kernel: model_forward.1
= control target key start
LH: loop header
LB: loop body
LE: loop exit
PB: predicated region body
PF: predicated region fallthrough
CT: control target
= control target key end

     0   :  { %11 = vsyncpa [#allocation3], 0  ;;  %s5810_s0 = inlined_call_operand.hbm [shape: f32[64,16], index: 0, kind: input, shape index: {}]   ;;  %s5811_s1 = inlined_call_operand.vmem [shape: f32[8,1], index: 1, kind: input, shape index: {}]   ;;  %s5812_s2 = inlined_call_operand.hbm [shape: f32[32,448], index: 2, kind: input, shape index: {}]   ;;  %s5813_s3 = inlined_call_operand.vmem [shape: f32[1,674], index: 3, kind: input, shape index: {}]   ;;  %s5814_s4 = inlined_call_operand.vmem [shape: f32[8,128], index: 4, kind: output, shape index: {0}]   ;;  %s5815_s5 = inlined_call_operand.vmem [shape: f32[8,4], index: 5, kind: output, shape index: {1}]  }
   0x1   :  { %12 = vsyncpa [#allocation5], 0  ;;  %s4488_s18 = smov [#allocation2]   ;;  %s4440_s22 = scalar_lea.hbm %s5810_s0, 1024 }
   0x2   :  { %s18_s19 = sshll.u32 %s4488_s18, 4  ;;  %p4441_p0 = scmp.ne.s32.totalorder %s5810_s0, %s4440_s22  ;;  %s19_s19 = int_to_ptr.vmem [resolvable:$true] %s18_s19 }
   0x3   :  { %p4444_p1 = scmp.lt.u32.totalorder %s4440_s22, %s5810_s0 }
   0x5   :  { %p4446_p2 = pnand %p4444_p1, %p4441_p0 }
   0x7   :  { %4449 = shalt.err (!%p4446_p2)
}
   0x8   :  { %s4450_s27 = scalar_lea.vmem %s19_s19, 1024  ;;  %p4455_p4 = scmp.lt.s32.totalorder %s19_s19, %s19_s19 }
   0x9   :  { %p4451_p3 = scmp.ne.s32.totalorder %s19_s19, %s4450_s27  ;;  %p4456_p5 = scmp.lt.s32.totalorder %s4450_s27, %s4450_s27 }
   0xb   :  { %p4457_p6 = por %p4456_p5, %p4455_p4 }
   0xd   :  { %p4458_p7 = pnand %p4457_p6, %p4451_p3 }
   0xf   :  { %4461 = shalt.err (!%p4458_p7)
}
  0x10   :  { %s4489_s28 = smov 128   ;;  %s4490_s29 = smov 8  }
  0x11   :  { %24 = dma.hbm_to_vmem [thread:$0]  %s5810_s0, 1024, %s19_s19, [#allocation3], %s4489_s28, %s4489_s28, %s4490_s29  }
  0x12   :  { %s4491_s7 = smov [#allocation4]   ;;  %s4462_s11 = scalar_lea.hbm %s5812_s2, 2048 }
  0x13   :  { %s32_s8 = sshll.u32 %s4491_s7, 4  ;;  %p4463_p8 = scmp.ne.s32.totalorder %s5812_s2, %s4462_s11  ;;  %s33_s8 = int_to_ptr.vmem [resolvable:$true] %s32_s8 }
  0x14   :  { %p4466_p9 = scmp.lt.u32.totalorder %s4462_s11, %s5812_s2 }
  0x16   :  { %p4468_p10 = pnand %p4466_p9, %p4463_p8 }
  0x18   :  { %4471 = shalt.err (!%p4468_p10)
}
  0x19   :  { %s4472_s16 = scalar_lea.vmem %s33_s8, 2048  ;;  %p4477_p12 = scmp.lt.s32.totalorder %s33_s8, %s33_s8 }
  0x1a   :  { %p4473_p11 = scmp.ne.s32.totalorder %s33_s8, %s4472_s16  ;;  %p4478_p13 = scmp.lt.s32.totalorder %s4472_s16, %s4472_s16 }
  0x1c   :  { %p4479_p0 = por %p4478_p13, %p4477_p12 }
  0x1e   :  { %p4480_p1 = pnand %p4479_p0, %p4473_p11 }
  0x20   :  { %4483 = shalt.err (!%p4480_p1)
}
  0x21   :  { %s4492_s0 = smov 512   ;;  %s4493_s17 = smov 32  }
  0x22   :  { %38 = dma.hbm_to_vmem [thread:$0]  %s5812_s2, 2048, %s33_s8, [#allocation5], %s4492_s0, %s4492_s0, %s4493_s17  }
  0x23   :  { %4484 = dma.done.wait [#allocation3], 1024  }
  0x24   :  { %4485 = vsyncadd [#allocation3], 4294966272 }
  0x25   :  { %4486 = dma.done.wait [#allocation5], 2048  }
  0x26   :  { %4487 = vsyncadd [#allocation5], 4294965248  ;;  %v4556_v0 = vld [vmem:[#allocation4 + $0x18] sm:$0xff]  ;;  %v4558_v2 = vld [vmem:[#allocation4 + $0x10] sm:$0xff]  ;;  %vm93_vm0 = vcmask 130048   ;;  %s4494_s2 = smov 96  }
  0x27   :  { %v60_v1 = vld [vmem:[#allocation4 + $0x38] sm:$0xff]  ;;  %v4003_v4 = vpack.i.bf16 %v4556_v0, %v4558_v2  ;;  %v52_v5 = vld [vmem:[#allocation4 + $0x28] sm:$0xff]  ;;  %v48_v6 = vld [vmem:[#allocation4 + $0x20] sm:$0xff]  ;;  %v4495_v20 = vmov 0.0|0.0   ;;  %vm250_vm1 = vcmask 261120   ;;  %vm4496_vm2 = vmmov 0  }
  0x28   :  { %v3958_v3 = vpack.i.bf16 %v60_v1, %v4556_v0  ;;  %v3968_v7 = vpack.i.bf16 %v52_v5, %v48_v6  ;;  %v51_v8 = vld [vmem:[#allocation4 + $0x8] sm:$0xff]  ;;  %v47_v9 = vld [vmem:[#allocation4] sm:$0xff]  ;;  %v73_v36 = vld [vmem:[#allocation2 + $0x10] sm:$0xff]  ;;  %v4497_v50 = vmov 0.0   ;;  %s4498_s24 = smov 64   ;;  %vm716_vm11 = vcmask 1041409  }
  0x29   :  { %v53_v10 = vld [vmem:[#allocation4 + $0x48] sm:$0xff]  ;;  %v3963_v11 = vpack.i.bf16 %v51_v8, %v47_v9  ;;  %v49_v12 = vld [vmem:[#allocation4 + $0x40] sm:$0xff]  ;;  %v3867_v19 = vpack.c.bf16 %v48_v6, %v47_v9  ;;  %v74_v43 = vld [vmem:[#allocation2 + $0x18] sm:$0xff]  ;;  %vm719_vm12 = vcmask 1042434   ;;  %vm722_vm13 = vcmask 1043459  }
  0x2a   :  { %3959 = vrot.lane.b32.xlu0 %v3958_v3, %s4494_s2  ;;  %3969 = vrot.lane.b32.xlu1 %v3968_v7, %s4493_s17  ;;  %v3973_v13 = vpack.i.bf16 %v53_v10, %v49_v12  ;;  %v54_v14 = vld [vmem:[#allocation4 + $0x68] sm:$0xff]  ;;  %v50_v15 = vld [vmem:[#allocation4 + $0x60] sm:$0xff]  ;;  %v77_v48 = vld [vmem:[#allocation2 + $0x30] sm:$0xff]  ;;  %vm725_vm14 = vcmask 1044484   ;;  %vm728_vm15 = vcmask 1045509   ;;  %v4499_v0 = vmov 0  }
  0x2b   :  { %v71_v16 = vld [vmem:[#allocation2] sm:$0xff]  ;;  %v3978_v17 = vpack.i.bf16 %v54_v14, %v50_v15  ;;  %v3871_v18 = vpack.c.bf16 %v50_v15, %v49_v12  ;;  %3868 = vmatprep.subr.bf16.mxu1 %v3867_v19  ;;  %v72_v33 = vld [vmem:[#allocation2 + $0x8] sm:$0xff]  ;;  %v78_v49 = vld [vmem:[#allocation2 + $0x38] sm:$0xff]  ;;  %4023 = vset.pattern.permute.xlu1 %v4499_v0 }
  0x2c   :  { %3710 = vmatprep.mubr.msk.f32.mxu0 %vm93_vm0, %v71_v16  ;;  %3870 = vmatpush3.bf16.msra.mxu1 %v3867_v19  ;;  %v75_v44 = vld [vmem:[#allocation2 + $0x20] sm:$0xff]  ;;  %v76_v47 = vld [vmem:[#allocation2 + $0x28] sm:$0xff]  ;;  %v61_v2 = vld [vmem:[#allocation4 + $0x58] sm:$0xff] }
  0x2d   :  { %3872 = vmatprep.subr.bf16.mxu1 %v3871_v18  ;;  %v3597_v51 = vld [vmem:[%s5813_s3] ss:$0 sm:$0xff]  ;;  %4024 = vset.pattern.permute.xlu0 %v4499_v0 }
  0x2e   :  { %3964 = vrot.lane.b32.xlu0 %v3963_v11, %s4493_s17  ;;  %3974 = vrot.lane.b32.xlu1 %v3973_v13, %s4493_s17 }
  0x30   :  { %3874 = vmatpush3.bf16.msra.mxu1 %v3871_v18  ;;  %v4613_v18 = vld [vmem:[%s5813_s3 + $0x1] ss:$0 sm:$0xff] }
  0x31   :  { %3881 = vmatprep.subr.bf16.mxu1 %v4495_v20 }
  0x32   :  { %3979 = vrot.lane.b32.xlu0 %v3978_v17, %s4493_s17  ;;  %247 = vrot.lane.b32.xlu1 %v3597_v51, %s4494_s2 }
  0x9c   :  { %v3960_v21 = vpop.permute.xlu0 %3959  ;;  %v3970_v24 = vpop.permute.xlu1 %3969 }
  0x9d   :  { %v3962_v22 = vunpack.i.h.bf16 %v3960_v21  ;;  %v3961_v23 = vunpack.i.l.bf16 %v3960_v21  ;;  %v3972_v25 = vunpack.i.h.bf16 %v3970_v24  ;;  %v3971_v26 = vunpack.i.l.bf16 %v3970_v24 }
  0x9f   :  { %v3863_v27 = vpack.c.bf16 %v3962_v22, %v3961_v23  ;;  %v411_v29 = vsel %vm250_vm1, %v3971_v26, %v3972_v25 }
  0xa0   :  { %v3965_v28 = vpop.permute.xlu0 %3964  ;;  %v3975_v32 = vpop.permute.xlu1 %3974 }
  0xa1   :  { %3864 = vmatprep.subr.bf16.mxu0 %v3863_v27  ;;  %v3967_v30 = vunpack.i.h.bf16 %v3965_v28  ;;  %v3966_v31 = vunpack.i.l.bf16 %v3965_v28  ;;  %v3977_v34 = vunpack.i.h.bf16 %v3975_v32  ;;  %v3976_v35 = vunpack.i.l.bf16 %v3975_v32 }
  0xa2   :  { %3866 = vmatpush3.bf16.msra.mxu0 %v3863_v27 }
  0xa3   :  { %v410_v37 = vsel %vm250_vm1, %v3966_v31, %v3967_v30  ;;  %3875 = vmatprep.subr.bf16.mxu0 %v4495_v20  ;;  %v412_v40 = vsel %vm250_vm1, %v3976_v35, %v3977_v34 }
  0xa4   :  { %v4573_v38 = vpack.c.bf16 %v411_v29, %v410_v37  ;;  %v3980_v39 = vpop.permute.xlu0 %3979  ;;  %v248_v35 = vpop.permute.xlu1 %247 }
  0xa5   :  { %3711 = vmatmul.mubr.msk.f32.vlgmr.msra.gmra.mrb[0].mxu0 %vm93_vm0, %v72_v33  ;;  %v3982_v41 = vunpack.i.h.bf16 %v3980_v39  ;;  %v3981_v42 = vunpack.i.l.bf16 %v3980_v39 }
  0xa6   :  { %3713 = vmatprep.mubr.msk.f32.mxu0 %vm93_vm0, %v73_v36  ;;  %3877 = vmatpush3.bf16.msra.mxu0 %v4573_v38 }
  0xa7   :  { %v413_v45 = vsel %vm250_vm1, %v3981_v42, %v3982_v41  ;;  %3878 = vmatprep.subr.bf16.mxu0 %v4495_v20 }
  0xa8   :  { %v4581_v46 = vpack.c.bf16 %v413_v45, %v412_v40 }
  0xa9   :  { %3714 = vmatmul.mubr.msk.f32.gmra.mrb[2].mxu0 %vm93_vm0, %v74_v43 }
  0xaa   :  { %3716 = vmatprep.mubr.msk.f32.mxu0 %vm93_vm0, %v75_v44  ;;  %3880 = vmatpush3.bf16.msra.mxu0 %v4581_v46 }
  0xab   :  { %3887 = vmatprep.subr.bf16.mxu0 %v4495_v20 }
  0xad   :  { %3717 = vmatmul.mubr.msk.f32.gmra.mrb[4].mxu0 %vm93_vm0, %v76_v47 }
  0xae   :  { %3719 = vmatprep.mubr.msk.f32.mxu0 %vm93_vm0, %v77_v48 }
  0xb1   :  { %3720 = vmatmul.mubr.msk.f32.gmra.mrb[6].mxu0 %vm93_vm0, %v78_v49  ;;  %vm731_vm0 = vcmask 1046534  }
  0xb2   :  { %3750 = vmatprep.mubr.msk.f32.mxu0 %vm4496_vm2, %v4497_v50 }
  0xb5   :  { %3751 = vmatmul.mubr.f32.vlgmr.msra.gmra.mrb[8].mxu0 %v4497_v50 }
  0xb6   :  { %3889 = vmatpush3.bf16.msra.mxu0 %v4573_v38  ;;  %3772 = vmatprep.mubr.msk.f32.mxu0 %vm4496_vm2, %v4497_v50 }
  0xb7   :  { %3890 = vmatprep.subr.bf16.mxu0 %v4495_v20 }
  0xba   :  { %3892 = vmatpush3.bf16.msra.mxu0 %v4581_v46 }
  0xbb   :  { %3899 = vmatprep.subr.bf16.mxu0 %v4495_v20 }
 0x178   :  { %v3712_v52 = vpop.f32.mrb[0].mxu0 }
 0x179   :  { %v190_v53 = vadd.f32 %v3712_v52, %v3597_v51  ;;  %v184_v54 = vpop.f32.mrb[1].mxu0 }
 0x17a   :  { %v185_v55 = vadd.f32 %v3597_v51, %v184_v54 }
 0x17b   :  { %v232_v56 = vmul.f32 0.2, %v190_v53  ;;  %vm224_vm3 = vcmp.ge.f32.partialorder %v190_v53, 0.0 }
 0x17c   :  { %v3715_v57 = vpop.f32.mrb[2].mxu0  ;;  %vm223_vm4 = vcmp.ge.f32.partialorder %v185_v55, 0.0  ;;  %v231_v58 = vmul.f32 0.2, %v185_v55 }
 0x17d   :  { %v200_v59 = vadd.f32 %v3715_v57, %v3597_v51  ;;  %v194_v60 = vpop.f32.mrb[3].mxu0  ;;  %v240_v1 = vsel %vm224_vm3, %v190_v53, %v232_v56  ;;  %vm734_vm3 = vcmask 1047559  }
 0x17e   :  { %v195_v61 = vadd.f32 %v3597_v51, %v194_v60  ;;  %v239_v62 = vsel %vm223_vm4, %v185_v55, %v231_v58  ;;  %vm3083_vm4 = vcmask 523264  }
 0x17f   :  { %v234_v63 = vmul.f32 0.2, %v200_v59  ;;  %3730 = vmatprep.mubr.msk.f32.mxu1 %vm250_vm1, %v239_v62  ;;  %vm226_vm5 = vcmp.ge.f32.partialorder %v200_v59, 0.0 }
 0x180   :  { %vm225_vm6 = vcmp.ge.f32.partialorder %v195_v61, 0.0  ;;  %v233_v3 = vmul.f32 0.2, %v195_v61  ;;  %v3718_v5 = vpop.f32.mrb[4].mxu0  ;;  %3731 = vmatmul.mubr.msk.f32.vlgmr.msra.gmra.mrb[0].mxu1 %vm250_vm1, %v240_v1 }
 0x181   :  { %v210_v6 = vadd.f32 %v3718_v5, %v3597_v51  ;;  %3883 = vmatpush3.bf16.msra.mxu1 %v4573_v38  ;;  %v204_v7 = vpop.f32.mrb[5].mxu0  ;;  %v242_v11 = vsel %vm226_vm5, %v200_v59, %v234_v63 }
 0x182   :  { %v205_v8 = vadd.f32 %v3597_v51, %v204_v7  ;;  %v241_v9 = vsel %vm225_vm6, %v195_v61, %v233_v3  ;;  %3884 = vmatprep.subr.bf16.mxu1 %v4495_v20  ;;  %vm3272_vm6 = vcmask 1048320  }
 0x183   :  { %v236_v10 = vmul.f32 0.2, %v210_v6  ;;  %3733 = vmatprep.mubr.msk.f32.mxu1 %vm250_vm1, %v241_v9  ;;  %vm228_vm7 = vcmp.ge.f32.partialorder %v210_v6, 0.0 }
 0x184   :  { %vm227_vm8 = vcmp.ge.f32.partialorder %v205_v8, 0.0  ;;  %v235_v12 = vmul.f32 0.2, %v205_v8  ;;  %v3721_v13 = vpop.f32.mrb[6].mxu0  ;;  %3734 = vmatmul.mubr.msk.f32.gmra.mrb[2].mxu1 %vm250_vm1, %v242_v11 }
 0x185   :  { %v220_v14 = vadd.f32 %v3721_v13, %v3597_v51  ;;  %3886 = vmatpush3.bf16.msra.mxu1 %v4581_v46  ;;  %v214_v15 = vpop.f32.mrb[7].mxu0  ;;  %v244_v21 = vsel %vm228_vm7, %v210_v6, %v236_v10 }
 0x186   :  { %v215_v16 = vadd.f32 %v3597_v51, %v214_v15  ;;  %v243_v17 = vsel %vm227_vm8, %v205_v8, %v235_v12  ;;  %3893 = vmatprep.subr.bf16.mxu1 %v4495_v20 }
 0x187   :  { %v238_v19 = vmul.f32 0.2, %v220_v14  ;;  %3736 = vmatprep.mubr.msk.f32.mxu1 %vm250_vm1, %v243_v17  ;;  %vm230_vm9 = vcmp.ge.f32.partialorder %v220_v14, 0.0 }
 0x188   :  { %vm229_vm10 = vcmp.ge.f32.partialorder %v215_v16, 0.0  ;;  %v237_v22 = vmul.f32 0.2, %v215_v16  ;;  %3737 = vmatmul.mubr.msk.f32.gmra.mrb[4].mxu1 %vm250_vm1, %v244_v21  ;;  %v487_v23 = vpop.f32.mrb[8].mxu0 }
 0x189   :  { %v4619_v24 = vadd.f32 %v4613_v18, %v487_v23  ;;  %v3752_v25 = vpop.f32.mrb[9].mxu0  ;;  %v246_v27 = vsel %vm230_vm9, %v220_v14, %v238_v19 }
 0x18a   :  { %v245_v26 = vsel %vm229_vm10, %v215_v16, %v237_v22 }
 0x18b   :  { %3739 = vmatprep.mubr.msk.f32.mxu1 %vm250_vm1, %v245_v26  ;;  %563 = vrot.lane.b32.xlu0 %v4619_v24, %s4498_s24  ;;  %v493_v28 = vrot.slane %v4619_v24, 2  ;;  %v492_v29 = vrot.slane %v4619_v24, 1  ;;  %v494_v30 = vrot.slane %v4619_v24, 3  ;;  %v495_v31 = vrot.slane %v4619_v24, 4 }
 0x18c   :  { %3740 = vmatmul.mubr.msk.f32.gmra.mrb[6].mxu1 %vm250_vm1, %v246_v27  ;;  %v496_v32 = vrot.slane %v4619_v24, 5  ;;  %v497_v33 = vrot.slane %v4619_v24, 6  ;;  %v498_v34 = vrot.slane %v4619_v24, 7 }
 0x18d   :  { %567 = vrot.lane.b32.xlu1 %v493_v28, %s4498_s24  ;;  %3761 = vmatprep.mubr.msk.f32.mxu1 %vm4496_vm2, %v4497_v50 }
 0x18f   :  { %565 = vrot.lane.b32.xlu0 %v492_v29, %s4498_s24 }
 0x191   :  { %569 = vrot.lane.b32.xlu1 %v494_v30, %s4498_s24 }
 0x193   :  { %571 = vrot.lane.b32.xlu0 %v495_v31, %s4498_s24 }
 0x195   :  { %573 = vrot.lane.b32.xlu1 %v496_v32, %s4498_s24 }
 0x197   :  { %575 = vrot.lane.b32.xlu0 %v497_v33, %s4498_s24 }
 0x199   :  { %577 = vrot.lane.b32.xlu1 %v498_v34, %s4498_s24 }
 0x253   :  { %v3732_v36 = vpop.f32.mrb[0].mxu1 }
 0x254   :  { %v4641_v37 = vadd.f32 %v3732_v36, %v248_v35  ;;  %v341_v39 = vpop.f32.mrb[1].mxu1 }
 0x255   :  { %v4643_v40 = vadd.f32 %v341_v39, %v248_v35 }
 0x256   :  { %v508_v41 = vadd.f32 %v492_v29, %v4641_v37 }
 0x257   :  { %v3735_v42 = vpop.f32.mrb[2].mxu1  ;;  %v507_v43 = vadd.f32 %v4619_v24, %v4643_v40 }
 0x258   :  { %v4648_v44 = vadd.f32 %v3735_v42, %v248_v35  ;;  %v351_v45 = vpop.f32.mrb[3].mxu1  ;;  %v516_v47 = vsub.f32 0.0, %v508_v41 }
 0x259   :  { %v4650_v48 = vadd.f32 %v351_v45, %v248_v35  ;;  %v515_v49 = vsub.f32 0.0, %v507_v43 }
 0x25a   :  { %v510_v51 = vadd.f32 %v494_v30, %v4648_v44  ;;  %v525_v52 = vmul.f32 1.442695, %v516_v47 }
 0x25b   :  { %v3738_v53 = vpop.f32.mrb[4].mxu1  ;;  %v523_v54 = vmul.f32 1.442695, %v515_v49  ;;  %v509_v55 = vadd.f32 %v493_v28, %v4650_v48  ;;  %v564_v28 = vpop.permute.xlu0 %563 }
 0x25c   :  { %v4654_v56 = vadd.f32 %v3738_v53, %v248_v35  ;;  %v361_v57 = vpop.f32.mrb[5].mxu1  ;;  %v518_v58 = vsub.f32 0.0, %v510_v51  ;;  %4025 = vpow2.f32 %v525_v52 }
 0x25d   :  { %v4656_v59 = vadd.f32 %v361_v57, %v248_v35  ;;  %4027 = vpow2.f32 %v523_v54  ;;  %v517_v60 = vsub.f32 0.0, %v509_v55 }
 0x25e   :  { %v529_v61 = vmul.f32 1.442695, %v518_v58  ;;  %v512_v62 = vadd.f32 %v496_v32, %v4654_v56 }
 0x25f   :  { %v3741_v63 = vpop.f32.mrb[6].mxu1  ;;  %v527_v1 = vmul.f32 1.442695, %v517_v60  ;;  %v511_v3 = vadd.f32 %v495_v31, %v4656_v59  ;;  %v566_v36 = vpop.permute.xlu0 %565 }
 0x260   :  { %v4660_v5 = vadd.f32 %v3741_v63, %v248_v35  ;;  %v371_v6 = vpop.f32.mrb[7].mxu1  ;;  %4029 = vpow2.f32 %v529_v61  ;;  %v520_v7 = vsub.f32 0.0, %v512_v62 }
 0x261   :  { %v4662_v8 = vadd.f32 %v371_v6, %v248_v35  ;;  %4031 = vpow2.f32 %v527_v1  ;;  %v519_v9 = vsub.f32 0.0, %v511_v3 }
 0x262   :  { %v533_v10 = vmul.f32 1.442695, %v520_v7  ;;  %v514_v11 = vadd.f32 %v498_v34, %v4660_v5 }
 0x263   :  { %v531_v12 = vmul.f32 1.442695, %v519_v9  ;;  %v513_v13 = vadd.f32 %v497_v33, %v4662_v8  ;;  %v568_v33 = vpop.permute.xlu1 %567  ;;  %v572_v57 = vpop.permute.xlu0 %571 }
 0x264   :  { %4033 = vpow2.f32 %v533_v10  ;;  %v522_v14 = vsub.f32 0.0, %v514_v11 }
 0x265   :  { %4035 = vpow2.f32 %v531_v12  ;;  %v521_v15 = vsub.f32 0.0, %v513_v13 }
 0x266   :  { %v4026_v16 = vpop.eup %4025  ;;  %v537_v17 = vmul.f32 1.442695, %v522_v14 }
 0x267   :  { %v4028_v19 = vpop.eup %4027  ;;  %v540_v21 = vadd.f32 1.0, %v4026_v16  ;;  %v535_v22 = vmul.f32 1.442695, %v521_v15  ;;  %v570_v49 = vpop.permute.xlu1 %569 }
 0x268   :  { %v539_v23 = vadd.f32 1.0, %v4028_v19  ;;  %4037 = vpow2.f32 %v537_v17  ;;  %v576_v3 = vpop.permute.xlu0 %575 }
 0x269   :  { %4039 = vrcp.f32 %v540_v21 }
 0x26a   :  { %v4030_v24 = vpop.eup %4029  ;;  %4041 = vrcp.f32 %v539_v23 }
 0x26b   :  { %v4032_v25 = vpop.eup %4031  ;;  %v542_v26 = vadd.f32 1.0, %v4030_v24  ;;  %4043 = vpow2.f32 %v535_v22  ;;  %v574_v60 = vpop.permute.xlu1 %573 }
 0x26c   :  { %v541_v27 = vadd.f32 1.0, %v4032_v25 }
 0x26d   :  { %4045 = vrcp.f32 %v542_v26 }
 0x26e   :  { %v4034_v29 = vpop.eup %4033  ;;  %4047 = vrcp.f32 %v541_v27 }
 0x26f   :  { %v4036_v30 = vpop.eup %4035  ;;  %v544_v31 = vadd.f32 1.0, %v4034_v29  ;;  %v578_v6 = vpop.permute.xlu1 %577 }
 0x270   :  { %v543_v32 = vadd.f32 1.0, %v4036_v30 }
 0x272   :  { %v4038_v34 = vpop.eup %4037  ;;  %4049 = vrcp.f32 %v543_v32 }
 0x273   :  { %v4666_v35 = vpop.eup %4039  ;;  %4051 = vrcp.f32 %v544_v31  ;;  %v546_v39 = vadd.f32 1.0, %v4038_v34 }
 0x274   :  { %v4668_v41 = vpop.eup %4041  ;;  %v588_v42 = vmul.f32 %v4666_v35, %v566_v36 }
 0x275   :  { %v4044_v43 = vpop.eup %4043  ;;  %4053 = vrcp.f32 %v546_v39  ;;  %v587_v51 = vmul.f32 %v4668_v41, %v564_v28 }
 0x276   :  { %v545_v45 = vadd.f32 1.0, %v4044_v43  ;;  %605 = vrot.lane.b32.xlu0 %v588_v42, %s4498_s24  ;;  %v644_v42 = vsub.f32 1.0, %v4666_v35 }
 0x277   :  { %v4672_v47 = vpop.eup %4045 }
 0x278   :  { %v590_v52 = vmul.f32 %v4672_v47, %v570_v49  ;;  %4055 = vrcp.f32 %v545_v45  ;;  %v4676_v53 = vpop.eup %4047  ;;  %v646_v45 = vsub.f32 1.0, %v4672_v47 }
 0x279   :  { %v589_v55 = vmul.f32 %v4676_v53, %v568_v33 }
 0x27a   :  { %609 = vrot.lane.b32.xlu1 %v590_v52, %s4498_s24  ;;  %603 = vrot.lane.b32.xlu0 %v587_v51, %s4498_s24  ;;  %v643_v51 = vsub.f32 1.0, %v4668_v41 }
 0x27c   :  { %v4680_v54 = vpop.eup %4049 }
 0x27d   :  { %v4683_v58 = vpop.eup %4051  ;;  %v591_v61 = vmul.f32 %v4680_v54, %v572_v57 }
 0x27e   :  { %607 = vrot.lane.b32.xlu1 %v589_v55, %s4498_s24  ;;  %v592_v62 = vmul.f32 %v4683_v58, %v574_v60  ;;  %v692_v55 = vmul.f32 0.0, %v4666_v35 }
 0x27f   :  { %611 = vrot.lane.b32.xlu0 %v591_v61, %s4498_s24  ;;  %v4689_v63 = vpop.eup %4053  ;;  %v645_v61 = vsub.f32 1.0, %v4676_v53 }
 0x280   :  { %v594_v9 = vmul.f32 %v4689_v63, %v578_v6  ;;  %v691_v6 = vmul.f32 0.0, %v4668_v41 }
 0x282   :  { %v4691_v1 = vpop.eup %4055  ;;  %613 = vrot.lane.b32.xlu1 %v592_v62, %s4498_s24 }
 0x283   :  { %v593_v7 = vmul.f32 %v4691_v1, %v576_v3  ;;  %v694_v3 = vmul.f32 0.0, %v4672_v47  ;;  %v648_v47 = vsub.f32 1.0, %v4683_v58 }
 0x285   :  { %615 = vrot.lane.b32.xlu0 %v593_v7, %s4498_s24 }
 0x286   :  { %617 = vrot.lane.b32.xlu1 %v594_v9, %s4498_s24  ;;  %v647_v9 = vsub.f32 1.0, %v4680_v54 }
 0x2e8   :  { %v606_v10 = vpop.permute.xlu0 %605 }
 0x2e9   :  { %v628_v11 = vadd.f32 %v606_v10, %v4641_v37  ;;  %v693_v10 = vmul.f32 0.0, %v4676_v53  ;;  %v696_v53 = vmul.f32 0.0, %v4683_v58 }
 0x2eb   :  { %4057 = vtanh.f32 %v628_v11 }
 0x2ec   :  { %v610_v12 = vpop.permute.xlu1 %609  ;;  %v604_v13 = vpop.permute.xlu0 %603 }
 0x2ed   :  { %v630_v14 = vadd.f32 %v610_v12, %v4648_v44  ;;  %v627_v15 = vadd.f32 %v604_v13, %v4643_v40 }
 0x2ef   :  { %4059 = vtanh.f32 %v630_v14  ;;  %v695_v14 = vmul.f32 0.0, %v4680_v54 }
 0x2f0   :  { %4061 = vtanh.f32 %v627_v15  ;;  %v608_v16 = vpop.permute.xlu1 %607 }
 0x2f1   :  { %v629_v17 = vadd.f32 %v608_v16, %v4650_v48  ;;  %v612_v19 = vpop.permute.xlu0 %611 }
 0x2f2   :  { %v631_v21 = vadd.f32 %v612_v19, %v4656_v59 }
 0x2f3   :  { %4063 = vtanh.f32 %v629_v17 }
 0x2f4   :  { %4065 = vtanh.f32 %v631_v21  ;;  %v614_v22 = vpop.permute.xlu1 %613 }
 0x2f5   :  { %v4058_v23 = vpop.eup %4057  ;;  %v632_v24 = vadd.f32 %v614_v22, %v4654_v56 }
 0x2f6   :  { %661 = vrot.lane.b32.xlu0 %v4058_v23, %s4494_s2  ;;  %v649_v23 = vsub.f32 1.0, %v4691_v1 }
 0x2f7   :  { %4067 = vtanh.f32 %v632_v24  ;;  %v616_v25 = vpop.permute.xlu0 %615 }
 0x2f8   :  { %v633_v26 = vadd.f32 %v616_v25, %v4662_v8  ;;  %v618_v27 = vpop.permute.xlu1 %617 }
 0x2f9   :  { %v4060_v28 = vpop.eup %4059  ;;  %v634_v29 = vadd.f32 %v618_v27, %v4660_v5 }
 0x2fa   :  { %v4062_v30 = vpop.eup %4061  ;;  %4069 = vtanh.f32 %v633_v26  ;;  %665 = vrot.lane.b32.xlu1 %v4060_v28, %s4494_s2  ;;  %v650_v28 = vsub.f32 1.0, %v4689_v63 }
 0x2fb   :  { %4071 = vtanh.f32 %v634_v29  ;;  %659 = vrot.lane.b32.xlu0 %v4062_v30, %s4494_s2  ;;  %v697_v29 = vmul.f32 0.0, %v4691_v1 }
 0x2fd   :  { %v4064_v31 = vpop.eup %4063 }
 0x2fe   :  { %v4066_v32 = vpop.eup %4065  ;;  %663 = vrot.lane.b32.xlu1 %v4064_v31, %s4494_s2 }
 0x2ff   :  { %667 = vrot.lane.b32.xlu0 %v4066_v32, %s4494_s2 }
 0x301   :  { %v4068_v33 = vpop.eup %4067 }
 0x302   :  { %669 = vrot.lane.b32.xlu1 %v4068_v33, %s4494_s2 }
 0x304   :  { %v4070_v34 = vpop.eup %4069 }
 0x305   :  { %v4072_v36 = vpop.eup %4071  ;;  %671 = vrot.lane.b32.xlu0 %v4070_v34, %s4494_s2  ;;  %v698_v34 = vmul.f32 0.0, %v4689_v63 }
 0x306   :  { %673 = vrot.lane.b32.xlu1 %v4072_v36, %s4494_s2 }
 0x368   :  { %v662_v39 = vpop.permute.xlu0 %661 }
 0x369   :  { %v684_v43 = vmul.f32 %v662_v39, %v644_v42 }
 0x36b   :  { %v4719_v62 = vadd.f32 %v692_v55, %v684_v43 }
 0x36c   :  { %v666_v49 = vpop.permute.xlu1 %665 }
 0x36d   :  { %v660_v52 = vpop.permute.xlu0 %659  ;;  %v686_v57 = vmul.f32 %v666_v49, %v646_v45  ;;  %v715_v41 = vrot.slane %v4719_v62, 7 }
 0x36e   :  { %v683_v60 = vmul.f32 %v660_v52, %v643_v51 }
 0x36f   :  { %v4725_v13 = vadd.f32 %v694_v3, %v686_v57 }
 0x370   :  { %v664_v7 = vpop.permute.xlu1 %663  ;;  %v4727_v35 = vadd.f32 %v691_v6, %v683_v60 }
 0x371   :  { %v685_v11 = vmul.f32 %v664_v7, %v645_v61  ;;  %v668_v12 = vpop.permute.xlu0 %667  ;;  %v721_v54 = vrot.slane %v4725_v13, 5 }
 0x372   :  { %v687_v15 = vmul.f32 %v668_v12, %v647_v9  ;;  %v717_v24 = vsel %vm716_vm11, %v715_v41, %v4727_v35 }
 0x373   :  { %v4730_v16 = vadd.f32 %v693_v10, %v685_v11 }
 0x374   :  { %v4734_v17 = vadd.f32 %v695_v14, %v687_v15  ;;  %v670_v19 = vpop.permute.xlu1 %669 }
 0x375   :  { %v718_v21 = vrot.slane %v4730_v16, 6  ;;  %v688_v22 = vmul.f32 %v670_v19, %v648_v47 }
 0x376   :  { %v724_v25 = vrot.slane %v4734_v17, 4 }
 0x377   :  { %v720_v26 = vsel %vm719_vm12, %v718_v21, %v717_v24  ;;  %v4746_v58 = vadd.f32 %v696_v53, %v688_v22  ;;  %v672_v27 = vpop.permute.xlu0 %671 }
 0x378   :  { %v689_v30 = vmul.f32 %v672_v27, %v649_v23  ;;  %v674_v31 = vpop.permute.xlu1 %673  ;;  %v723_v32 = vsel %vm722_vm13, %v721_v54, %v720_v26 }
 0x379   :  { %v727_v33 = vrot.slane %v4746_v58, 3  ;;  %v690_v36 = vmul.f32 %v674_v31, %v650_v28  ;;  %v726_v39 = vsel %vm725_vm14, %v724_v25, %v723_v32 }
 0x37a   :  { %v4754_v42 = vadd.f32 %v697_v29, %v689_v30 }
 0x37b   :  { %v4756_v43 = vadd.f32 %v698_v34, %v690_v36  ;;  %v729_v45 = vsel %vm728_vm15, %v727_v33, %v726_v39 }
 0x37c   :  { %v730_v1 = vrot.slane %v4754_v42, 2 }
 0x37d   :  { %v733_v49 = vrot.slane %v4756_v43, 1 }
 0x37e   :  { %v732_v51 = vsel %vm731_vm0, %v730_v1, %v729_v45 }
 0x37f   :  { %v735_v52 = vsel %vm734_vm3, %v733_v49, %v732_v51 }
 0x380   :  { %736 = vrot.lane.b32.xlu0 %v735_v52, %s4494_s2 }
 0x3f2   :  { %v737_v63 = vpop.permute.xlu0 %736 }
 0x3f3   :  { %3762 = vmatmul.mubr.msk.f32.vlgmr.msra.gmra.mrb[8].mxu1 %vm250_vm1, %v737_v63 }
 0x3f4   :  { %3895 = vmatpush3.bf16.msra.mxu1 %v4573_v38  ;;  %3783 = vmatprep.mubr.msk.f32.mxu1 %vm4496_vm2, %v4497_v50 }
 0x3f5   :  { %3896 = vmatprep.subr.bf16.mxu1 %v4495_v20 }
 0x3f8   :  { %3898 = vmatpush3.bf16.msra.mxu1 %v4581_v46 }
 0x3f9   :  { %3905 = vmatprep.subr.bf16.mxu1 %v4495_v20 }
 0x4c6   :  { %v806_v55 = vpop.f32.mrb[8].mxu1 }
 0x4c7   :  { %v807_v57 = vadd.f32 %v4613_v18, %v806_v55  ;;  %v3763_v60 = vpop.f32.mrb[9].mxu1 }
 0x4c9   :  { %884 = vrot.lane.b32.xlu1 %v807_v57, %s4498_s24  ;;  %v812_v61 = vrot.slane %v807_v57, 1  ;;  %v811_v3 = vrot.slane %v807_v57, 7  ;;  %v813_v6 = vrot.slane %v807_v57, 2  ;;  %v814_v7 = vrot.slane %v807_v57, 3 }
 0x4ca   :  { %v815_v9 = vrot.slane %v807_v57, 4  ;;  %v816_v10 = vrot.slane %v807_v57, 5  ;;  %v817_v11 = vrot.slane %v807_v57, 6  ;;  %v827_v12 = vadd.f32 %v807_v57, %v4641_v37 }
 0x4cb   :  { %886 = vrot.lane.b32.xlu0 %v812_v61, %s4498_s24  ;;  %v828_v14 = vadd.f32 %v812_v61, %v4650_v48  ;;  %v826_v15 = vadd.f32 %v811_v3, %v4643_v40  ;;  %v829_v19 = vadd.f32 %v813_v6, %v4648_v44  ;;  %v830_v22 = vadd.f32 %v814_v7, %v4656_v59 }
 0x4cc   :  { %v835_v47 = vsub.f32 0.0, %v827_v12  ;;  %v831_v25 = vadd.f32 %v815_v9, %v4654_v56  ;;  %v832_v28 = vadd.f32 %v816_v10, %v4662_v8  ;;  %v833_v31 = vadd.f32 %v817_v11, %v4660_v5 }
 0x4cd   :  { %882 = vrot.lane.b32.xlu1 %v811_v3, %s4498_s24  ;;  %v836_v53 = vsub.f32 0.0, %v828_v14  ;;  %v834_v21 = vsub.f32 0.0, %v826_v15  ;;  %v837_v24 = vsub.f32 0.0, %v829_v19  ;;  %v838_v27 = vsub.f32 0.0, %v830_v22 }
 0x4ce   :  { %v844_v23 = vmul.f32 1.442695, %v835_v47  ;;  %v839_v30 = vsub.f32 0.0, %v831_v25  ;;  %v840_v33 = vsub.f32 0.0, %v832_v28  ;;  %v841_v36 = vsub.f32 0.0, %v833_v31 }
 0x4cf   :  { %888 = vrot.lane.b32.xlu0 %v813_v6, %s4498_s24  ;;  %v846_v54 = vmul.f32 1.442695, %v836_v53  ;;  %v842_v26 = vmul.f32 1.442695, %v834_v21  ;;  %v848_v29 = vmul.f32 1.442695, %v837_v24 }
 0x4d0   :  { %4073 = vpow2.f32 %v844_v23  ;;  %v850_v32 = vmul.f32 1.442695, %v838_v27  ;;  %v852_v34 = vmul.f32 1.442695, %v839_v30  ;;  %v854_v39 = vmul.f32 1.442695, %v840_v33 }
 0x4d1   :  { %890 = vrot.lane.b32.xlu1 %v814_v7, %s4498_s24  ;;  %4075 = vpow2.f32 %v846_v54  ;;  %v856_v1 = vmul.f32 1.442695, %v841_v36 }
 0x4d2   :  { %4077 = vpow2.f32 %v842_v26 }
 0x4d3   :  { %892 = vrot.lane.b32.xlu0 %v815_v9, %s4498_s24  ;;  %4079 = vpow2.f32 %v848_v29 }
 0x4d4   :  { %4081 = vpow2.f32 %v850_v32 }
 0x4d5   :  { %894 = vrot.lane.b32.xlu1 %v816_v10, %s4498_s24  ;;  %4083 = vpow2.f32 %v852_v34 }
 0x4d6   :  { %4085 = vpow2.f32 %v854_v39 }
 0x4d7   :  { %896 = vrot.lane.b32.xlu0 %v817_v11, %s4498_s24  ;;  %4087 = vpow2.f32 %v856_v1 }
 0x4da   :  { %v4074_v45 = vpop.eup %4073 }
 0x4db   :  { %v4076_v49 = vpop.eup %4075  ;;  %v859_v51 = vadd.f32 1.0, %v4074_v45 }
 0x4dc   :  { %v4078_v52 = vpop.eup %4077  ;;  %v860_v63 = vadd.f32 1.0, %v4076_v49 }
 0x4dd   :  { %v4080_v55 = vpop.eup %4079  ;;  %v858_v57 = vadd.f32 1.0, %v4078_v52  ;;  %4089 = vrcp.f32 %v859_v51 }
 0x4de   :  { %v4082_v60 = vpop.eup %4081  ;;  %4091 = vrcp.f32 %v860_v63  ;;  %v861_v61 = vadd.f32 1.0, %v4080_v55 }
 0x4df   :  { %v4084_v3 = vpop.eup %4083  ;;  %4093 = vrcp.f32 %v858_v57  ;;  %v862_v6 = vadd.f32 1.0, %v4082_v60 }
 0x4e0   :  { %v4086_v7 = vpop.eup %4085  ;;  %4095 = vrcp.f32 %v861_v61  ;;  %v863_v9 = vadd.f32 1.0, %v4084_v3 }
 0x4e1   :  { %v4088_v10 = vpop.eup %4087  ;;  %4097 = vrcp.f32 %v862_v6  ;;  %v864_v11 = vadd.f32 1.0, %v4086_v7 }
 0x4e2   :  { %4099 = vrcp.f32 %v863_v9  ;;  %v865_v14 = vadd.f32 1.0, %v4088_v10 }
 0x4e3   :  { %4101 = vrcp.f32 %v864_v11 }
 0x4e4   :  { %4103 = vrcp.f32 %v865_v14 }
 0x4e7   :  { %v4788_v12 = vpop.eup %4089 }
 0x4e8   :  { %v4791_v53 = vpop.eup %4091 }
 0x4e9   :  { %v4795_v22 = vpop.eup %4093 }
 0x4ea   :  { %v4799_v24 = vpop.eup %4095 }
 0x4eb   :  { %v4803_v27 = vpop.eup %4097 }
 0x4ec   :  { %v4807_v30 = vpop.eup %4099 }
 0x4ed   :  { %v4811_v33 = vpop.eup %4101 }
 0x4ee   :  { %v4815_v39 = vpop.eup %4103 }
 0x53b   :  { %v885_v15 = vpop.permute.xlu1 %884 }
 0x53c   :  { %v907_v47 = vmul.f32 %v4788_v12, %v885_v15 }
 0x53d   :  { %v887_v19 = vpop.permute.xlu0 %886 }
 0x53e   :  { %v908_v21 = vmul.f32 %v4791_v53, %v887_v19  ;;  %924 = vrot.lane.b32.xlu1 %v907_v47, %s4498_s24 }
 0x53f   :  { %v883_v23 = vpop.permute.xlu1 %882 }
 0x540   :  { %v906_v54 = vmul.f32 %v4795_v22, %v883_v23  ;;  %926 = vrot.lane.b32.xlu0 %v908_v21, %s4498_s24 }
 0x541   :  { %v889_v25 = vpop.permute.xlu0 %888 }
 0x542   :  { %v909_v26 = vmul.f32 %v4799_v24, %v889_v25  ;;  %922 = vrot.lane.b32.xlu1 %v906_v54, %s4498_s24 }
 0x543   :  { %v891_v28 = vpop.permute.xlu1 %890 }
 0x544   :  { %v910_v29 = vmul.f32 %v4803_v27, %v891_v28  ;;  %928 = vrot.lane.b32.xlu0 %v909_v26, %s4498_s24 }
 0x545   :  { %v893_v31 = vpop.permute.xlu0 %892 }
 0x546   :  { %v911_v32 = vmul.f32 %v4807_v30, %v893_v31  ;;  %930 = vrot.lane.b32.xlu1 %v910_v29, %s4498_s24  ;;  %v964_v31 = vsub.f32 1.0, %v4791_v53 }
 0x547   :  { %v895_v34 = vpop.permute.xlu1 %894 }
 0x548   :  { %v912_v36 = vmul.f32 %v4811_v33, %v895_v34  ;;  %932 = vrot.lane.b32.xlu0 %v911_v32, %s4498_s24  ;;  %v1011_v32 = vrot.slane %v4730_v16, 7  ;;  %v1013_v16 = vrot.slane %v4734_v17, 7 }
 0x549   :  { %v897_v45 = vpop.permute.xlu0 %896 }
 0x54a   :  { %v913_v1 = vmul.f32 %v4815_v39, %v897_v45  ;;  %934 = vrot.lane.b32.xlu1 %v912_v36, %s4498_s24  ;;  %v1010_v36 = vrot.slane %v4727_v35, 7  ;;  %v963_v45 = vsub.f32 1.0, %v4788_v12  ;;  %v1026_v35 = vmul.f32 %v4788_v12, %v715_v41 }
 0x54c   :  { %936 = vrot.lane.b32.xlu0 %v913_v1, %s4498_s24 }
 0x5b0   :  { %v925_v49 = vpop.permute.xlu1 %924 }
 0x5b1   :  { %v947_v51 = vadd.f32 %v925_v49, %v4641_v37  ;;  %v962_v49 = vsub.f32 1.0, %v4795_v22 }
 0x5b2   :  { %v927_v52 = vpop.permute.xlu0 %926 }
 0x5b3   :  { %4105 = vtanh.f32 %v947_v51  ;;  %v948_v63 = vadd.f32 %v927_v52, %v4650_v48  ;;  %v1012_v51 = vrot.slane %v4725_v13, 7  ;;  %v1027_v52 = vmul.f32 %v4791_v53, %v1011_v32 }
 0x5b4   :  { %v923_v55 = vpop.permute.xlu1 %922  ;;  %v969_v32 = vsub.f32 1.0, %v4815_v39 }
 0x5b5   :  { %4107 = vtanh.f32 %v948_v63  ;;  %v946_v57 = vadd.f32 %v923_v55, %v4643_v40  ;;  %v1028_v13 = vmul.f32 %v4799_v24, %v1012_v51 }
 0x5b6   :  { %v929_v60 = vpop.permute.xlu0 %928 }
 0x5b7   :  { %4109 = vtanh.f32 %v946_v57  ;;  %v949_v61 = vadd.f32 %v929_v60, %v4648_v44  ;;  %v1025_v57 = vmul.f32 %v4795_v22, %v1010_v36  ;;  %v1014_v22 = vrot.slane %v4746_v58, 7 }
 0x5b8   :  { %v931_v3 = vpop.permute.xlu1 %930 }
 0x5b9   :  { %4111 = vtanh.f32 %v949_v61  ;;  %v950_v6 = vadd.f32 %v931_v3, %v4656_v59  ;;  %v965_v61 = vsub.f32 1.0, %v4799_v24 }
 0x5ba   :  { %v933_v7 = vpop.permute.xlu0 %932 }
 0x5bb   :  { %4113 = vtanh.f32 %v950_v6  ;;  %v951_v9 = vadd.f32 %v933_v7, %v4654_v56 }
 0x5bc   :  { %v935_v10 = vpop.permute.xlu1 %934 }
 0x5bd   :  { %v4106_v11 = vpop.eup %4105  ;;  %4115 = vtanh.f32 %v951_v9  ;;  %v952_v14 = vadd.f32 %v935_v10, %v4662_v8  ;;  %v966_v9 = vsub.f32 1.0, %v4803_v27  ;;  %v1029_v10 = vmul.f32 %v4803_v27, %v1013_v16 }
 0x5be   :  { %v937_v15 = vpop.permute.xlu0 %936  ;;  %980 = vrot.lane.b32.xlu1 %v4106_v11, %s4494_s2 }
 0x5bf   :  { %v4108_v47 = vpop.eup %4107  ;;  %4117 = vtanh.f32 %v952_v14  ;;  %v953_v19 = vadd.f32 %v937_v15, %v4660_v5  ;;  %v1015_v14 = vrot.slane %v4754_v42, 7  ;;  %v1016_v15 = vrot.slane %v4756_v43, 7 }
 0x5c0   :  { %982 = vrot.lane.b32.xlu0 %v4108_v47, %s4494_s2  ;;  %v967_v47 = vsub.f32 1.0, %v4807_v30  ;;  %v1030_v43 = vmul.f32 %v4807_v30, %v1014_v22 }
 0x5c1   :  { %v4110_v21 = vpop.eup %4109  ;;  %4119 = vtanh.f32 %v953_v19 }
 0x5c2   :  { %978 = vrot.lane.b32.xlu1 %v4110_v21, %s4494_s2 }
 0x5c3   :  { %v4112_v23 = vpop.eup %4111 }
 0x5c4   :  { %984 = vrot.lane.b32.xlu0 %v4112_v23, %s4494_s2  ;;  %v968_v23 = vsub.f32 1.0, %v4811_v33 }
 0x5c5   :  { %v4114_v54 = vpop.eup %4113 }
 0x5c6   :  { %986 = vrot.lane.b32.xlu1 %v4114_v54, %s4494_s2 }
 0x5c7   :  { %v4116_v25 = vpop.eup %4115 }
 0x5c8   :  { %988 = vrot.lane.b32.xlu0 %v4116_v25, %s4494_s2  ;;  %v1031_v25 = vmul.f32 %v4811_v33, %v1015_v14 }
 0x5c9   :  { %v4118_v26 = vpop.eup %4117 }
 0x5ca   :  { %990 = vrot.lane.b32.xlu1 %v4118_v26, %s4494_s2 }
 0x5cb   :  { %v4120_v28 = vpop.eup %4119 }
 0x5cc   :  { %992 = vrot.lane.b32.xlu0 %v4120_v28, %s4494_s2 }
 0x630   :  { %v981_v29 = vpop.permute.xlu1 %980 }
 0x631   :  { %v1003_v55 = vmul.f32 %v981_v29, %v963_v45 }
 0x632   :  { %v983_v34 = vpop.permute.xlu0 %982 }
 0x633   :  { %v1004_v1 = vmul.f32 %v983_v34, %v964_v31  ;;  %v4857_v17 = vadd.f32 %v1026_v35, %v1003_v55 }
 0x634   :  { %v979_v63 = vpop.permute.xlu1 %978 }
 0x635   :  { %v1002_v60 = vmul.f32 %v979_v63, %v962_v49  ;;  %v4849_v3 = vadd.f32 %v1027_v52, %v1004_v1  ;;  %v1032_v1 = vmul.f32 %v4815_v39, %v1016_v15 }
 0x636   :  { %v985_v6 = vpop.permute.xlu0 %984 }
 0x637   :  { %v4851_v7 = vadd.f32 %v1025_v57, %v1002_v60  ;;  %v1005_v53 = vmul.f32 %v985_v6, %v965_v61  ;;  %v1051_v24 = vrot.slane %v4849_v3, 7 }
 0x638   :  { %v987_v11 = vpop.permute.xlu1 %986 }
 0x639   :  { %v1049_v62 = vrot.slane %v4851_v7, 1  ;;  %v4860_v41 = vadd.f32 %v1028_v13, %v1005_v53  ;;  %v1006_v12 = vmul.f32 %v987_v11, %v966_v9 }
 0x63a   :  { %v989_v19 = vpop.permute.xlu0 %988 }
 0x63b   :  { %v1050_v58 = vsel %vm716_vm11, %v4857_v17, %v1049_v62  ;;  %v1053_v27 = vrot.slane %v4860_v41, 6  ;;  %v4869_v21 = vadd.f32 %v1029_v10, %v1006_v12  ;;  %v1007_v54 = vmul.f32 %v989_v19, %v967_v47 }
 0x63c   :  { %v1052_v42 = vsel %vm719_vm12, %v1051_v24, %v1050_v58  ;;  %v991_v26 = vpop.permute.xlu1 %990 }
 0x63d   :  { %v1054_v28 = vsel %vm722_vm13, %v1053_v27, %v1052_v42  ;;  %v1055_v29 = vrot.slane %v4869_v21, 5  ;;  %v1008_v31 = vmul.f32 %v991_v26, %v968_v23  ;;  %v4880_v34 = vadd.f32 %v1030_v43, %v1007_v54 }
 0x63e   :  { %v993_v36 = vpop.permute.xlu0 %992 }
 0x63f   :  { %v4882_v45 = vadd.f32 %v1031_v25, %v1008_v31  ;;  %v1009_v49 = vmul.f32 %v993_v36, %v969_v32  ;;  %v1056_v30 = vsel %vm725_vm14, %v1055_v29, %v1054_v28  ;;  %v1057_v33 = vrot.slane %v4880_v34, 4 }
 0x641   :  { %v1059_v51 = vrot.slane %v4882_v45, 3  ;;  %v4888_v52 = vadd.f32 %v1032_v1, %v1009_v49  ;;  %v1058_v63 = vsel %vm728_vm15, %v1057_v33, %v1056_v30 }
 0x643   :  { %v1061_v55 = vrot.slane %v4888_v52, 2  ;;  %v1060_v57 = vsel %vm731_vm0, %v1059_v51, %v1058_v63 }
 0x645   :  { %v1062_v60 = vsel %vm734_vm3, %v1061_v55, %v1060_v57 }
 0x646   :  { %1063 = vrot.lane.b32.xlu1 %v1062_v60, %s4494_s2 }
 0x6b8   :  { %v1064_v39 = vpop.permute.xlu1 %1063 }
 0x6b9   :  { %3773 = vmatmul.mubr.msk.f32.vlgmr.msra.gmra.mrb[10].mxu0 %vm250_vm1, %v1064_v39 }
 0x6ba   :  { %3901 = vmatpush3.bf16.msra.mxu0 %v4573_v38  ;;  %3794 = vmatprep.mubr.msk.f32.mxu0 %vm4496_vm2, %v4497_v50 }
 0x6bb   :  { %3902 = vmatprep.subr.bf16.mxu0 %v4495_v20 }
 0x6be   :  { %3904 = vmatpush3.bf16.msra.mxu0 %v4581_v46 }
 0x6bf   :  { %3911 = vmatprep.subr.bf16.mxu0 %v4495_v20 }
 0x78c   :  { %v1133_v61 = vpop.f32.mrb[10].mxu0 }
 0x78d   :  { %v1134_v16 = vadd.f32 %v4613_v18, %v1133_v61  ;;  %v3774_v35 = vpop.f32.mrb[11].mxu0 }
 0x78f   :  { %1213 = vrot.lane.b32.xlu1 %v1134_v16, %s4498_s24  ;;  %v1138_v6 = vrot.slane %v1134_v16, 6  ;;  %v1139_v13 = vrot.slane %v1134_v16, 7  ;;  %v1140_v53 = vrot.slane %v1134_v16, 1  ;;  %v1142_v9 = vrot.slane %v1134_v16, 3 }
 0x790   :  { %v1141_v22 = vrot.slane %v1134_v16, 2  ;;  %v1144_v10 = vrot.slane %v1134_v16, 5  ;;  %v1143_v18 = vrot.slane %v1134_v16, 4  ;;  %v1155_v11 = vadd.f32 %v1134_v16, %v4650_v48 }
 0x791   :  { %1209 = vrot.lane.b32.xlu0 %v1138_v6, %s4498_s24  ;;  %v1153_v62 = vadd.f32 %v1138_v6, %v4643_v40  ;;  %v1154_v12 = vadd.f32 %v1139_v13, %v4641_v37  ;;  %v1156_v47 = vadd.f32 %v1140_v53, %v4648_v44  ;;  %v1158_v58 = vadd.f32 %v1142_v9, %v4654_v56 }
 0x792   :  { %v1163_v14 = vsub.f32 0.0, %v1155_v11  ;;  %v1157_v43 = vadd.f32 %v1141_v22, %v4656_v59  ;;  %v1160_v26 = vadd.f32 %v1144_v10, %v4660_v5  ;;  %v1159_v31 = vadd.f32 %v1143_v18, %v4662_v8 }
 0x793   :  { %1211 = vrot.lane.b32.xlu1 %v1139_v13, %s4498_s24  ;;  %v1161_v15 = vsub.f32 0.0, %v1153_v62  ;;  %v1162_v19 = vsub.f32 0.0, %v1154_v12  ;;  %v1164_v42 = vsub.f32 0.0, %v1156_v47  ;;  %v1166_v25 = vsub.f32 0.0, %v1158_v58 }
 0x794   :  { %v1173_v27 = vmul.f32 1.442695, %v1163_v14  ;;  %v1165_v29 = vsub.f32 0.0, %v1157_v43  ;;  %v1168_v36 = vsub.f32 0.0, %v1160_v26  ;;  %v1167_v49 = vsub.f32 0.0, %v1159_v31 }
 0x795   :  { %1215 = vrot.lane.b32.xlu0 %v1140_v53, %s4498_s24  ;;  %v1169_v23 = vmul.f32 1.442695, %v1161_v15  ;;  %v1171_v54 = vmul.f32 1.442695, %v1162_v19  ;;  %v1175_v28 = vmul.f32 1.442695, %v1164_v42 }
 0x796   :  { %4121 = vpow2.f32 %v1173_v27  ;;  %v1179_v32 = vmul.f32 1.442695, %v1166_v25  ;;  %v1177_v1 = vmul.f32 1.442695, %v1165_v29  ;;  %v1183_v30 = vmul.f32 1.442695, %v1168_v36 }
 0x797   :  { %1219 = vrot.lane.b32.xlu1 %v1142_v9, %s4498_s24  ;;  %4123 = vpow2.f32 %v1169_v23  ;;  %v1181_v51 = vmul.f32 1.442695, %v1167_v49 }
 0x798   :  { %4125 = vpow2.f32 %v1171_v54 }
 0x799   :  { %1217 = vrot.lane.b32.xlu0 %v1141_v22, %s4498_s24  ;;  %4127 = vpow2.f32 %v1175_v28 }
 0x79a   :  { %4129 = vpow2.f32 %v1179_v32 }
 0x79b   :  { %1223 = vrot.lane.b32.xlu1 %v1144_v10, %s4498_s24  ;;  %4131 = vpow2.f32 %v1177_v1 }
 0x79c   :  { %4133 = vpow2.f32 %v1183_v30 }
 0x79d   :  { %1221 = vrot.lane.b32.xlu0 %v1143_v18, %s4498_s24  ;;  %4135 = vpow2.f32 %v1181_v51 }
 0x7a0   :  { %v4122_v33 = vpop.eup %4121 }
 0x7a1   :  { %v4124_v63 = vpop.eup %4123  ;;  %v1187_v55 = vadd.f32 1.0, %v4122_v33 }
 0x7a2   :  { %v4126_v57 = vpop.eup %4125  ;;  %v1185_v60 = vadd.f32 1.0, %v4124_v63 }
 0x7a3   :  { %v4128_v39 = vpop.eup %4127  ;;  %v1186_v61 = vadd.f32 1.0, %v4126_v57  ;;  %4137 = vrcp.f32 %v1187_v55 }
 0x7a4   :  { %v4130_v16 = vpop.eup %4129  ;;  %4139 = vrcp.f32 %v1185_v60  ;;  %v1188_v35 = vadd.f32 1.0, %v4128_v39 }
 0x7a5   :  { %v4132_v6 = vpop.eup %4131  ;;  %4141 = vrcp.f32 %v1186_v61  ;;  %v1190_v13 = vadd.f32 1.0, %v4130_v16 }
 0x7a6   :  { %v4134_v53 = vpop.eup %4133  ;;  %4143 = vrcp.f32 %v1188_v35  ;;  %v1189_v9 = vadd.f32 1.0, %v4132_v6 }
 0x7a7   :  { %v4136_v22 = vpop.eup %4135  ;;  %4145 = vrcp.f32 %v1190_v13  ;;  %v1192_v10 = vadd.f32 1.0, %v4134_v53 }
 0x7a8   :  { %4147 = vrcp.f32 %v1189_v9  ;;  %v1191_v11 = vadd.f32 1.0, %v4136_v22 }
 0x7a9   :  { %4149 = vrcp.f32 %v1192_v10 }
 0x7aa   :  { %4151 = vrcp.f32 %v1191_v11 }
 0x7ad   :  { %v4919_v18 = vpop.eup %4137 }
 0x7ae   :  { %v4922_v14 = vpop.eup %4139 }
 0x7af   :  { %v4926_v19 = vpop.eup %4141 }
 0x7b0   :  { %v4930_v23 = vpop.eup %4143 }
 0x7b1   :  { %v4934_v54 = vpop.eup %4145 }
 0x7b2   :  { %v4938_v28 = vpop.eup %4147 }
 0x7b3   :  { %v4942_v32 = vpop.eup %4149 }
 0x7b4   :  { %v4946_v49 = vpop.eup %4151 }
 0x801   :  { %v1214_v62 = vpop.permute.xlu1 %1213 }
 0x802   :  { %v1235_v12 = vmul.f32 %v4919_v18, %v1214_v62 }
 0x803   :  { %v1210_v15 = vpop.permute.xlu0 %1209 }
 0x804   :  { %v1233_v47 = vmul.f32 %v4922_v14, %v1210_v15  ;;  %1253 = vrot.lane.b32.xlu1 %v1235_v12, %s4498_s24 }
 0x805   :  { %v1212_v58 = vpop.permute.xlu1 %1211 }
 0x806   :  { %v1234_v27 = vmul.f32 %v4926_v19, %v1212_v58  ;;  %1249 = vrot.lane.b32.xlu0 %v1233_v47, %s4498_s24 }
 0x807   :  { %v1216_v42 = vpop.permute.xlu0 %1215 }
 0x808   :  { %v1236_v43 = vmul.f32 %v4930_v23, %v1216_v42  ;;  %1251 = vrot.lane.b32.xlu1 %v1234_v27, %s4498_s24 }
 0x809   :  { %v1220_v25 = vpop.permute.xlu1 %1219 }
 0x80a   :  { %v1238_v26 = vmul.f32 %v4934_v54, %v1220_v25  ;;  %1255 = vrot.lane.b32.xlu0 %v1236_v43, %s4498_s24 }
 0x80b   :  { %v1218_v29 = vpop.permute.xlu0 %1217 }
 0x80c   :  { %v1237_v31 = vmul.f32 %v4938_v28, %v1218_v29  ;;  %1259 = vrot.lane.b32.xlu1 %v1238_v26, %s4498_s24  ;;  %v1337_v26 = vrot.slane %v4851_v7, 7  ;;  %v1289_v29 = vsub.f32 1.0, %v4922_v14 }
 0x80d   :  { %v1224_v36 = vpop.permute.xlu1 %1223 }
 0x80e   :  { %v1240_v1 = vmul.f32 %v4942_v32, %v1224_v36  ;;  %1257 = vrot.lane.b32.xlu0 %v1237_v31, %s4498_s24  ;;  %v1338_v36 = vrot.slane %v4857_v17, 7 }
 0x80f   :  { %v1222_v30 = vpop.permute.xlu0 %1221 }
 0x810   :  { %v1239_v33 = vmul.f32 %v4946_v49, %v1222_v30  ;;  %1263 = vrot.lane.b32.xlu1 %v1240_v1, %s4498_s24  ;;  %v1352_v1 = vmul.f32 %v4922_v14, %v1337_v26 }
 0x812   :  { %1261 = vrot.lane.b32.xlu0 %v1239_v33, %s4498_s24  ;;  %v1290_v33 = vsub.f32 1.0, %v4926_v19 }
 0x876   :  { %v1254_v51 = vpop.permute.xlu1 %1253 }
 0x877   :  { %v1275_v63 = vadd.f32 %v1254_v51, %v4650_v48  ;;  %v1339_v51 = vrot.slane %v4860_v41, 7  ;;  %v1340_v41 = vrot.slane %v4869_v21, 7 }
 0x878   :  { %v1250_v55 = vpop.permute.xlu0 %1249 }
 0x879   :  { %4153 = vtanh.f32 %v1275_v63  ;;  %v1273_v57 = vadd.f32 %v1250_v55, %v4643_v40  ;;  %v1291_v63 = vsub.f32 1.0, %v4919_v18  ;;  %v1356_v3 = vmul.f32 %v4938_v28, %v1340_v41 }
 0x87a   :  { %v1252_v60 = vpop.permute.xlu1 %1251 }
 0x87b   :  { %4155 = vtanh.f32 %v1273_v57  ;;  %v1274_v39 = vadd.f32 %v1252_v60, %v4641_v37  ;;  %v1353_v60 = vmul.f32 %v4926_v19, %v1338_v36  ;;  %v1354_v19 = vmul.f32 %v4919_v18, %v1051_v24 }
 0x87c   :  { %v1256_v61 = vpop.permute.xlu0 %1255  ;;  %v1343_v18 = vrot.slane %v4888_v52, 7 }
 0x87d   :  { %4157 = vtanh.f32 %v1274_v39  ;;  %v1276_v16 = vadd.f32 %v1256_v61, %v4648_v44  ;;  %v1292_v39 = vsub.f32 1.0, %v4930_v23  ;;  %v1355_v61 = vmul.f32 %v4930_v23, %v1339_v51 }
 0x87e   :  { %v1260_v35 = vpop.permute.xlu1 %1259 }
 0x87f   :  { %4159 = vtanh.f32 %v1276_v16  ;;  %v1278_v6 = vadd.f32 %v1260_v35, %v4654_v56 }
 0x880   :  { %v1258_v13 = vpop.permute.xlu0 %1257 }
 0x881   :  { %4161 = vtanh.f32 %v1278_v6  ;;  %v1277_v53 = vadd.f32 %v1258_v13, %v4656_v59  ;;  %v1294_v6 = vsub.f32 1.0, %v4934_v54  ;;  %v1341_v13 = vrot.slane %v4880_v34, 7 }
 0x882   :  { %v1264_v9 = vpop.permute.xlu1 %1263 }
 0x883   :  { %v4154_v22 = vpop.eup %4153  ;;  %4163 = vtanh.f32 %v1277_v53  ;;  %v1280_v10 = vadd.f32 %v1264_v9, %v4660_v5  ;;  %v1293_v9 = vsub.f32 1.0, %v4938_v28  ;;  %v1359_v28 = vmul.f32 %v4942_v32, %v1343_v18 }
 0x884   :  { %1309 = vrot.lane.b32.xlu1 %v4154_v22, %s4494_s2  ;;  %v1262_v11 = vpop.permute.xlu0 %1261 }
 0x885   :  { %v4156_v62 = vpop.eup %4155  ;;  %4165 = vtanh.f32 %v1280_v10  ;;  %v1279_v12 = vadd.f32 %v1262_v11, %v4662_v8 }
 0x886   :  { %1305 = vrot.lane.b32.xlu0 %v4156_v62, %s4494_s2  ;;  %v1357_v62 = vmul.f32 %v4934_v54, %v1341_v13 }
 0x887   :  { %v4158_v15 = vpop.eup %4157  ;;  %4167 = vtanh.f32 %v1279_v12 }
 0x888   :  { %1307 = vrot.lane.b32.xlu1 %v4158_v15, %s4494_s2 }
 0x889   :  { %v4160_v47 = vpop.eup %4159 }
 0x88a   :  { %1311 = vrot.lane.b32.xlu0 %v4160_v47, %s4494_s2 }
 0x88b   :  { %v4162_v58 = vpop.eup %4161 }
 0x88c   :  { %1315 = vrot.lane.b32.xlu1 %v4162_v58, %s4494_s2  ;;  %v1296_v58 = vsub.f32 1.0, %v4942_v32 }
 0x88d   :  { %v4164_v27 = vpop.eup %4163 }
 0x88e   :  { %1313 = vrot.lane.b32.xlu0 %v4164_v27, %s4494_s2 }
 0x88f   :  { %v4166_v42 = vpop.eup %4165 }
 0x890   :  { %1319 = vrot.lane.b32.xlu1 %v4166_v42, %s4494_s2  ;;  %v1342_v42 = vrot.slane %v4882_v45, 7 }
 0x891   :  { %v4168_v43 = vpop.eup %4167 }
 0x892   :  { %1317 = vrot.lane.b32.xlu0 %v4168_v43, %s4494_s2 }
 0x8f6   :  { %v1310_v25 = vpop.permute.xlu1 %1309 }
 0x8f7   :  { %v1331_v16 = vmul.f32 %v1310_v25, %v1291_v63  ;;  %v1295_v25 = vsub.f32 1.0, %v4946_v49 }
 0x8f8   :  { %v1306_v31 = vpop.permute.xlu0 %1305 }
 0x8f9   :  { %v1329_v30 = vmul.f32 %v1306_v31, %v1289_v29  ;;  %v4993_v21 = vadd.f32 %v1354_v19, %v1331_v16  ;;  %v1358_v31 = vmul.f32 %v4946_v49, %v1342_v42 }
 0x8fa   :  { %v1308_v55 = vpop.permute.xlu1 %1307 }
 0x8fb   :  { %v4974_v57 = vadd.f32 %v1352_v1, %v1329_v30  ;;  %v1330_v7 = vmul.f32 %v1308_v55, %v1290_v33 }
 0x8fc   :  { %v1312_v17 = vpop.permute.xlu0 %1311 }
 0x8fd   :  { %v4979_v14 = vadd.f32 %v1353_v60, %v1330_v7  ;;  %v1332_v35 = vmul.f32 %v1312_v17, %v1292_v39  ;;  %v1376_v23 = vrot.slane %v4974_v57, 2 }
 0x8fe   :  { %v1316_v53 = vpop.permute.xlu1 %1315 }
 0x8ff   :  { %v1377_v22 = vrot.slane %v4979_v14, 1  ;;  %v4990_v10 = vadd.f32 %v1355_v61, %v1332_v35  ;;  %v1334_v11 = vmul.f32 %v1316_v53, %v1294_v6  ;;  %v5036_v61 = vld [vmem:[%s5813_s3 + $0x1] ss:$0 sm:$0xff] }
 0x900   :  { %v1314_v12 = vpop.permute.xlu0 %1313 }
 0x901   :  { %v1378_v34 = vsel %vm716_vm11, %v1377_v22, %v1376_v23  ;;  %v1333_v24 = vmul.f32 %v1314_v12, %v1293_v9  ;;  %v1380_v15 = vrot.slane %v4990_v10, 7  ;;  %v4999_v47 = vadd.f32 %v1357_v62, %v1334_v11 }
 0x902   :  { %v1320_v27 = vpop.permute.xlu1 %1319  ;;  %v1379_v54 = vsel %vm719_vm12, %v4993_v21, %v1378_v34 }
 0x903   :  { %v5005_v43 = vadd.f32 %v1356_v3, %v1333_v24  ;;  %v1336_v26 = vmul.f32 %v1320_v27, %v1296_v58  ;;  %v1381_v45 = vsel %vm722_vm13, %v1380_v15, %v1379_v54  ;;  %v1384_v1 = vrot.slane %v4999_v47, 5 }
 0x904   :  { %v1318_v52 = vpop.permute.xlu0 %1317 }
 0x905   :  { %v1382_v29 = vrot.slane %v5005_v43, 6  ;;  %v1335_v36 = vmul.f32 %v1318_v52, %v1295_v25  ;;  %v5015_v30 = vadd.f32 %v1359_v28, %v1336_v26 }
 0x907   :  { %v5017_v33 = vadd.f32 %v1358_v31, %v1335_v36  ;;  %v1383_v51 = vsel %vm725_vm14, %v1382_v29, %v1381_v45  ;;  %v1388_v55 = vrot.slane %v5015_v30, 3 }
 0x908   :  { %v1385_v32 = vsel %vm728_vm15, %v1384_v1, %v1383_v51 }
 0x909   :  { %v1386_v63 = vrot.slane %v5017_v33, 4 }
 0x90b   :  { %v1387_v49 = vsel %vm731_vm0, %v1386_v63, %v1385_v32 }
 0x90c   :  { %v1389_v60 = vsel %vm734_vm3, %v1388_v55, %v1387_v49 }
 0x90d   :  { %1390 = vrot.lane.b32.xlu0 %v1389_v60, %s4494_s2 }
 0x97f   :  { %v1391_v7 = vpop.permute.xlu0 %1390 }
 0x980   :  { %3784 = vmatmul.mubr.msk.f32.vlgmr.msra.gmra.mrb[10].mxu1 %vm250_vm1, %v1391_v7 }
 0x981   :  { %3907 = vmatpush3.bf16.msra.mxu1 %v4573_v38  ;;  %3805 = vmatprep.mubr.msk.f32.mxu1 %vm4496_vm2, %v4497_v50 }
 0x982   :  { %3908 = vmatprep.subr.bf16.mxu1 %v4495_v20 }
 0x985   :  { %3910 = vmatpush3.bf16.msra.mxu1 %v4581_v46 }
 0x986   :  { %3917 = vmatprep.subr.bf16.mxu1 %v4495_v20 }
 0xa53   :  { %v1460_v39 = vpop.f32.mrb[10].mxu1 }
 0xa54   :  { %v1461_v17 = vadd.f32 %v5036_v61, %v1460_v39  ;;  %v3785_v16 = vpop.f32.mrb[11].mxu1 }
 0xa56   :  { %1542 = vrot.lane.b32.xlu1 %v1461_v17, %s4498_s24  ;;  %v1466_v35 = vrot.slane %v1461_v17, 6  ;;  %v1465_v6 = vrot.slane %v1461_v17, 5  ;;  %v1468_v41 = vrot.slane %v1461_v17, 1  ;;  %v1467_v13 = vrot.slane %v1461_v17, 7 }
 0xa57   :  { %v1469_v19 = vrot.slane %v1461_v17, 2  ;;  %v1470_v53 = vrot.slane %v1461_v17, 3  ;;  %v1471_v9 = vrot.slane %v1461_v17, 4  ;;  %v1483_v23 = vadd.f32 %v1461_v17, %v4648_v44 }
 0xa58   :  { %1538 = vrot.lane.b32.xlu0 %v1466_v35, %s4498_s24  ;;  %v1481_v22 = vadd.f32 %v1466_v35, %v4641_v37  ;;  %v1480_v11 = vadd.f32 %v1465_v6, %v4643_v40  ;;  %v1484_v34 = vadd.f32 %v1468_v41, %v4656_v59  ;;  %v1482_v24 = vadd.f32 %v1467_v13, %v4650_v48 }
 0xa59   :  { %v1491_v62 = vsub.f32 0.0, %v1483_v23  ;;  %v1485_v42 = vadd.f32 %v1469_v19, %v4654_v56  ;;  %v1486_v28 = vadd.f32 %v1470_v53, %v4662_v8  ;;  %v1487_v29 = vadd.f32 %v1471_v9, %v4660_v5 }
 0xa5a   :  { %1536 = vrot.lane.b32.xlu1 %v1465_v6, %s4498_s24  ;;  %v1489_v12 = vsub.f32 0.0, %v1481_v22  ;;  %v1488_v3 = vsub.f32 0.0, %v1480_v11  ;;  %v1492_v27 = vsub.f32 0.0, %v1484_v34  ;;  %v1490_v25 = vsub.f32 0.0, %v1482_v24 }
 0xa5b   :  { %v1502_v18 = vmul.f32 1.442695, %v1491_v62  ;;  %v1493_v52 = vsub.f32 0.0, %v1485_v42  ;;  %v1494_v36 = vsub.f32 0.0, %v1486_v28  ;;  %v1495_v1 = vsub.f32 0.0, %v1487_v29 }
 0xa5c   :  { %1544 = vrot.lane.b32.xlu0 %v1468_v41, %s4498_s24  ;;  %v1498_v58 = vmul.f32 1.442695, %v1489_v12  ;;  %v1496_v54 = vmul.f32 1.442695, %v1488_v3  ;;  %v1504_v26 = vmul.f32 1.442695, %v1492_v27 }
 0xa5d   :  { %4169 = vpow2.f32 %v1502_v18  ;;  %v1500_v31 = vmul.f32 1.442695, %v1490_v25  ;;  %v1506_v45 = vmul.f32 1.442695, %v1493_v52  ;;  %v1508_v51 = vmul.f32 1.442695, %v1494_v36 }
 0xa5e   :  { %1540 = vrot.lane.b32.xlu1 %v1467_v13, %s4498_s24  ;;  %4171 = vpow2.f32 %v1498_v58  ;;  %v1510_v63 = vmul.f32 1.442695, %v1495_v1 }
 0xa5f   :  { %4173 = vpow2.f32 %v1496_v54 }
 0xa60   :  { %1546 = vrot.lane.b32.xlu0 %v1469_v19, %s4498_s24  ;;  %4175 = vpow2.f32 %v1504_v26 }
 0xa61   :  { %4177 = vpow2.f32 %v1500_v31 }
 0xa62   :  { %1548 = vrot.lane.b32.xlu1 %v1470_v53, %s4498_s24  ;;  %4179 = vpow2.f32 %v1506_v45 }
 0xa63   :  { %4181 = vpow2.f32 %v1508_v51 }
 0xa64   :  { %1550 = vrot.lane.b32.xlu0 %v1471_v9, %s4498_s24  ;;  %4183 = vpow2.f32 %v1510_v63 }
 0xa67   :  { %v4170_v32 = vpop.eup %4169 }
 0xa68   :  { %v4172_v55 = vpop.eup %4171  ;;  %v1515_v49 = vadd.f32 1.0, %v4170_v32 }
 0xa69   :  { %v4174_v60 = vpop.eup %4173  ;;  %v1513_v7 = vadd.f32 1.0, %v4172_v55 }
 0xa6a   :  { %v4176_v39 = vpop.eup %4175  ;;  %v1512_v17 = vadd.f32 1.0, %v4174_v60  ;;  %4185 = vrcp.f32 %v1515_v49 }
 0xa6b   :  { %v4178_v16 = vpop.eup %4177  ;;  %4187 = vrcp.f32 %v1513_v7  ;;  %v1516_v35 = vadd.f32 1.0, %v4176_v39 }
 0xa6c   :  { %v4180_v6 = vpop.eup %4179  ;;  %4189 = vrcp.f32 %v1512_v17  ;;  %v1514_v41 = vadd.f32 1.0, %v4178_v16 }
 0xa6d   :  { %v4182_v13 = vpop.eup %4181  ;;  %4191 = vrcp.f32 %v1516_v35  ;;  %v1517_v19 = vadd.f32 1.0, %v4180_v6 }
 0xa6e   :  { %v4184_v53 = vpop.eup %4183  ;;  %4193 = vrcp.f32 %v1514_v41  ;;  %v1518_v9 = vadd.f32 1.0, %v4182_v13 }
 0xa6f   :  { %4195 = vrcp.f32 %v1517_v19  ;;  %v1519_v22 = vadd.f32 1.0, %v4184_v53 }
 0xa70   :  { %4197 = vrcp.f32 %v1518_v9 }
 0xa71   :  { %4199 = vrcp.f32 %v1519_v22 }
 0xa74   :  { %v5055_v23 = vpop.eup %4185 }
 0xa75   :  { %v5058_v12 = vpop.eup %4187 }
 0xa76   :  { %v5062_v24 = vpop.eup %4189 }
 0xa77   :  { %v5066_v27 = vpop.eup %4191 }
 0xa78   :  { %v5070_v25 = vpop.eup %4193 }
 0xa79   :  { %v5074_v52 = vpop.eup %4195 }
 0xa7a   :  { %v5078_v36 = vpop.eup %4197 }
 0xa7b   :  { %v5082_v51 = vpop.eup %4199 }
 0xac8   :  { %v1543_v11 = vpop.permute.xlu1 %1542 }
 0xac9   :  { %v1563_v62 = vmul.f32 %v5055_v23, %v1543_v11 }
 0xaca   :  { %v1539_v34 = vpop.permute.xlu0 %1538 }
 0xacb   :  { %v1561_v3 = vmul.f32 %v5058_v12, %v1539_v34  ;;  %1582 = vrot.lane.b32.xlu1 %v1563_v62, %s4498_s24 }
 0xacc   :  { %v1537_v18 = vpop.permute.xlu1 %1536 }
 0xacd   :  { %v1560_v58 = vmul.f32 %v5062_v24, %v1537_v18  ;;  %1578 = vrot.lane.b32.xlu0 %v1561_v3, %s4498_s24 }
 0xace   :  { %v1545_v42 = vpop.permute.xlu0 %1544 }
 0xacf   :  { %v1564_v54 = vmul.f32 %v5066_v27, %v1545_v42  ;;  %1576 = vrot.lane.b32.xlu1 %v1560_v58, %s4498_s24 }
 0xad0   :  { %v1541_v28 = vpop.permute.xlu1 %1540 }
 0xad1   :  { %v1562_v26 = vmul.f32 %v5070_v25, %v1541_v28  ;;  %1584 = vrot.lane.b32.xlu0 %v1564_v54, %s4498_s24 }
 0xad2   :  { %v1547_v29 = vpop.permute.xlu0 %1546 }
 0xad3   :  { %v1565_v31 = vmul.f32 %v5074_v52, %v1547_v29  ;;  %1580 = vrot.lane.b32.xlu1 %v1562_v26, %s4498_s24  ;;  %v1665_v29 = vrot.slane %v4979_v14, 7  ;;  %v1666_v14 = vrot.slane %v4993_v21, 7 }
 0xad4   :  { %v1549_v45 = vpop.permute.xlu1 %1548 }
 0xad5   :  { %v1566_v1 = vmul.f32 %v5078_v36, %v1549_v45  ;;  %1586 = vrot.lane.b32.xlu0 %v1565_v31, %s4498_s24  ;;  %v1617_v31 = vsub.f32 1.0, %v5058_v12 }
 0xad6   :  { %v1551_v32 = vpop.permute.xlu0 %1550 }
 0xad7   :  { %v1567_v63 = vmul.f32 %v5082_v51, %v1551_v32  ;;  %1588 = vrot.lane.b32.xlu1 %v1566_v1, %s4498_s24  ;;  %v1664_v1 = vrot.slane %v4974_v57, 7  ;;  %v1680_v32 = vmul.f32 %v5058_v12, %v1665_v29  ;;  %v1618_v12 = vsub.f32 1.0, %v5070_v25 }
 0xad8   :  { %v1670_v29 = vrot.slane %v5015_v30, 7 }
 0xad9   :  { %1590 = vrot.lane.b32.xlu0 %v1567_v63, %s4498_s24 }
 0xb3d   :  { %v1583_v55 = vpop.permute.xlu1 %1582 }
 0xb3e   :  { %v1603_v49 = vadd.f32 %v1583_v55, %v4648_v44  ;;  %v1616_v55 = vsub.f32 1.0, %v5062_v24 }
 0xb3f   :  { %v1579_v60 = vpop.permute.xlu0 %1578 }
 0xb40   :  { %4201 = vtanh.f32 %v1603_v49  ;;  %v1601_v7 = vadd.f32 %v1579_v60, %v4641_v37 }
 0xb41   :  { %v1577_v39 = vpop.permute.xlu1 %1576 }
 0xb42   :  { %4203 = vtanh.f32 %v1601_v7  ;;  %v1600_v17 = vadd.f32 %v1577_v39, %v4643_v40  ;;  %v1679_v7 = vmul.f32 %v5062_v24, %v1664_v1  ;;  %v1681_v24 = vmul.f32 %v5070_v25, %v1666_v14 }
 0xb43   :  { %v1585_v16 = vpop.permute.xlu0 %1584 }
 0xb44   :  { %4205 = vtanh.f32 %v1600_v17  ;;  %v1604_v35 = vadd.f32 %v1585_v16, %v4656_v59  ;;  %v1620_v17 = vsub.f32 1.0, %v5066_v27  ;;  %v1667_v16 = vrot.slane %v5005_v43, 7 }
 0xb45   :  { %v1581_v6 = vpop.permute.xlu1 %1580 }
 0xb46   :  { %4207 = vtanh.f32 %v1604_v35  ;;  %v1602_v41 = vadd.f32 %v1581_v6, %v4650_v48 }
 0xb47   :  { %v1587_v13 = vpop.permute.xlu0 %1586 }
 0xb48   :  { %4209 = vtanh.f32 %v1602_v41  ;;  %v1605_v19 = vadd.f32 %v1587_v13, %v4654_v56  ;;  %v1668_v41 = vrot.slane %v4999_v47, 7  ;;  %v1619_v13 = vsub.f32 1.0, %v5055_v23 }
 0xb49   :  { %v1589_v53 = vpop.permute.xlu1 %1588 }
 0xb4a   :  { %v4202_v9 = vpop.eup %4201  ;;  %4211 = vtanh.f32 %v1605_v19  ;;  %v1606_v22 = vadd.f32 %v1589_v53, %v4662_v8  ;;  %v1683_v19 = vmul.f32 %v5066_v27, %v1667_v16 }
 0xb4b   :  { %v1591_v11 = vpop.permute.xlu0 %1590  ;;  %1638 = vrot.lane.b32.xlu1 %v4202_v9, %s4494_s2 }
 0xb4c   :  { %v4204_v62 = vpop.eup %4203  ;;  %4213 = vtanh.f32 %v1606_v22  ;;  %v1607_v34 = vadd.f32 %v1591_v11, %v4660_v5  ;;  %v1621_v22 = vsub.f32 1.0, %v5074_v52  ;;  %v1669_v11 = vrot.slane %v5017_v33, 7 }
 0xb4d   :  { %1634 = vrot.lane.b32.xlu0 %v4204_v62, %s4494_s2 }
 0xb4e   :  { %v4206_v3 = vpop.eup %4205  ;;  %4215 = vtanh.f32 %v1607_v34  ;;  %v1684_v34 = vmul.f32 %v5074_v52, %v1668_v41  ;;  %v1685_v52 = vmul.f32 %v5078_v36, %v1669_v11 }
 0xb4f   :  { %1632 = vrot.lane.b32.xlu1 %v4206_v3, %s4494_s2  ;;  %v1622_v3 = vsub.f32 1.0, %v5078_v36 }
 0xb50   :  { %v4208_v18 = vpop.eup %4207 }
 0xb51   :  { %1640 = vrot.lane.b32.xlu0 %v4208_v18, %s4494_s2 }
 0xb52   :  { %v4210_v58 = vpop.eup %4209 }
 0xb53   :  { %1636 = vrot.lane.b32.xlu1 %v4210_v58, %s4494_s2 }
 0xb54   :  { %v4212_v42 = vpop.eup %4211 }
 0xb55   :  { %1642 = vrot.lane.b32.xlu0 %v4212_v42, %s4494_s2  ;;  %v1682_v42 = vmul.f32 %v5055_v23, %v1380_v15 }
 0xb56   :  { %v4214_v54 = vpop.eup %4213 }
 0xb57   :  { %1644 = vrot.lane.b32.xlu1 %v4214_v54, %s4494_s2 }
 0xb58   :  { %v4216_v28 = vpop.eup %4215 }
 0xb59   :  { %1646 = vrot.lane.b32.xlu0 %v4216_v28, %s4494_s2 }
 0xbbd   :  { %v1639_v26 = vpop.permute.xlu1 %1638 }
 0xbbe   :  { %v1659_v62 = vmul.f32 %v1639_v26, %v1619_v13 }
 0xbbf   :  { %v1635_v45 = vpop.permute.xlu0 %1634 }
 0xbc0   :  { %v1657_v63 = vmul.f32 %v1635_v45, %v1617_v31  ;;  %v5140_v31 = vadd.f32 %v1682_v42, %v1659_v62  ;;  %v1623_v45 = vsub.f32 1.0, %v5082_v51 }
 0xbc1   :  { %v1633_v49 = vpop.permute.xlu1 %1632 }
 0xbc2   :  { %v5108_v60 = vadd.f32 %v1680_v32, %v1657_v63  ;;  %v1656_v39 = vmul.f32 %v1633_v49, %v1616_v55  ;;  %v1686_v63 = vmul.f32 %v5082_v51, %v1670_v29 }
 0xbc3   :  { %v1641_v35 = vpop.permute.xlu0 %1640 }
 0xbc4   :  { %v5114_v6 = vadd.f32 %v1679_v7, %v1656_v39  ;;  %v1660_v57 = vmul.f32 %v1641_v35, %v1620_v17  ;;  %v1704_v9 = vrot.slane %v5108_v60, 2 }
 0xbc5   :  { %v1637_v53 = vpop.permute.xlu1 %1636 }
 0xbc6   :  { %v1703_v21 = vrot.slane %v5114_v6, 3  ;;  %v1658_v43 = vmul.f32 %v1637_v53, %v1618_v12  ;;  %v5128_v18 = vadd.f32 %v1683_v19, %v1660_v57 }
 0xbc7   :  { %v1643_v47 = vpop.permute.xlu0 %1642 }
 0xbc8   :  { %v1705_v27 = vsel %vm716_vm11, %v1704_v9, %v1703_v21  ;;  %v5130_v25 = vadd.f32 %v1681_v24, %v1658_v43  ;;  %v1661_v58 = vmul.f32 %v1643_v47, %v1621_v22  ;;  %v1709_v32 = vrot.slane %v5128_v18, 7 }
 0xbc9   :  { %v1645_v54 = vpop.permute.xlu1 %1644 }
 0xbca   :  { %v1706_v33 = vrot.slane %v5130_v25, 1  ;;  %v5136_v28 = vadd.f32 %v1684_v34, %v1661_v58  ;;  %v1662_v26 = vmul.f32 %v1645_v54, %v1622_v3 }
 0xbcb   :  { %v1647_v1 = vpop.permute.xlu0 %1646 }
 0xbcc   :  { %v1707_v10 = vsel %vm719_vm12, %v1706_v33, %v1705_v27  ;;  %v1711_v15 = vrot.slane %v5136_v28, 6  ;;  %v5146_v23 = vadd.f32 %v1685_v52, %v1662_v26  ;;  %v1663_v55 = vmul.f32 %v1647_v1, %v1623_v45 }
 0xbcd   :  { %v1708_v36 = vsel %vm722_vm13, %v5140_v31, %v1707_v10 }
 0xbce   :  { %v1713_v30 = vrot.slane %v5146_v23, 5  ;;  %v1710_v49 = vsel %vm725_vm14, %v1709_v32, %v1708_v36  ;;  %v5155_v7 = vadd.f32 %v1686_v63, %v1663_v55 }
 0xbcf   :  { %v1712_v39 = vsel %vm728_vm15, %v1711_v15, %v1710_v49 }
 0xbd0   :  { %v1714_v17 = vsel %vm731_vm0, %v1713_v30, %v1712_v39  ;;  %v1715_v14 = vrot.slane %v5155_v7, 4 }
 0xbd2   :  { %v1716_v51 = vsel %vm734_vm3, %v1715_v14, %v1714_v17 }
 0xbd3   :  { %1717 = vrot.lane.b32.xlu1 %v1716_v51, %s4494_s2 }
 0xc45   :  { %v1718_v16 = vpop.permute.xlu1 %1717 }
 0xc46   :  { %3795 = vmatmul.mubr.msk.f32.vlgmr.msra.gmra.mrb[12].mxu0 %vm250_vm1, %v1718_v16 }
 0xc47   :  { %3913 = vmatpush3.bf16.msra.mxu0 %v4573_v38  ;;  %3816 = vmatprep.mubr.msk.f32.mxu0 %vm4496_vm2, %v4497_v50 }
 0xc48   :  { %3914 = vmatprep.subr.bf16.mxu0 %v4495_v20 }
 0xc4b   :  { %3916 = vmatpush3.bf16.msra.mxu0 %v4581_v46 }
 0xc4c   :  { %3923 = vmatprep.subr.bf16.mxu0 %v4495_v20 }
 0xd19   :  { %v1787_v35 = vpop.f32.mrb[12].mxu0 }
 0xd1a   :  { %v1788_v57 = vadd.f32 %v5036_v61, %v1787_v35  ;;  %v3796_v12 = vpop.f32.mrb[13].mxu0 }
 0xd1c   :  { %1871 = vrot.lane.b32.xlu1 %v1788_v57, %s4498_s24  ;;  %v1792_v41 = vrot.slane %v1788_v57, 4  ;;  %v1793_v13 = vrot.slane %v1788_v57, 5  ;;  %v1794_v19 = vrot.slane %v1788_v57, 6  ;;  %v1795_v24 = vrot.slane %v1788_v57, 7 }
 0xd1d   :  { %v1796_v53 = vrot.slane %v1788_v57, 1  ;;  %v1798_v9 = vrot.slane %v1788_v57, 3  ;;  %v1797_v21 = vrot.slane %v1788_v57, 2  ;;  %v1811_v43 = vadd.f32 %v1788_v57, %v4656_v59 }
 0xd1e   :  { %1863 = vrot.lane.b32.xlu0 %v1792_v41, %s4498_s24  ;;  %v1807_v22 = vadd.f32 %v1792_v41, %v4643_v40  ;;  %v1808_v11 = vadd.f32 %v1793_v13, %v4641_v37  ;;  %v1809_v47 = vadd.f32 %v1794_v19, %v4650_v48  ;;  %v1810_v27 = vadd.f32 %v1795_v24, %v4648_v44 }
 0xd1f   :  { %v1819_v62 = vsub.f32 0.0, %v1811_v43  ;;  %v1812_v33 = vadd.f32 %v1796_v53, %v4654_v56  ;;  %v1814_v29 = vadd.f32 %v1798_v9, %v4660_v5  ;;  %v1813_v10 = vadd.f32 %v1797_v21, %v4662_v8 }
 0xd20   :  { %1865 = vrot.lane.b32.xlu1 %v1793_v13, %s4498_s24  ;;  %v1815_v34 = vsub.f32 0.0, %v1807_v22  ;;  %v1816_v3 = vsub.f32 0.0, %v1808_v11  ;;  %v1817_v54 = vsub.f32 0.0, %v1809_v47  ;;  %v1818_v26 = vsub.f32 0.0, %v1810_v27 }
 0xd21   :  { %v1831_v58 = vmul.f32 1.442695, %v1819_v62  ;;  %v1820_v1 = vsub.f32 0.0, %v1812_v33  ;;  %v1822_v63 = vsub.f32 0.0, %v1814_v29  ;;  %v1821_v36 = vsub.f32 0.0, %v1813_v10 }
 0xd22   :  { %1867 = vrot.lane.b32.xlu0 %v1794_v19, %s4498_s24  ;;  %v1823_v42 = vmul.f32 1.442695, %v1815_v34  ;;  %v1825_v52 = vmul.f32 1.442695, %v1816_v3  ;;  %v1827_v45 = vmul.f32 1.442695, %v1817_v54 }
 0xd23   :  { %4217 = vpow2.f32 %v1831_v58  ;;  %v1829_v15 = vmul.f32 1.442695, %v1818_v26  ;;  %v1833_v55 = vmul.f32 1.442695, %v1820_v1  ;;  %v1837_v30 = vmul.f32 1.442695, %v1822_v63 }
 0xd24   :  { %1869 = vrot.lane.b32.xlu1 %v1795_v24, %s4498_s24  ;;  %4219 = vpow2.f32 %v1823_v42  ;;  %v1835_v39 = vmul.f32 1.442695, %v1821_v36 }
 0xd25   :  { %4221 = vpow2.f32 %v1825_v52 }
 0xd26   :  { %1873 = vrot.lane.b32.xlu0 %v1796_v53, %s4498_s24  ;;  %4223 = vpow2.f32 %v1827_v45 }
 0xd27   :  { %4225 = vpow2.f32 %v1829_v15 }
 0xd28   :  { %1877 = vrot.lane.b32.xlu1 %v1798_v9, %s4498_s24  ;;  %4227 = vpow2.f32 %v1833_v55 }
 0xd29   :  { %4229 = vpow2.f32 %v1837_v30 }
 0xd2a   :  { %1875 = vrot.lane.b32.xlu0 %v1797_v21, %s4498_s24  ;;  %4231 = vpow2.f32 %v1835_v39 }
 0xd2d   :  { %v4218_v49 = vpop.eup %4217 }
 0xd2e   :  { %v4220_v17 = vpop.eup %4219  ;;  %v1843_v14 = vadd.f32 1.0, %v4218_v49 }
 0xd2f   :  { %v4222_v51 = vpop.eup %4221  ;;  %v1839_v16 = vadd.f32 1.0, %v4220_v17 }
 0xd30   :  { %v4224_v35 = vpop.eup %4223  ;;  %v1840_v57 = vadd.f32 1.0, %v4222_v51  ;;  %4233 = vrcp.f32 %v1843_v14 }
 0xd31   :  { %v4226_v12 = vpop.eup %4225  ;;  %4235 = vrcp.f32 %v1839_v16  ;;  %v1841_v41 = vadd.f32 1.0, %v4224_v35 }
 0xd32   :  { %v4228_v13 = vpop.eup %4227  ;;  %4237 = vrcp.f32 %v1840_v57  ;;  %v1842_v19 = vadd.f32 1.0, %v4226_v12 }
 0xd33   :  { %v4230_v24 = vpop.eup %4229  ;;  %4239 = vrcp.f32 %v1841_v41  ;;  %v1844_v53 = vadd.f32 1.0, %v4228_v13 }
 0xd34   :  { %v4232_v9 = vpop.eup %4231  ;;  %4241 = vrcp.f32 %v1842_v19  ;;  %v1846_v21 = vadd.f32 1.0, %v4230_v24 }
 0xd35   :  { %4243 = vrcp.f32 %v1844_v53  ;;  %v1845_v22 = vadd.f32 1.0, %v4232_v9 }
 0xd36   :  { %4245 = vrcp.f32 %v1846_v21 }
 0xd37   :  { %4247 = vrcp.f32 %v1845_v22 }
 0xd3a   :  { %v5186_v43 = vpop.eup %4233 }
 0xd3b   :  { %v5189_v34 = vpop.eup %4235 }
 0xd3c   :  { %v5193_v27 = vpop.eup %4237 }
 0xd3d   :  { %v5197_v54 = vpop.eup %4239 }
 0xd3e   :  { %v5201_v26 = vpop.eup %4241 }
 0xd3f   :  { %v5205_v1 = vpop.eup %4243 }
 0xd40   :  { %v5209_v63 = vpop.eup %4245 }
 0xd41   :  { %v5213_v30 = vpop.eup %4247 }
 0xd8e   :  { %v1872_v11 = vpop.permute.xlu1 %1871 }
 0xd8f   :  { %v1891_v62 = vmul.f32 %v5186_v43, %v1872_v11 }
 0xd90   :  { %v1864_v47 = vpop.permute.xlu0 %1863 }
 0xd91   :  { %v1887_v3 = vmul.f32 %v5189_v34, %v1864_v47  ;;  %1911 = vrot.lane.b32.xlu1 %v1891_v62, %s4498_s24 }
 0xd92   :  { %v1866_v58 = vpop.permute.xlu1 %1865 }
 0xd93   :  { %v1888_v42 = vmul.f32 %v5193_v27, %v1866_v58  ;;  %1903 = vrot.lane.b32.xlu0 %v1887_v3, %s4498_s24 }
 0xd94   :  { %v1868_v33 = vpop.permute.xlu0 %1867 }
 0xd95   :  { %v1889_v52 = vmul.f32 %v5197_v54, %v1868_v33  ;;  %1905 = vrot.lane.b32.xlu1 %v1888_v42, %s4498_s24 }
 0xd96   :  { %v1870_v29 = vpop.permute.xlu1 %1869 }
 0xd97   :  { %v1890_v45 = vmul.f32 %v5201_v26, %v1870_v29  ;;  %1907 = vrot.lane.b32.xlu0 %v1889_v52, %s4498_s24 }
 0xd98   :  { %v1874_v10 = vpop.permute.xlu0 %1873 }
 0xd99   :  { %v1892_v15 = vmul.f32 %v5205_v1, %v1874_v10  ;;  %1909 = vrot.lane.b32.xlu1 %v1890_v45, %s4498_s24  ;;  %v1991_v10 = vrot.slane %v5114_v6, 7  ;;  %v1945_v6 = vsub.f32 1.0, %v5197_v54 }
 0xd9a   :  { %v1878_v55 = vpop.permute.xlu1 %1877 }
 0xd9b   :  { %v1894_v36 = vmul.f32 %v5209_v63, %v1878_v55  ;;  %1913 = vrot.lane.b32.xlu0 %v1892_v15, %s4498_s24  ;;  %v1943_v15 = vsub.f32 1.0, %v5189_v34 }
 0xd9c   :  { %v1876_v49 = vpop.permute.xlu0 %1875 }
 0xd9d   :  { %v1893_v39 = vmul.f32 %v5213_v30, %v1876_v49  ;;  %1917 = vrot.lane.b32.xlu1 %v1894_v36, %s4498_s24  ;;  %v1992_v36 = vrot.slane %v5108_v60, 7  ;;  %v2006_v49 = vmul.f32 %v5189_v34, %v1991_v10 }
 0xd9f   :  { %1915 = vrot.lane.b32.xlu0 %v1893_v39, %s4498_s24 }
 0xe03   :  { %v1912_v17 = vpop.permute.xlu1 %1911 }
 0xe04   :  { %v1931_v14 = vadd.f32 %v1912_v17, %v4656_v59  ;;  %v1944_v17 = vsub.f32 1.0, %v5193_v27 }
 0xe05   :  { %v1904_v51 = vpop.permute.xlu0 %1903 }
 0xe06   :  { %4249 = vtanh.f32 %v1931_v14  ;;  %v1927_v16 = vadd.f32 %v1904_v51, %v4643_v40  ;;  %v1993_v14 = vrot.slane %v5130_v25, 7  ;;  %v1947_v25 = vsub.f32 1.0, %v5186_v43 }
 0xe07   :  { %v1906_v35 = vpop.permute.xlu1 %1905 }
 0xe08   :  { %4251 = vtanh.f32 %v1927_v16  ;;  %v1928_v57 = vadd.f32 %v1906_v35, %v4641_v37  ;;  %v2007_v35 = vmul.f32 %v5193_v27, %v1992_v36  ;;  %v2008_v60 = vmul.f32 %v5197_v54, %v1993_v14 }
 0xe09   :  { %v1908_v12 = vpop.permute.xlu0 %1907  ;;  %v1948_v54 = vsub.f32 1.0, %v5205_v1 }
 0xe0a   :  { %4253 = vtanh.f32 %v1928_v57  ;;  %v1929_v41 = vadd.f32 %v1908_v12, %v4650_v48  ;;  %v1994_v12 = vrot.slane %v5140_v31, 7 }
 0xe0b   :  { %v1910_v13 = vpop.permute.xlu1 %1909 }
 0xe0c   :  { %4255 = vtanh.f32 %v1929_v41  ;;  %v1930_v19 = vadd.f32 %v1910_v13, %v4648_v44 }
 0xe0d   :  { %v1914_v24 = vpop.permute.xlu0 %1913 }
 0xe0e   :  { %4257 = vtanh.f32 %v1930_v19  ;;  %v1932_v53 = vadd.f32 %v1914_v24, %v4654_v56  ;;  %v1946_v19 = vsub.f32 1.0, %v5201_v26  ;;  %v2009_v24 = vmul.f32 %v5201_v26, %v1994_v12 }
 0xe0f   :  { %v1918_v9 = vpop.permute.xlu1 %1917 }
 0xe10   :  { %v4250_v21 = vpop.eup %4249  ;;  %4259 = vtanh.f32 %v1932_v53  ;;  %v1934_v22 = vadd.f32 %v1918_v9, %v4660_v5 }
 0xe11   :  { %1967 = vrot.lane.b32.xlu1 %v4250_v21, %s4494_s2  ;;  %v1916_v11 = vpop.permute.xlu0 %1915 }
 0xe12   :  { %v4252_v62 = vpop.eup %4251  ;;  %4261 = vtanh.f32 %v1934_v22  ;;  %v1933_v47 = vadd.f32 %v1916_v11, %v4662_v8  ;;  %v1995_v22 = vrot.slane %v5136_v28, 7  ;;  %v1996_v11 = vrot.slane %v5146_v23, 7 }
 0xe13   :  { %1959 = vrot.lane.b32.xlu0 %v4252_v62, %s4494_s2  ;;  %v2010_v28 = vmul.f32 %v5186_v43, %v1709_v32 }
 0xe14   :  { %v4254_v3 = vpop.eup %4253  ;;  %4263 = vtanh.f32 %v1933_v47  ;;  %v1950_v47 = vsub.f32 1.0, %v5209_v63  ;;  %v2011_v23 = vmul.f32 %v5205_v1, %v1995_v22  ;;  %v2012_v32 = vmul.f32 %v5213_v30, %v1996_v11 }
 0xe15   :  { %1961 = vrot.lane.b32.xlu1 %v4254_v3, %s4494_s2 }
 0xe16   :  { %v4256_v58 = vpop.eup %4255 }
 0xe17   :  { %1963 = vrot.lane.b32.xlu0 %v4256_v58, %s4494_s2 }
 0xe18   :  { %v4258_v42 = vpop.eup %4257 }
 0xe19   :  { %1965 = vrot.lane.b32.xlu1 %v4258_v42, %s4494_s2 }
 0xe1a   :  { %v4260_v33 = vpop.eup %4259 }
 0xe1b   :  { %1969 = vrot.lane.b32.xlu0 %v4260_v33, %s4494_s2  ;;  %v1997_v33 = vrot.slane %v5155_v7, 7 }
 0xe1c   :  { %v4262_v52 = vpop.eup %4261 }
 0xe1d   :  { %1973 = vrot.lane.b32.xlu1 %v4262_v52, %s4494_s2 }
 0xe1e   :  { %v4264_v29 = vpop.eup %4263 }
 0xe1f   :  { %1971 = vrot.lane.b32.xlu0 %v4264_v29, %s4494_s2 }
 0xe83   :  { %v1968_v45 = vpop.permute.xlu1 %1967 }
 0xe84   :  { %v1987_v3 = vmul.f32 %v1968_v45, %v1947_v25 }
 0xe85   :  { %v1960_v55 = vpop.permute.xlu0 %1959 }
 0xe86   :  { %v1983_v39 = vmul.f32 %v1960_v55, %v1943_v15  ;;  %v1949_v55 = vsub.f32 1.0, %v5213_v30 }
 0xe87   :  { %v1962_v51 = vpop.permute.xlu1 %1961 }
 0xe88   :  { %v5240_v16 = vadd.f32 %v2006_v49, %v1983_v39  ;;  %v1984_v57 = vmul.f32 %v1962_v51, %v1944_v17  ;;  %v2013_v49 = vmul.f32 %v5209_v63, %v1997_v33  ;;  %v5274_v39 = vadd.f32 %v2010_v28, %v1987_v3 }
 0xe89   :  { %v1964_v41 = vpop.permute.xlu0 %1963 }
 0xe8a   :  { %v5245_v13 = vadd.f32 %v2007_v35, %v1984_v57  ;;  %v1985_v34 = vmul.f32 %v1964_v41, %v1945_v6  ;;  %v2030_v27 = vrot.slane %v5240_v16, 4 }
 0xe8b   :  { %v1966_v53 = vpop.permute.xlu1 %1965 }
 0xe8c   :  { %v2031_v9 = vrot.slane %v5245_v13, 3  ;;  %v5253_v21 = vadd.f32 %v2008_v60, %v1985_v34  ;;  %v1986_v31 = vmul.f32 %v1966_v53, %v1946_v19 }
 0xe8d   :  { %v1970_v62 = vpop.permute.xlu0 %1969 }
 0xe8e   :  { %v2032_v26 = vsel %vm716_vm11, %v2031_v9, %v2030_v27  ;;  %v2033_v58 = vrot.slane %v5253_v21, 2  ;;  %v5261_v42 = vadd.f32 %v2009_v24, %v1986_v31  ;;  %v1988_v52 = vmul.f32 %v1970_v62, %v1948_v54 }
 0xe8f   :  { %v1974_v29 = vpop.permute.xlu1 %1973 }
 0xe90   :  { %v2034_v10 = vsel %vm719_vm12, %v2033_v58, %v2032_v26  ;;  %v2035_v45 = vrot.slane %v5261_v42, 1  ;;  %v1990_v15 = vmul.f32 %v1974_v29, %v1950_v47  ;;  %v5271_v36 = vadd.f32 %v2011_v23, %v1988_v52 }
 0xe91   :  { %v1972_v7 = vpop.permute.xlu0 %1971 }
 0xe92   :  { %v2036_v18 = vsel %vm722_vm13, %v2035_v45, %v2034_v10  ;;  %v1989_v43 = vmul.f32 %v1972_v7, %v1949_v55  ;;  %v2038_v1 = vrot.slane %v5271_v36, 7  ;;  %v5279_v17 = vadd.f32 %v2013_v49, %v1990_v15 }
 0xe93   :  { %v2037_v51 = vsel %vm725_vm14, %v5274_v39, %v2036_v18 }
 0xe94   :  { %v5281_v14 = vadd.f32 %v2012_v32, %v1989_v43  ;;  %v2042_v63 = vrot.slane %v5279_v17, 5  ;;  %v2039_v57 = vsel %vm728_vm15, %v2038_v1, %v2037_v51 }
 0xe96   :  { %v2040_v35 = vrot.slane %v5281_v14, 6 }
 0xe98   :  { %v2041_v30 = vsel %vm731_vm0, %v2040_v35, %v2039_v57 }
 0xe99   :  { %v2043_v6 = vsel %vm734_vm3, %v2042_v63, %v2041_v30 }
 0xe9a   :  { %2044 = vrot.lane.b32.xlu0 %v2043_v6, %s4494_s2 }
 0xf0c   :  { %v2045_v12 = vpop.permute.xlu0 %2044 }
 0xf0d   :  { %3806 = vmatmul.mubr.msk.f32.vlgmr.msra.gmra.mrb[12].mxu1 %vm250_vm1, %v2045_v12 }
 0xf0e   :  { %3919 = vmatpush3.bf16.msra.mxu1 %v4573_v38  ;;  %3827 = vmatprep.mubr.msk.f32.mxu1 %vm4496_vm2, %v4497_v50 }
 0xf0f   :  { %3920 = vmatprep.subr.bf16.mxu1 %v4495_v20 }
 0xf12   :  { %3922 = vmatpush3.bf16.msra.mxu1 %v4581_v46 }
 0xf13   :  { %3929 = vmatprep.subr.bf16.mxu1 %v4495_v20 }
 0xfe0   :  { %v2114_v41 = vpop.f32.mrb[12].mxu1 }
 0xfe1   :  { %v2115_v60 = vadd.f32 %v5036_v61, %v2114_v41  ;;  %v3807_v34 = vpop.f32.mrb[13].mxu1 }
 0xfe3   :  { %v2120_v19 = vrot.slane %v2115_v60, 4  ;;  %v2119_v25 = vrot.slane %v2115_v60, 3  ;;  %v2122_v38 = vrot.slane %v2115_v60, 6  ;;  %v2121_v24 = vrot.slane %v2115_v60, 5 }
 0xfe4   :  { %v2124_v53 = vrot.slane %v2115_v60, 1  ;;  %v2123_v46 = vrot.slane %v2115_v60, 7  ;;  %v2125_v61 = vrot.slane %v2115_v60, 2  ;;  %v2139_v45 = vadd.f32 %v2115_v60, %v4654_v56 }
 0xfe5   :  { %2192 = vrot.lane.b32.xlu0 %v2120_v19, %s4498_s24  ;;  %2190 = vrot.lane.b32.xlu1 %v2119_v25, %s4498_s24  ;;  %v2135_v27 = vadd.f32 %v2120_v19, %v4641_v37  ;;  %v2134_v9 = vadd.f32 %v2119_v25, %v4643_v40  ;;  %v2137_v22 = vadd.f32 %v2122_v38, %v4648_v44 }
 0xfe6   :  { %v2136_v54 = vadd.f32 %v2121_v24, %v4650_v48  ;;  %v2140_v3 = vadd.f32 %v2124_v53, %v4662_v8  ;;  %v2138_v33 = vadd.f32 %v2123_v46, %v4656_v59  ;;  %v2141_v52 = vadd.f32 %v2125_v61, %v4660_v5 }
 0xfe7   :  { %v2143_v31 = vsub.f32 0.0, %v2135_v27  ;;  %v2142_v11 = vsub.f32 0.0, %v2134_v9  ;;  %v2145_v47 = vsub.f32 0.0, %v2137_v22  ;;  %v2147_v7 = vsub.f32 0.0, %v2139_v45 }
 0xfe8   :  { %v2144_v58 = vsub.f32 0.0, %v2136_v54  ;;  %v2148_v23 = vsub.f32 0.0, %v2140_v3  ;;  %v2146_v10 = vsub.f32 0.0, %v2138_v33  ;;  %v2149_v55 = vsub.f32 0.0, %v2141_v52 }
 0xfe9   :  { %2196 = vrot.lane.b32.xlu0 %v2122_v38, %s4498_s24  ;;  %2194 = vrot.lane.b32.xlu1 %v2121_v24, %s4498_s24  ;;  %v2152_v62 = vmul.f32 1.442695, %v2143_v31  ;;  %v2150_v26 = vmul.f32 1.442695, %v2142_v11  ;;  %v2156_v28 = vmul.f32 1.442695, %v2145_v47 }
 0xfea   :  { %v2154_v29 = vmul.f32 1.442695, %v2144_v58  ;;  %v2162_v15 = vmul.f32 1.442695, %v2148_v23  ;;  %v2158_v49 = vmul.f32 1.442695, %v2146_v10 }
 0xfeb   :  { %4265 = vpow2.f32 %v2152_v62  ;;  %v2164_v18 = vmul.f32 1.442695, %v2149_v55  ;;  %v2160_v32 = vmul.f32 1.442695, %v2147_v7 }
 0xfec   :  { %4267 = vpow2.f32 %v2150_v26 }
 0xfed   :  { %2202 = vrot.lane.b32.xlu0 %v2124_v53, %s4498_s24  ;;  %2198 = vrot.lane.b32.xlu1 %v2123_v46, %s4498_s24  ;;  %4269 = vpow2.f32 %v2156_v28 }
 0xfee   :  { %4271 = vpow2.f32 %v2154_v29 }
 0xfef   :  { %4273 = vpow2.f32 %v2162_v15 }
 0xff0   :  { %4275 = vpow2.f32 %v2158_v49 }
 0xff1   :  { %2204 = vrot.lane.b32.xlu0 %v2125_v61, %s4498_s24  ;;  %2200 = vrot.lane.b32.xlu1 %v2115_v60, %s4498_s24  ;;  %4277 = vpow2.f32 %v2164_v18 }
 0xff2   :  { %4279 = vpow2.f32 %v2160_v32 }
 0xff5   :  { %v4266_v43 = vpop.eup %4265 }
 0xff6   :  { %v4268_v51 = vpop.eup %4267  ;;  %v2167_v35 = vadd.f32 1.0, %v4266_v43 }
 0xff7   :  { %v4270_v63 = vpop.eup %4269  ;;  %v2166_v57 = vadd.f32 1.0, %v4268_v51 }
 0xff8   :  { %v4272_v30 = vpop.eup %4271  ;;  %4281 = vrcp.f32 %v2167_v35  ;;  %v2169_v6 = vadd.f32 1.0, %v4270_v63 }
 0xff9   :  { %v4274_v12 = vpop.eup %4273  ;;  %4283 = vrcp.f32 %v2166_v57  ;;  %v2168_v41 = vadd.f32 1.0, %v4272_v30 }
 0xffa   :  { %v4276_v60 = vpop.eup %4275  ;;  %4285 = vrcp.f32 %v2169_v6  ;;  %v2172_v34 = vadd.f32 1.0, %v4274_v12 }
 0xffb   :  { %v4278_v19 = vpop.eup %4277  ;;  %4287 = vrcp.f32 %v2168_v41  ;;  %v2170_v25 = vadd.f32 1.0, %v4276_v60 }
 0xffc   :  { %v4280_v38 = vpop.eup %4279  ;;  %4289 = vrcp.f32 %v2172_v34  ;;  %v2173_v24 = vadd.f32 1.0, %v4278_v19 }
 0xffd   :  { %4291 = vrcp.f32 %v2170_v25  ;;  %v2171_v53 = vadd.f32 1.0, %v4280_v38 }
 0xffe   :  { %4293 = vrcp.f32 %v2173_v24 }
 0xfff   :  { %4295 = vrcp.f32 %v2171_v53 }
0x1002   :  { %v5317_v46 = vpop.eup %4281 }
0x1003   :  { %v5319_v61 = vpop.eup %4283 }
0x1004   :  { %v5323_v11 = vpop.eup %4285 }
0x1005   :  { %v5327_v54 = vpop.eup %4287 }
0x1006   :  { %v5331_v58 = vpop.eup %4289 }
0x1007   :  { %v5335_v33 = vpop.eup %4291 }
0x1008   :  { %v5339_v10 = vpop.eup %4293 }
0x1009   :  { %v5343_v45 = vpop.eup %4295 }
0x1057   :  { %v2193_v27 = vpop.permute.xlu0 %2192  ;;  %v2191_v9 = vpop.permute.xlu1 %2190 }
0x1058   :  { %v2215_v31 = vmul.f32 %v5317_v46, %v2193_v27  ;;  %v2214_v22 = vmul.f32 %v5319_v61, %v2191_v9 }
0x105a   :  { %2232 = vrot.lane.b32.xlu0 %v2215_v31, %s4498_s24  ;;  %2230 = vrot.lane.b32.xlu1 %v2214_v22, %s4498_s24 }
0x105b   :  { %v2197_v62 = vpop.permute.xlu0 %2196  ;;  %v2195_v47 = vpop.permute.xlu1 %2194 }
0x105c   :  { %v2217_v3 = vmul.f32 %v5323_v11, %v2197_v62  ;;  %v2216_v26 = vmul.f32 %v5327_v54, %v2195_v47 }
0x105e   :  { %2236 = vrot.lane.b32.xlu0 %v2217_v3, %s4498_s24  ;;  %2234 = vrot.lane.b32.xlu1 %v2216_v26, %s4498_s24  ;;  %v2319_v3 = vrot.slane %v5245_v13, 7  ;;  %v2271_v26 = vsub.f32 1.0, %v5317_v46  ;;  %v2273_v13 = vsub.f32 1.0, %v5323_v11 }
0x105f   :  { %v2203_v28 = vpop.permute.xlu0 %2202  ;;  %v2199_v23 = vpop.permute.xlu1 %2198 }
0x1060   :  { %v2220_v52 = vmul.f32 %v5331_v58, %v2203_v28  ;;  %v2218_v29 = vmul.f32 %v5335_v33, %v2199_v23  ;;  %v2318_v28 = vrot.slane %v5240_v16, 7 }
0x1062   :  { %2242 = vrot.lane.b32.xlu0 %v2220_v52, %s4498_s24  ;;  %2238 = vrot.lane.b32.xlu1 %v2218_v29, %s4498_s24  ;;  %v2270_v52 = vsub.f32 1.0, %v5319_v61  ;;  %v2334_v29 = vmul.f32 %v5317_v46, %v2319_v3  ;;  %v2275_v3 = vsub.f32 1.0, %v5343_v45 }
0x1063   :  { %v2205_v15 = vpop.permute.xlu0 %2204  ;;  %v2201_v55 = vpop.permute.xlu1 %2200 }
0x1064   :  { %v2221_v49 = vmul.f32 %v5339_v10, %v2205_v15  ;;  %v2219_v7 = vmul.f32 %v5343_v45, %v2201_v55 }
0x1066   :  { %2244 = vrot.lane.b32.xlu0 %v2221_v49, %s4498_s24  ;;  %2240 = vrot.lane.b32.xlu1 %v2219_v7, %s4498_s24  ;;  %v2333_v49 = vmul.f32 %v5319_v61, %v2318_v28 }
0x10cc   :  { %v2233_v18 = vpop.permute.xlu0 %2232  ;;  %v2231_v32 = vpop.permute.xlu1 %2230 }
0x10cd   :  { %v2255_v43 = vadd.f32 %v2233_v18, %v4641_v37  ;;  %v2254_v51 = vadd.f32 %v2231_v32, %v4643_v40  ;;  %v2321_v18 = vrot.slane %v5261_v42, 7 }
0x10cf   :  { %4297 = vtanh.f32 %v2255_v43  ;;  %v2320_v43 = vrot.slane %v5253_v21, 7  ;;  %v2276_v21 = vsub.f32 1.0, %v5331_v58 }
0x10d0   :  { %4299 = vtanh.f32 %v2254_v51  ;;  %v2237_v35 = vpop.permute.xlu0 %2236  ;;  %v2235_v63 = vpop.permute.xlu1 %2234 }
0x10d1   :  { %v2257_v57 = vadd.f32 %v2237_v35, %v4648_v44  ;;  %v2256_v30 = vadd.f32 %v2235_v63, %v4650_v48  ;;  %v2272_v35 = vsub.f32 1.0, %v5327_v54  ;;  %v2336_v63 = vmul.f32 %v5323_v11, %v2321_v18 }
0x10d2   :  { %v2335_v42 = vmul.f32 %v5327_v54, %v2320_v43  ;;  %v2274_v11 = vsub.f32 1.0, %v5335_v33  ;;  %v5430_v43 = vld [vmem:[%s5813_s3 + $0x1] ss:$0 sm:$0xff] }
0x10d3   :  { %4301 = vtanh.f32 %v2257_v57 }
0x10d4   :  { %4303 = vtanh.f32 %v2256_v30  ;;  %v2243_v6 = vpop.permute.xlu0 %2242  ;;  %v2239_v12 = vpop.permute.xlu1 %2238 }
0x10d5   :  { %v2260_v41 = vadd.f32 %v2243_v6, %v4662_v8  ;;  %v2258_v60 = vadd.f32 %v2239_v12, %v4656_v59 }
0x10d7   :  { %4305 = vtanh.f32 %v2260_v41  ;;  %v2322_v41 = vrot.slane %v5274_v39, 7  ;;  %v2324_v39 = vrot.slane %v5279_v17, 7 }
0x10d8   :  { %4307 = vtanh.f32 %v2258_v60  ;;  %v2245_v34 = vpop.permute.xlu0 %2244  ;;  %v2241_v19 = vpop.permute.xlu1 %2240 }
0x10d9   :  { %v4298_v25 = vpop.eup %4297  ;;  %v2261_v38 = vadd.f32 %v2245_v34, %v4660_v5  ;;  %v2259_v24 = vadd.f32 %v2241_v19, %v4654_v56 }
0x10da   :  { %v4300_v53 = vpop.eup %4299  ;;  %2288 = vrot.lane.b32.xlu0 %v4298_v25, %s4494_s2  ;;  %v2323_v25 = vrot.slane %v5281_v14, 7 }
0x10db   :  { %4309 = vtanh.f32 %v2261_v38  ;;  %2286 = vrot.lane.b32.xlu1 %v4300_v53, %s4494_s2 }
0x10dc   :  { %4311 = vtanh.f32 %v2259_v24 }
0x10dd   :  { %v4302_v27 = vpop.eup %4301 }
0x10de   :  { %v4304_v9 = vpop.eup %4303  ;;  %2292 = vrot.lane.b32.xlu0 %v4302_v27, %s4494_s2  ;;  %v2337_v27 = vmul.f32 %v5335_v33, %v2322_v41  ;;  %v2340_v33 = vmul.f32 %v5339_v10, %v2324_v39 }
0x10df   :  { %2290 = vrot.lane.b32.xlu1 %v4304_v9, %s4494_s2 }
0x10e1   :  { %v4306_v31 = vpop.eup %4305 }
0x10e2   :  { %v4308_v22 = vpop.eup %4307  ;;  %2298 = vrot.lane.b32.xlu0 %v4306_v31, %s4494_s2  ;;  %v2339_v31 = vmul.f32 %v5331_v58, %v2323_v25  ;;  %v2338_v58 = vmul.f32 %v5343_v45, %v2038_v1 }
0x10e3   :  { %2294 = vrot.lane.b32.xlu1 %v4308_v22, %s4494_s2  ;;  %v2277_v22 = vsub.f32 1.0, %v5339_v10 }
0x10e5   :  { %v4310_v62 = vpop.eup %4309 }
0x10e6   :  { %v4312_v47 = vpop.eup %4311  ;;  %2300 = vrot.lane.b32.xlu0 %v4310_v62, %s4494_s2 }
0x10e7   :  { %2296 = vrot.lane.b32.xlu1 %v4312_v47, %s4494_s2 }
0x114c   :  { %v2289_v23 = vpop.permute.xlu0 %2288 }
0x114d   :  { %v2311_v15 = vmul.f32 %v2289_v23, %v2271_v26  ;;  %v2287_v55 = vpop.permute.xlu1 %2286 }
0x114e   :  { %v2310_v7 = vmul.f32 %v2287_v55, %v2270_v52 }
0x114f   :  { %v5372_v32 = vadd.f32 %v2334_v29, %v2311_v15 }
0x1150   :  { %v5376_v51 = vadd.f32 %v2333_v49, %v2310_v7  ;;  %v2293_v16 = vpop.permute.xlu0 %2292 }
0x1151   :  { %v2358_v46 = vrot.slane %v5372_v32, 4  ;;  %v2313_v57 = vmul.f32 %v2293_v16, %v2273_v13  ;;  %v2291_v61 = vpop.permute.xlu1 %2290 }
0x1152   :  { %v2357_v30 = vrot.slane %v5376_v51, 5  ;;  %v2312_v6 = vmul.f32 %v2291_v61, %v2272_v35 }
0x1153   :  { %v5383_v12 = vadd.f32 %v2336_v63, %v2313_v57 }
0x1154   :  { %v2359_v60 = vsel %vm716_vm11, %v2358_v46, %v2357_v30  ;;  %v5388_v34 = vadd.f32 %v2335_v42, %v2312_v6  ;;  %v2299_v19 = vpop.permute.xlu0 %2298 }
0x1155   :  { %v2362_v38 = vrot.slane %v5383_v12, 2  ;;  %v2316_v24 = vmul.f32 %v2299_v19, %v2276_v21  ;;  %v2295_v54 = vpop.permute.xlu1 %2294 }
0x1156   :  { %v2360_v53 = vrot.slane %v5388_v34, 3  ;;  %v2314_v9 = vmul.f32 %v2295_v54, %v2274_v11 }
0x1157   :  { %v5402_v26 = vadd.f32 %v2339_v31, %v2316_v24 }
0x1158   :  { %v2361_v62 = vsel %vm719_vm12, %v2360_v53, %v2359_v60  ;;  %v5399_v47 = vadd.f32 %v2337_v27, %v2314_v9  ;;  %v2301_v14 = vpop.permute.xlu0 %2300 }
0x1159   :  { %v2363_v28 = vsel %vm722_vm13, %v2362_v38, %v2361_v62  ;;  %v2317_v23 = vmul.f32 %v2301_v14, %v2277_v22  ;;  %v2297_v52 = vpop.permute.xlu1 %2296  ;;  %v2367_v7 = vrot.slane %v5402_v26, 7 }
0x115a   :  { %v2364_v17 = vrot.slane %v5399_v47, 1  ;;  %v2315_v29 = vmul.f32 %v2297_v52, %v2275_v3 }
0x115b   :  { %v5410_v15 = vadd.f32 %v2340_v33, %v2317_v23 }
0x115c   :  { %v2365_v55 = vsel %vm725_vm14, %v2364_v17, %v2363_v28  ;;  %v5413_v49 = vadd.f32 %v2338_v58, %v2315_v29 }
0x115d   :  { %v2369_v18 = vrot.slane %v5410_v15, 6 }
0x115e   :  { %v2366_v10 = vsel %vm728_vm15, %v5413_v49, %v2365_v55 }
0x115f   :  { %v2368_v36 = vsel %vm731_vm0, %v2367_v7, %v2366_v10 }
0x1160   :  { %v2370_v1 = vsel %vm734_vm3, %v2369_v18, %v2368_v36 }
0x1161   :  { %2371 = vrot.lane.b32.xlu1 %v2370_v1, %s4494_s2 }
0x11d3   :  { %v2372_v45 = vpop.permute.xlu1 %2371 }
0x11d4   :  { %3817 = vmatmul.mubr.msk.f32.vlgmr.msra.gmra.mrb[14].mxu0 %vm250_vm1, %v2372_v45 }
0x11d5   :  { %3838 = vmatprep.mubr.msk.f32.mxu0 %vm4496_vm2, %v4497_v50 }
0x12a7   :  { %v2441_v13 = vpop.f32.mrb[14].mxu0 }
0x12a8   :  { %v2442_v16 = vadd.f32 %v5430_v43, %v2441_v13  ;;  %v3818_v35 = vpop.f32.mrb[15].mxu0 }
0x12aa   :  { %v2447_v46 = vrot.slane %v2442_v16, 3  ;;  %v2446_v63 = vrot.slane %v2442_v16, 2  ;;  %v2449_v57 = vrot.slane %v2442_v16, 5  ;;  %v2448_v61 = vrot.slane %v2442_v16, 4 }
0x12ab   :  { %v2451_v30 = vrot.slane %v2442_v16, 7  ;;  %v2450_v42 = vrot.slane %v2442_v16, 6  ;;  %v2452_v6 = vrot.slane %v2442_v16, 1  ;;  %v2467_v3 = vadd.f32 %v2442_v16, %v4662_v8 }
0x12ac   :  { %2519 = vrot.lane.b32.xlu1 %v2447_v46, %s4498_s24  ;;  %2517 = vrot.lane.b32.xlu0 %v2446_v63, %s4498_s24  ;;  %v2462_v21 = vadd.f32 %v2447_v46, %v4641_v37  ;;  %v2461_v41 = vadd.f32 %v2446_v63, %v4643_v40  ;;  %v2464_v19 = vadd.f32 %v2449_v57, %v4648_v44 }
0x12ad   :  { %v2463_v25 = vadd.f32 %v2448_v61, %v4650_v48  ;;  %v2466_v54 = vadd.f32 %v2451_v30, %v4654_v56  ;;  %v2465_v9 = vadd.f32 %v2450_v42, %v4656_v59  ;;  %v2468_v22 = vadd.f32 %v2452_v6, %v4660_v5 }
0x12ae   :  { %v2470_v60 = vsub.f32 0.0, %v2462_v21  ;;  %v2469_v11 = vsub.f32 0.0, %v2461_v41  ;;  %v2472_v24 = vsub.f32 0.0, %v2464_v19  ;;  %v2475_v52 = vsub.f32 0.0, %v2467_v3 }
0x12af   :  { %v2471_v27 = vsub.f32 0.0, %v2463_v25  ;;  %v2474_v31 = vsub.f32 0.0, %v2466_v54  ;;  %v2473_v14 = vsub.f32 0.0, %v2465_v9  ;;  %v2476_v33 = vsub.f32 0.0, %v2468_v22 }
0x12b0   :  { %2523 = vrot.lane.b32.xlu1 %v2449_v57, %s4498_s24  ;;  %2521 = vrot.lane.b32.xlu0 %v2448_v61, %s4498_s24  ;;  %v2479_v38 = vmul.f32 1.442695, %v2470_v60  ;;  %v2477_v53 = vmul.f32 1.442695, %v2469_v11  ;;  %v2483_v39 = vmul.f32 1.442695, %v2472_v24 }
0x12b1   :  { %v2481_v62 = vmul.f32 1.442695, %v2471_v27  ;;  %v2487_v28 = vmul.f32 1.442695, %v2474_v31  ;;  %v2485_v23 = vmul.f32 1.442695, %v2473_v14 }
0x12b2   :  { %4313 = vpow2.f32 %v2479_v38  ;;  %v2491_v17 = vmul.f32 1.442695, %v2476_v33  ;;  %v2489_v58 = vmul.f32 1.442695, %v2475_v52 }
0x12b3   :  { %4315 = vpow2.f32 %v2477_v53 }
0x12b4   :  { %2527 = vrot.lane.b32.xlu1 %v2451_v30, %s4498_s24  ;;  %2525 = vrot.lane.b32.xlu0 %v2450_v42, %s4498_s24  ;;  %4317 = vpow2.f32 %v2483_v39 }
0x12b5   :  { %4319 = vpow2.f32 %v2481_v62 }
0x12b6   :  { %4321 = vpow2.f32 %v2487_v28 }
0x12b7   :  { %4323 = vpow2.f32 %v2485_v23 }
0x12b8   :  { %2529 = vrot.lane.b32.xlu1 %v2442_v16, %s4498_s24  ;;  %2531 = vrot.lane.b32.xlu0 %v2452_v6, %s4498_s24  ;;  %4325 = vpow2.f32 %v2491_v17 }
0x12b9   :  { %4327 = vpow2.f32 %v2489_v58 }
0x12bc   :  { %v4314_v29 = vpop.eup %4313 }
0x12bd   :  { %v4316_v55 = vpop.eup %4315  ;;  %v2494_v18 = vadd.f32 1.0, %v4314_v29 }
0x12be   :  { %v4318_v10 = vpop.eup %4317  ;;  %v2493_v36 = vadd.f32 1.0, %v4316_v55 }
0x12bf   :  { %v4320_v1 = vpop.eup %4319  ;;  %4329 = vrcp.f32 %v2494_v18  ;;  %v2496_v45 = vadd.f32 1.0, %v4318_v10 }
0x12c0   :  { %v4322_v13 = vpop.eup %4321  ;;  %4331 = vrcp.f32 %v2493_v36  ;;  %v2495_v16 = vadd.f32 1.0, %v4320_v1 }
0x12c1   :  { %v4324_v35 = vpop.eup %4323  ;;  %4333 = vrcp.f32 %v2496_v45  ;;  %v2498_v46 = vadd.f32 1.0, %v4322_v13 }
0x12c2   :  { %v4326_v63 = vpop.eup %4325  ;;  %4335 = vrcp.f32 %v2495_v16  ;;  %v2497_v57 = vadd.f32 1.0, %v4324_v35 }
0x12c3   :  { %v4328_v61 = vpop.eup %4327  ;;  %4337 = vrcp.f32 %v2498_v46  ;;  %v2500_v30 = vadd.f32 1.0, %v4326_v63 }
0x12c4   :  { %4339 = vrcp.f32 %v2497_v57  ;;  %v2499_v42 = vadd.f32 1.0, %v4328_v61 }
0x12c5   :  { %4341 = vrcp.f32 %v2500_v30 }
0x12c6   :  { %4343 = vrcp.f32 %v2499_v42 }
0x12c9   :  { %v5449_v6 = vpop.eup %4329 }
0x12ca   :  { %v5451_v21 = vpop.eup %4331 }
0x12cb   :  { %v5455_v25 = vpop.eup %4333 }
0x12cc   :  { %v5459_v38 = vpop.eup %4335 }
0x12cd   :  { %v5463_v9 = vpop.eup %4337 }
0x12ce   :  { %v5467_v39 = vpop.eup %4339 }
0x12cf   :  { %v5471_v3 = vpop.eup %4341 }
0x12d0   :  { %v5475_v28 = vpop.eup %4343 }
0x131e   :  { %v2520_v41 = vpop.permute.xlu1 %2519  ;;  %v2518_v60 = vpop.permute.xlu0 %2517 }
0x131f   :  { %v2542_v19 = vmul.f32 %v5449_v6, %v2520_v41  ;;  %v2541_v11 = vmul.f32 %v5451_v21, %v2518_v60 }
0x1321   :  { %2559 = vrot.lane.b32.xlu1 %v2542_v19, %s4498_s24  ;;  %2557 = vrot.lane.b32.xlu0 %v2541_v11, %s4498_s24 }
0x1322   :  { %v2524_v24 = vpop.permute.xlu1 %2523  ;;  %v2522_v54 = vpop.permute.xlu0 %2521 }
0x1323   :  { %v2544_v53 = vmul.f32 %v5455_v25, %v2524_v24  ;;  %v2543_v27 = vmul.f32 %v5459_v38, %v2522_v54 }
0x1325   :  { %2563 = vrot.lane.b32.xlu1 %v2544_v53, %s4498_s24  ;;  %2561 = vrot.lane.b32.xlu0 %v2543_v27, %s4498_s24  ;;  %v2646_v27 = vrot.slane %v5372_v32, 7  ;;  %v2600_v32 = vsub.f32 1.0, %v5455_v25 }
0x1326   :  { %v2528_v31 = vpop.permute.xlu1 %2527  ;;  %v2526_v22 = vpop.permute.xlu0 %2525 }
0x1327   :  { %v2546_v62 = vmul.f32 %v5463_v9, %v2528_v31  ;;  %v2545_v14 = vmul.f32 %v5467_v39, %v2526_v22  ;;  %v2598_v31 = vsub.f32 1.0, %v5449_v6  ;;  %v2645_v22 = vrot.slane %v5376_v51, 7 }
0x1329   :  { %2567 = vrot.lane.b32.xlu1 %v2546_v62, %s4498_s24  ;;  %2565 = vrot.lane.b32.xlu0 %v2545_v14, %s4498_s24  ;;  %v2597_v14 = vsub.f32 1.0, %v5451_v21 }
0x132a   :  { %v2530_v33 = vpop.permute.xlu1 %2529  ;;  %v2532_v23 = vpop.permute.xlu0 %2531 }
0x132b   :  { %v2547_v52 = vmul.f32 %v5475_v28, %v2530_v33  ;;  %v2548_v17 = vmul.f32 %v5471_v3, %v2532_v23  ;;  %v2661_v33 = vmul.f32 %v5449_v6, %v2646_v27 }
0x132d   :  { %2569 = vrot.lane.b32.xlu1 %v2547_v52, %s4498_s24  ;;  %2571 = vrot.lane.b32.xlu0 %v2548_v17, %s4498_s24  ;;  %v2660_v17 = vmul.f32 %v5451_v21, %v2645_v22 }
0x1393   :  { %v2560_v58 = vpop.permute.xlu1 %2559  ;;  %v2558_v29 = vpop.permute.xlu0 %2557 }
0x1394   :  { %v2582_v55 = vadd.f32 %v2560_v58, %v4641_v37  ;;  %v2581_v18 = vadd.f32 %v2558_v29, %v4643_v40  ;;  %v2648_v29 = vrot.slane %v5383_v12, 7 }
0x1396   :  { %4345 = vtanh.f32 %v2582_v55 }
0x1397   :  { %4347 = vtanh.f32 %v2581_v18  ;;  %v2564_v10 = vpop.permute.xlu1 %2563  ;;  %v2562_v36 = vpop.permute.xlu0 %2561  ;;  %v2647_v18 = vrot.slane %v5388_v34, 7  ;;  %v2602_v34 = vsub.f32 1.0, %v5463_v9 }
0x1398   :  { %v2584_v1 = vadd.f32 %v2564_v10, %v4648_v44  ;;  %v2583_v45 = vadd.f32 %v2562_v36, %v4650_v48  ;;  %v2599_v36 = vsub.f32 1.0, %v5459_v38 }
0x1399   :  { %v2662_v12 = vmul.f32 %v5459_v38, %v2647_v18 }
0x139a   :  { %4349 = vtanh.f32 %v2584_v1  ;;  %v2663_v1 = vmul.f32 %v5455_v25, %v2648_v29 }
0x139b   :  { %4351 = vtanh.f32 %v2583_v45  ;;  %v2568_v13 = vpop.permute.xlu1 %2567  ;;  %v2566_v16 = vpop.permute.xlu0 %2565 }
0x139c   :  { %v2586_v35 = vadd.f32 %v2568_v13, %v4654_v56  ;;  %v2585_v46 = vadd.f32 %v2566_v16, %v4656_v59 }
0x139e   :  { %4353 = vtanh.f32 %v2586_v35  ;;  %v2650_v35 = vrot.slane %v5413_v49, 7 }
0x139f   :  { %4355 = vtanh.f32 %v2585_v46  ;;  %v2570_v63 = vpop.permute.xlu1 %2569  ;;  %v2572_v57 = vpop.permute.xlu0 %2571 }
0x13a0   :  { %v4346_v61 = vpop.eup %4345  ;;  %v2587_v30 = vadd.f32 %v2570_v63, %v4662_v8  ;;  %v2588_v42 = vadd.f32 %v2572_v57, %v4660_v5  ;;  %v2649_v63 = vrot.slane %v5399_v47, 7  ;;  %v2665_v38 = vmul.f32 %v5463_v9, %v2650_v35 }
0x13a1   :  { %v4348_v41 = vpop.eup %4347  ;;  %2615 = vrot.lane.b32.xlu1 %v4346_v61, %s4494_s2  ;;  %v2603_v47 = vsub.f32 1.0, %v5475_v28  ;;  %v2604_v9 = vsub.f32 1.0, %v5471_v3 }
0x13a2   :  { %4357 = vtanh.f32 %v2587_v30  ;;  %2613 = vrot.lane.b32.xlu0 %v4348_v41, %s4494_s2  ;;  %v2601_v30 = vsub.f32 1.0, %v5467_v39 }
0x13a3   :  { %4359 = vtanh.f32 %v2588_v42 }
0x13a4   :  { %v4350_v60 = vpop.eup %4349 }
0x13a5   :  { %v4352_v19 = vpop.eup %4351  ;;  %2619 = vrot.lane.b32.xlu1 %v4350_v60, %s4494_s2 }
0x13a6   :  { %2617 = vrot.lane.b32.xlu0 %v4352_v19, %s4494_s2  ;;  %v2664_v19 = vmul.f32 %v5467_v39, %v2649_v63  ;;  %v2666_v39 = vmul.f32 %v5475_v28, %v2367_v7 }
0x13a8   :  { %v4354_v11 = vpop.eup %4353 }
0x13a9   :  { %v4356_v24 = vpop.eup %4355  ;;  %2623 = vrot.lane.b32.xlu1 %v4354_v11, %s4494_s2 }
0x13aa   :  { %2621 = vrot.lane.b32.xlu0 %v4356_v24, %s4494_s2 }
0x13ac   :  { %v4358_v54 = vpop.eup %4357 }
0x13ad   :  { %v4360_v53 = vpop.eup %4359  ;;  %2625 = vrot.lane.b32.xlu1 %v4358_v54, %s4494_s2  ;;  %v2651_v54 = vrot.slane %v5410_v15, 7 }
0x13ae   :  { %2627 = vrot.lane.b32.xlu0 %v4360_v53, %s4494_s2 }
0x13af   :  { %v2667_v15 = vmul.f32 %v5471_v3, %v2651_v54 }
0x1413   :  { %v2616_v62 = vpop.permute.xlu1 %2615 }
0x1414   :  { %v2638_v23 = vmul.f32 %v2616_v62, %v2598_v31  ;;  %v2614_v52 = vpop.permute.xlu0 %2613 }
0x1415   :  { %v2637_v58 = vmul.f32 %v2614_v52, %v2597_v14 }
0x1416   :  { %v5504_v55 = vadd.f32 %v2661_v33, %v2638_v23 }
0x1417   :  { %v5508_v10 = vadd.f32 %v2660_v17, %v2637_v58  ;;  %v2620_v51 = vpop.permute.xlu1 %2619 }
0x1418   :  { %v2685_v6 = vrot.slane %v5504_v55, 5  ;;  %v2640_v45 = vmul.f32 %v2620_v51, %v2600_v32  ;;  %v2618_v21 = vpop.permute.xlu0 %2617 }
0x1419   :  { %v2684_v13 = vrot.slane %v5508_v10, 6  ;;  %v2639_v16 = vmul.f32 %v2618_v21, %v2599_v36 }
0x141a   :  { %v5516_v46 = vadd.f32 %v2663_v1, %v2640_v45 }
0x141b   :  { %v2686_v57 = vsel %vm716_vm11, %v2685_v6, %v2684_v13  ;;  %v5521_v61 = vadd.f32 %v2662_v12, %v2639_v16  ;;  %v2624_v25 = vpop.permute.xlu1 %2623 }
0x141c   :  { %v2689_v42 = vrot.slane %v5516_v46, 3  ;;  %v2642_v41 = vmul.f32 %v2624_v25, %v2602_v34  ;;  %v2622_v60 = vpop.permute.xlu0 %2621 }
0x141d   :  { %v2687_v49 = vrot.slane %v5521_v61, 4  ;;  %v2641_v11 = vmul.f32 %v2622_v60, %v2601_v30 }
0x141e   :  { %v5528_v24 = vadd.f32 %v2665_v38, %v2642_v41 }
0x141f   :  { %v2688_v53 = vsel %vm719_vm12, %v2687_v49, %v2686_v57  ;;  %v5533_v27 = vadd.f32 %v2664_v19, %v2641_v11  ;;  %v2626_v31 = vpop.permute.xlu1 %2625 }
0x1420   :  { %v2693_v22 = vrot.slane %v5528_v24, 1  ;;  %v2690_v62 = vsel %vm722_vm13, %v2689_v42, %v2688_v53  ;;  %v2643_v14 = vmul.f32 %v2626_v31, %v2603_v47  ;;  %v2628_v33 = vpop.permute.xlu0 %2627 }
0x1421   :  { %v2691_v23 = vrot.slane %v5533_v27, 2  ;;  %v2644_v52 = vmul.f32 %v2628_v33, %v2604_v9 }
0x1422   :  { %v5543_v17 = vadd.f32 %v2666_v39, %v2643_v14 }
0x1423   :  { %v2692_v58 = vsel %vm725_vm14, %v2691_v23, %v2690_v62  ;;  %v5546_v29 = vadd.f32 %v2667_v15, %v2644_v52 }
0x1424   :  { %v2694_v32 = vsel %vm728_vm15, %v2693_v22, %v2692_v58 }
0x1425   :  { %v2696_v18 = vrot.slane %v5546_v29, 7  ;;  %v2695_v26 = vsel %vm731_vm0, %v5543_v17, %v2694_v32 }
0x1427   :  { %v2697_v7 = vsel %vm734_vm3, %v2696_v18, %v2695_v26 }
0x1428   :  { %2698 = vrot.lane.b32.xlu0 %v2697_v7, %s4494_s2 }
0x149a   :  { %v2699_v3 = vpop.permute.xlu0 %2698 }
0x149b   :  { %3828 = vmatmul.mubr.msk.f32.vlgmr.msra.gmra.mrb[14].mxu1 %vm250_vm1, %v2699_v3 }
0x149c   :  { %3849 = vmatprep.mubr.msk.f32.mxu1 %vm4496_vm2, %v4497_v50 }
0x156e   :  { %v2768_v28 = vpop.f32.mrb[14].mxu1 }
0x156f   :  { %v2769_v51 = vadd.f32 %v5430_v43, %v2768_v28  ;;  %v3829_v36 = vpop.f32.mrb[15].mxu1 }
0x1571   :  { %v2774_v6 = vrot.slane %v2769_v51, 2  ;;  %v2773_v1 = vrot.slane %v2769_v51, 1  ;;  %v2776_v45 = vrot.slane %v2769_v51, 4  ;;  %v2775_v21 = vrot.slane %v2769_v51, 3 }
0x1572   :  { %v2778_v13 = vrot.slane %v2769_v51, 6  ;;  %v2777_v12 = vrot.slane %v2769_v51, 5  ;;  %v2779_v43 = vrot.slane %v2769_v51, 7  ;;  %v2795_v31 = vadd.f32 %v2769_v51, %v4660_v5 }
0x1573   :  { %2846 = vrot.lane.b32.xlu0 %v2774_v6, %s4498_s24  ;;  %2844 = vrot.lane.b32.xlu1 %v2773_v1, %s4498_s24  ;;  %v2789_v16 = vadd.f32 %v2774_v6, %v4641_v37  ;;  %v2788_v35 = vadd.f32 %v2773_v1, %v4643_v40  ;;  %v2791_v63 = vadd.f32 %v2776_v45, %v4648_v44 }
0x1574   :  { %v2790_v25 = vadd.f32 %v2775_v21, %v4650_v48  ;;  %v2793_v38 = vadd.f32 %v2778_v13, %v4654_v56  ;;  %v2792_v49 = vadd.f32 %v2777_v12, %v4656_v59  ;;  %v2794_v47 = vadd.f32 %v2779_v43, %v4662_v8 }
0x1575   :  { %v2797_v34 = vsub.f32 0.0, %v2789_v16  ;;  %v2796_v57 = vsub.f32 0.0, %v2788_v35  ;;  %v2799_v42 = vsub.f32 0.0, %v2791_v63  ;;  %v2803_v39 = vsub.f32 0.0, %v2795_v31 }
0x1576   :  { %v2798_v60 = vsub.f32 0.0, %v2790_v25  ;;  %v2801_v11 = vsub.f32 0.0, %v2793_v38  ;;  %v2800_v53 = vsub.f32 0.0, %v2792_v49  ;;  %v2802_v22 = vsub.f32 0.0, %v2794_v47 }
0x1577   :  { %2850 = vrot.lane.b32.xlu0 %v2776_v45, %s4498_s24  ;;  %2848 = vrot.lane.b32.xlu1 %v2775_v21, %s4498_s24  ;;  %v2806_v30 = vmul.f32 1.442695, %v2797_v34  ;;  %v2804_v41 = vmul.f32 1.442695, %v2796_v57  ;;  %v2810_v19 = vmul.f32 1.442695, %v2799_v42 }
0x1578   :  { %v2808_v54 = vmul.f32 1.442695, %v2798_v60  ;;  %v2814_v9 = vmul.f32 1.442695, %v2801_v11  ;;  %v2812_v62 = vmul.f32 1.442695, %v2800_v53 }
0x1579   :  { %4361 = vpow2.f32 %v2806_v30  ;;  %v2816_v14 = vmul.f32 1.442695, %v2802_v22  ;;  %v2818_v33 = vmul.f32 1.442695, %v2803_v39 }
0x157a   :  { %4363 = vpow2.f32 %v2804_v41 }
0x157b   :  { %2854 = vrot.lane.b32.xlu0 %v2778_v13, %s4498_s24  ;;  %2852 = vrot.lane.b32.xlu1 %v2777_v12, %s4498_s24  ;;  %4365 = vpow2.f32 %v2810_v19 }
0x157c   :  { %4367 = vpow2.f32 %v2808_v54 }
0x157d   :  { %4369 = vpow2.f32 %v2814_v9 }
0x157e   :  { %4371 = vpow2.f32 %v2812_v62 }
0x157f   :  { %2858 = vrot.lane.b32.xlu0 %v2769_v51, %s4498_s24  ;;  %2856 = vrot.lane.b32.xlu1 %v2779_v43, %s4498_s24  ;;  %4373 = vpow2.f32 %v2816_v14 }
0x1580   :  { %4375 = vpow2.f32 %v2818_v33 }
0x1583   :  { %v4362_v23 = vpop.eup %4361 }
0x1584   :  { %v4364_v15 = vpop.eup %4363  ;;  %v2821_v52 = vadd.f32 1.0, %v4362_v23 }
0x1585   :  { %v4366_v58 = vpop.eup %4365  ;;  %v2820_v32 = vadd.f32 1.0, %v4364_v15 }
0x1586   :  { %v4368_v26 = vpop.eup %4367  ;;  %4377 = vrcp.f32 %v2821_v52  ;;  %v2823_v7 = vadd.f32 1.0, %v4366_v58 }
0x1587   :  { %v4370_v3 = vpop.eup %4369  ;;  %4379 = vrcp.f32 %v2820_v32  ;;  %v2822_v28 = vadd.f32 1.0, %v4368_v26 }
0x1588   :  { %v4372_v51 = vpop.eup %4371  ;;  %4381 = vrcp.f32 %v2823_v7  ;;  %v2825_v36 = vadd.f32 1.0, %v4370_v3 }
0x1589   :  { %v4374_v6 = vpop.eup %4373  ;;  %4383 = vrcp.f32 %v2822_v28  ;;  %v2824_v1 = vadd.f32 1.0, %v4372_v51 }
0x158a   :  { %v4376_v45 = vpop.eup %4375  ;;  %4385 = vrcp.f32 %v2825_v36  ;;  %v2826_v21 = vadd.f32 1.0, %v4374_v6 }
0x158b   :  { %4387 = vrcp.f32 %v2824_v1  ;;  %v2827_v13 = vadd.f32 1.0, %v4376_v45 }
0x158c   :  { %4389 = vrcp.f32 %v2826_v21 }
0x158d   :  { %4391 = vrcp.f32 %v2827_v13  ;;  %v4433_v13 = vld [vmem:[#allocation4 + $0x28] sm:$0xff] }
0x1590   :  { %v5576_v12 = vpop.eup %4377 }
0x1591   :  { %v5578_v43 = vpop.eup %4379 }
0x1592   :  { %v5582_v57 = vpop.eup %4381 }
0x1593   :  { %v5586_v25 = vpop.eup %4383 }
0x1594   :  { %v5590_v60 = vpop.eup %4385 }
0x1595   :  { %v5594_v49 = vpop.eup %4387 }
0x1596   :  { %v5598_v53 = vpop.eup %4389 }
0x1597   :  { %v5602_v31 = vpop.eup %4391 }
0x15e5   :  { %v2847_v16 = vpop.permute.xlu0 %2846  ;;  %v2845_v35 = vpop.permute.xlu1 %2844 }
0x15e6   :  { %v2869_v34 = vmul.f32 %v5576_v12, %v2847_v16  ;;  %v2868_v63 = vmul.f32 %v5578_v43, %v2845_v35  ;;  %v4434_v35 = vld [vmem:[#allocation4 + $0x10] sm:$0xff] }
0x15e8   :  { %2886 = vrot.lane.b32.xlu0 %v2869_v34, %s4498_s24  ;;  %2884 = vrot.lane.b32.xlu1 %v2868_v63, %s4498_s24  ;;  %v4435_v34 = vld [vmem:[#allocation4 + $0x8] sm:$0xff] }
0x15e9   :  { %v2851_v30 = vpop.permute.xlu0 %2850  ;;  %v2849_v42 = vpop.permute.xlu1 %2848  ;;  %v3983_v63 = vpack.i.bf16 %v4434_v35, %v4435_v34 }
0x15ea   :  { %v2871_v38 = vmul.f32 %v5582_v57, %v2851_v30  ;;  %v2870_v41 = vmul.f32 %v5586_v25, %v2849_v42  ;;  %v5626_v30 = vld [vmem:[#allocation4 + $0x70] sm:$0xff] }
0x15eb   :  { %v5629_v42 = vld [vmem:[#allocation4 + $0x50] sm:$0xff] }
0x15ec   :  { %2890 = vrot.lane.b32.xlu0 %v2871_v38, %s4498_s24  ;;  %2888 = vrot.lane.b32.xlu1 %v2870_v41, %s4498_s24  ;;  %v4436_v38 = vld [vmem:[#allocation4 + $0x68] sm:$0xff] }
0x15ed   :  { %v2855_v19 = vpop.permute.xlu0 %2854  ;;  %v2853_v11 = vpop.permute.xlu1 %2852  ;;  %v3998_v41 = vpack.i.bf16 %v5626_v30, %v4436_v38 }
0x15ee   :  { %v2873_v47 = vmul.f32 %v5590_v60, %v2855_v19  ;;  %v2872_v54 = vmul.f32 %v5594_v49, %v2853_v11  ;;  %v4437_v19 = vld [vmem:[#allocation4 + $0x48] sm:$0xff] }
0x15ef   :  { %v3993_v11 = vpack.i.bf16 %v5629_v42, %v4437_v19 }
0x15f0   :  { %2894 = vrot.lane.b32.xlu0 %v2873_v47, %s4498_s24  ;;  %2892 = vrot.lane.b32.xlu1 %v2872_v54, %s4498_s24  ;;  %v2973_v47 = vrot.slane %v5504_v55, 7  ;;  %v2925_v54 = vsub.f32 1.0, %v5576_v12  ;;  %v2974_v55 = vrot.slane %v5521_v61, 7  ;;  %v2976_v61 = vrot.slane %v5533_v27, 7 }
0x15f1   :  { %v2859_v9 = vpop.permute.xlu0 %2858  ;;  %v2857_v22 = vpop.permute.xlu1 %2856  ;;  %v2978_v27 = vrot.slane %v5543_v17, 7 }
0x15f2   :  { %v2875_v62 = vmul.f32 %v5602_v31, %v2859_v9  ;;  %v2874_v39 = vmul.f32 %v5598_v53, %v2857_v22  ;;  %v2972_v9 = vrot.slane %v5508_v10, 7  ;;  %v2926_v10 = vsub.f32 1.0, %v5586_v25 }
0x15f3   :  { %v2993_v17 = vmul.f32 %v5598_v53, %v2978_v27 }
0x15f4   :  { %2898 = vrot.lane.b32.xlu0 %v2875_v62, %s4498_s24  ;;  %2896 = vrot.lane.b32.xlu1 %v2874_v39, %s4498_s24  ;;  %v2924_v62 = vsub.f32 1.0, %v5578_v43  ;;  %v2988_v39 = vmul.f32 %v5576_v12, %v2973_v47 }
0x165a   :  { %v2887_v14 = vpop.permute.xlu0 %2886  ;;  %v2885_v33 = vpop.permute.xlu1 %2884 }
0x165b   :  { %v2909_v23 = vadd.f32 %v2887_v14, %v4641_v37  ;;  %v2908_v15 = vadd.f32 %v2885_v33, %v4643_v40 }
0x165d   :  { %4393 = vtanh.f32 %v2909_v23  ;;  %v2987_v23 = vmul.f32 %v5578_v43, %v2972_v9  ;;  %v2989_v43 = vmul.f32 %v5586_v25, %v2974_v55  ;;  %v3031_v25 = vlaneseq }
0x165e   :  { %4395 = vtanh.f32 %v2908_v15  ;;  %v2891_v52 = vpop.permute.xlu0 %2890  ;;  %v2889_v58 = vpop.permute.xlu1 %2888 }
0x165f   :  { %v2911_v32 = vadd.f32 %v2891_v52, %v4648_v44  ;;  %v2910_v26 = vadd.f32 %v2889_v58, %v4650_v48  ;;  %v2975_v52 = vrot.slane %v5516_v46, 7  ;;  %v2977_v46 = vrot.slane %v5528_v24, 7 }
0x1660   :  { %v2991_v24 = vmul.f32 %v5594_v49, %v2976_v61  ;;  %v5656_v35 = vshrl.u32 %v3031_v25, 7 }
0x1661   :  { %4397 = vtanh.f32 %v2911_v32  ;;  %v2927_v32 = vsub.f32 1.0, %v5582_v57 }
0x1662   :  { %4399 = vtanh.f32 %v2910_v26  ;;  %v2895_v7 = vpop.permute.xlu0 %2894  ;;  %v2893_v3 = vpop.permute.xlu1 %2892 }
0x1663   :  { %v2913_v28 = vadd.f32 %v2895_v7, %v4654_v56  ;;  %v2912_v51 = vadd.f32 %v2893_v3, %v4656_v59 }
0x1665   :  { %4401 = vtanh.f32 %v2913_v28  ;;  %v2990_v28 = vmul.f32 %v5582_v57, %v2975_v52 }
0x1666   :  { %4403 = vtanh.f32 %v2912_v51  ;;  %v2899_v37 = vpop.permute.xlu0 %2898  ;;  %v2897_v40 = vpop.permute.xlu1 %2896 }
0x1667   :  { %v4394_v36 = vpop.eup %4393  ;;  %v2915_v6 = vadd.f32 %v2899_v37, %v4660_v5  ;;  %v2914_v1 = vadd.f32 %v2897_v40, %v4662_v8  ;;  %v5621_v5 = vld [vmem:[#allocation4 + $0x30] sm:$0xff] }
0x1668   :  { %v4396_v44 = vpop.eup %4395  ;;  %2942 = vrot.lane.b32.xlu0 %v4394_v36, %s4494_s2  ;;  %v3988_v16 = vpack.i.bf16 %v5621_v5, %v4433_v13 }
0x1669   :  { %4405 = vtanh.f32 %v2915_v6  ;;  %2940 = vrot.lane.b32.xlu1 %v4396_v44, %s4494_s2  ;;  %v2929_v6 = vsub.f32 1.0, %v5590_v60 }
0x166a   :  { %4407 = vtanh.f32 %v2914_v1 }
0x166b   :  { %v4398_v48 = vpop.eup %4397 }
0x166c   :  { %v4400_v56 = vpop.eup %4399  ;;  %2946 = vrot.lane.b32.xlu0 %v4398_v48, %s4494_s2 }
0x166d   :  { %2944 = vrot.lane.b32.xlu1 %v4400_v56, %s4494_s2  ;;  %v2928_v56 = vsub.f32 1.0, %v5594_v49  ;;  %v2931_v49 = vsub.f32 1.0, %v5602_v31 }
0x166f   :  { %v4402_v59 = vpop.eup %4401 }
0x1670   :  { %v4404_v45 = vpop.eup %4403  ;;  %2950 = vrot.lane.b32.xlu0 %v4402_v59, %s4494_s2  ;;  %v2992_v59 = vmul.f32 %v5590_v60, %v2977_v46  ;;  %v66_v60 = vld [vmem:[%s5813_s3 + $0x2] sm:$0x3] }
0x1671   :  { %2948 = vrot.lane.b32.xlu1 %v4404_v45, %s4494_s2 }
0x1673   :  { %v4406_v8 = vpop.eup %4405 }
0x1674   :  { %v4408_v21 = vpop.eup %4407  ;;  %2954 = vrot.lane.b32.xlu0 %v4406_v8, %s4494_s2 }
0x1675   :  { %2952 = vrot.lane.b32.xlu1 %v4408_v21, %s4494_s2 }
0x1678   :  { %3989 = vrot.lane.b32.xlu0 %v3988_v16, %s4498_s24 }
0x1679   :  { %3984 = vrot.lane.b32.xlu1 %v3983_v63, %s4498_s24 }
0x167c   :  { %3999 = vrot.lane.b32.xlu0 %v3998_v41, %s4498_s24  ;;  %v2930_v41 = vsub.f32 1.0, %v5598_v53 }
0x167d   :  { %3994 = vrot.lane.b32.xlu1 %v3993_v11, %s4498_s24 }
0x16da   :  { %v2943_v22 = vpop.permute.xlu0 %2942 }
0x16db   :  { %v2965_v14 = vmul.f32 %v2943_v22, %v2925_v54  ;;  %v2941_v33 = vpop.permute.xlu1 %2940  ;;  %v3033_v54 = vsub.s32 0, %v5656_v35 }
0x16dc   :  { %v2964_v15 = vmul.f32 %v2941_v33, %v2924_v62 }
0x16dd   :  { %v2996_v58 = vadd.f32 %v2988_v39, %v2965_v14  ;;  %v3034_v39 = vrot.slane %v66_v60, %v3033_v54 }
0x16de   :  { %v2995_v26 = vadd.f32 %v2987_v23, %v2964_v15  ;;  %v2947_v7 = vpop.permute.xlu0 %2946  ;;  %v2994_v15 = vmul.f32 %v5602_v31, %v2696_v18 }
0x16df   :  { %v3048_v3 = vrot.slane %v2996_v58, 6  ;;  %v2967_v12 = vmul.f32 %v2947_v7, %v2927_v32  ;;  %v2945_v51 = vpop.permute.xlu1 %2944  ;;  %3092 = vrot.lane.b32.xlu0 %v3034_v39, %s4493_s17 }
0x16e0   :  { %v3047_v37 = vrot.slane %v2995_v26, 7  ;;  %v2966_v40 = vmul.f32 %v2945_v51, %v2926_v10  ;;  %v3037_v10 = vsub.s32 1, %v5656_v35 }
0x16e1   :  { %v2998_v36 = vadd.f32 %v2990_v28, %v2967_v12 }
0x16e2   :  { %v3049_v1 = vsel %vm716_vm11, %v3048_v3, %v3047_v37  ;;  %v2997_v44 = vadd.f32 %v2989_v43, %v2966_v40  ;;  %v2951_v48 = vpop.permute.xlu0 %2950  ;;  %v3038_v61 = vrot.slane %v66_v60, %v3037_v10 }
0x16e3   :  { %v3052_v57 = vrot.slane %v2998_v36, 4  ;;  %v2969_v45 = vmul.f32 %v2951_v48, %v2929_v6  ;;  %v2949_v8 = vpop.permute.xlu1 %2948 }
0x16e4   :  { %v3050_v21 = vrot.slane %v2997_v44, 5  ;;  %v2968_v13 = vmul.f32 %v2949_v8, %v2928_v56 }
0x16e5   :  { %v3000_v16 = vadd.f32 %v2992_v59, %v2969_v45 }
0x16e6   :  { %v3051_v34 = vsel %vm719_vm12, %v3050_v21, %v3049_v1  ;;  %v2999_v63 = vadd.f32 %v2991_v24, %v2968_v13  ;;  %v2955_v38 = vpop.permute.xlu0 %2954 }
0x16e7   :  { %v3056_v19 = vrot.slane %v3000_v16, 2  ;;  %v3053_v11 = vsel %vm722_vm13, %v3052_v57, %v3051_v34  ;;  %v2953_v47 = vpop.permute.xlu1 %2952  ;;  %v2971_v62 = vmul.f32 %v2955_v38, %v2931_v49 }
0x16e8   :  { %v3054_v9 = vrot.slane %v2999_v63, 3  ;;  %v2970_v22 = vmul.f32 %v2953_v47, %v2930_v41 }
0x16e9   :  { %v3002_v3 = vadd.f32 %v2994_v15, %v2971_v62 }
0x16ea   :  { %v3055_v14 = vsel %vm725_vm14, %v3054_v9, %v3053_v11  ;;  %v3001_v33 = vadd.f32 %v2993_v17, %v2970_v22  ;;  %v3990_v23 = vpop.permute.xlu0 %3989 }
0x16eb   :  { %v3057_v52 = vsel %vm728_vm15, %v3056_v19, %v3055_v14  ;;  %v3992_v58 = vunpack.i.h.bf16 %v3990_v23  ;;  %v3991_v32 = vunpack.i.l.bf16 %v3990_v23  ;;  %v3985_v55 = vpop.permute.xlu1 %3984 }
0x16ec   :  { %v3058_v53 = vrot.slane %v3001_v33, 1  ;;  %v3987_v26 = vunpack.i.h.bf16 %v3985_v55  ;;  %v3986_v7 = vunpack.i.l.bf16 %v3985_v55 }
0x16ed   :  { %v3085_v28 = vsel %vm3083_vm4, %v3991_v32, %v3992_v58  ;;  %v5727_v32 = vld [vmem:[%s5813_s3 + $0x2] ss:$0 sm:$0xff] }
0x16ee   :  { %v3059_v12 = vsel %vm731_vm0, %v3058_v53, %v3057_v52  ;;  %v3930_v29 = vpack.c.bf16 %v3992_v58, %v3987_v26  ;;  %v3084_v18 = vsel %vm3083_vm4, %v3986_v7, %v3987_v26  ;;  %v4000_v31 = vpop.permute.xlu0 %3999  ;;  %vm3560_vm0 = vcmask 785408  }
0x16ef   :  { %v3060_v51 = vsel %vm734_vm3, %v3002_v3, %v3059_v12  ;;  %v3924_v37 = vpack.c.bf16 %v3085_v28, %v3084_v18  ;;  %v4002_v43 = vunpack.i.h.bf16 %v4000_v31  ;;  %v4001_v40 = vunpack.i.l.bf16 %v4000_v31  ;;  %v3995_v46 = vpop.permute.xlu1 %3994 }
0x16f0   :  { %3061 = vrot.lane.b32.xlu1 %v3060_v51, %s4494_s2  ;;  %v3997_v36 = vunpack.i.h.bf16 %v3995_v46  ;;  %v3996_v6 = vunpack.i.l.bf16 %v3995_v46  ;;  %3931 = vmatpush3.bf16.msra.mxu1 %v3930_v29  ;;  %vm3579_vm3 = vcmask 7168  }
0x16f1   :  { %v3087_v1 = vsel %vm3083_vm4, %v4001_v40, %v4002_v43  ;;  %3925 = vmatpush3.bf16.msra.mxu0 %v3924_v37  ;;  %3932 = vmatprep.subr.bf16.mxu1 %v4495_v20 }
0x16f2   :  { %v3933_v44 = vpack.c.bf16 %v4002_v43, %v3997_v36  ;;  %v3086_v48 = vsel %vm3083_vm4, %v3996_v6, %v3997_v36  ;;  %3926 = vmatprep.subr.bf16.mxu0 %v4495_v20 }
0x16f3   :  { %v3927_v56 = vpack.c.bf16 %v3087_v1, %v3086_v48 }
0x16f4   :  { %3934 = vmatpush3.bf16.msra.mxu1 %v3933_v44  ;;  %3094 = vrot.lane.b32.xlu1 %v3038_v61, %s4493_s17 }
0x16f5   :  { %3928 = vmatpush3.bf16.msra.mxu0 %v3927_v56 }
0x16f6   :  { %3935 = vmatprep.subr.bf16.mxu0 %v4495_v20 }
0x1751   :  { %v3093_v59 = vpop.permute.xlu0 %3092 }
0x1762   :  { %v3062_v57 = vpop.permute.xlu1 %3061 }
0x1763   :  { %3839 = vmatmul.mubr.msk.f32.vlgmr.msra.gmra.mrb[16].mxu0 %vm250_vm1, %v3062_v57 }
0x1764   :  { %3860 = vmatprep.mubr.msk.f32.mxu0 %vm4496_vm2, %v4497_v50  ;;  %v5707_v50 = vld [vmem:[%s5813_s3 + $0x4] ss:$0 sm:$0xff] }
0x1766   :  { %v3095_v45 = vpop.permute.xlu1 %3094 }
0x1767   :  { %v3096_v8 = vsel %vm250_vm1, %v3093_v59, %v3095_v45 }
0x1836   :  { %v3166_v25 = vpop.f32.mrb[16].mxu0 }
0x1837   :  { %v5694_v21 = vadd.f32 %v3166_v25, %v3096_v8  ;;  %v3840_v24 = vpop.f32.mrb[17].mxu0 }
0x1838   :  { %v4438_v24 = vld [vmem:[#allocation4 + $0x38] sm:$0xff] }
0x1839   :  { %v5698_v13 = vmul.f32 %v5694_v21, %v5694_v21  ;;  %v3273_v43 = vsel %vm3272_vm6, %v5694_v21, 0.0  ;;  %vm3170_vm10 = vcmp.ge.f32.partialorder %v5694_v21, 0.0  ;;  %vm3585_vm6 = vcmask 31744  }
0x183a   :  { %v3274_v46 = vrot.slane %v3273_v43, 4 }
0x183b   :  { %3239 = vrot.lane.b32.xlu1 %v5698_v13, %s4493_s17  ;;  %3225 = vrot.lane.b32.xlu0 %v5698_v13, %s4498_s24 }
0x183c   :  { %v3275_v61 = vadd.f32 %v3274_v46, %v3273_v43 }
0x183e   :  { %v3276_v48 = vrot.slane %v3275_v61, 2 }
0x183f   :  { %3213 = vrot.lane.b32.xlu0 %v5707_v50, %s4493_s17 }
0x1840   :  { %v3277_v56 = vadd.f32 %v3276_v48, %v3275_v61 }
0x1842   :  { %v3278_v57 = vrot.slane %v3277_v56, 1 }
0x1844   :  { %v3279_v8 = vadd.f32 %v3278_v57, %v3277_v56 }
0x18ad   :  { %v3240_v16 = vpop.permute.xlu1 %3239  ;;  %v3226_v27 = vpop.permute.xlu0 %3225 }
0x18ae   :  { %v3242_v34 = vsel %vm250_vm1, %v3240_v16, 0.0  ;;  %v3228_v63 = vsel %vm250_vm1, %v3226_v27, 0.0  ;;  %v4008_v16 = vpack.i.bf16 %v4438_v24, %v5621_v5  ;;  %v62_v27 = vld [vmem:[#allocation4 + $0x78] sm:$0xff] }
0x18af   :  { %3243 = vadd.xlane.f32.xlu0 %v3242_v34  ;;  %3229 = vadd.xlane.f32.xlu1 %v3228_v63  ;;  %v4018_v34 = vpack.i.bf16 %v62_v27, %v5626_v30  ;;  %v3003_v63 = vld [vmem:[%s5811_s1] sm:$0xff] }
0x18b1   :  { %v3214_v38 = vpop.permute.xlu0 %3213 }
0x18b2   :  { %v3216_v41 = vmul.f32 %v3214_v38, %v5694_v21  ;;  %v69_v38 = vld [vmem:[%s5813_s3 + $0x4] sm:$0x3] }
0x18b3   :  { %v3374_v43 = vrot.slane %v69_v38, %v3037_v10 }
0x18c5   :  { %3218 = vrot.lane.b32.xlu0 %v3216_v41, %s4498_s24  ;;  %v3370_v41 = vrot.slane %v69_v38, %v3033_v54 }
0x18c9   :  { %4004 = vrot.lane.b32.xlu0 %v4003_v4, %s4493_s17  ;;  %v4013_v4 = vpack.i.bf16 %v61_v2, %v5629_v42 }
0x18cd   :  { %4014 = vrot.lane.b32.xlu0 %v4013_v4, %s4493_s17 }
0x18d1   :  { %3288 = vrot.lane.b32.xlu0 %v5707_v50, %s4498_s24 }
0x18d5   :  { %3015 = vrot.lane.b32.xlu0 %v5727_v32, %s4494_s2 }
0x18d9   :  { %3403 = vrot.lane.b32.xlu0 %v3374_v43, %s4493_s17 }
0x193c   :  { %v3230_v60 = vpop.xlane.xlu1 %3229  ;;  %v3244_v19 = vpop.xlane.xlu0 %3243 }
0x193d   :  { %v3231_v11 = vrot.slane %v3230_v60, 4  ;;  %v3245_v49 = vrot.slane %v3244_v19, 4 }
0x193f   :  { %v3232_v47 = vadd.f32 %v3231_v11, %v3230_v60  ;;  %v3246_v9 = vadd.f32 %v3245_v49, %v3244_v19 }
0x1940   :  { %v3219_v17 = vpop.permute.xlu0 %3218 }
0x1941   :  { %v3233_v22 = vrot.slane %v3232_v47, 2  ;;  %v3247_v62 = vrot.slane %v3246_v9, 2  ;;  %v3221_v39 = vsel %vm250_vm1, %v3219_v17, 0.0 }
0x1942   :  { %3222 = vadd.xlane.f32.xlu1 %v3221_v39 }
0x1943   :  { %v3234_v14 = vadd.f32 %v3233_v22, %v3232_v47  ;;  %v3248_v33 = vadd.f32 %v3247_v62, %v3246_v9 }
0x1944   :  { %v4005_v5 = vpop.permute.xlu0 %4004 }
0x1945   :  { %v3235_v23 = vrot.slane %v3234_v14, 1  ;;  %v3249_v15 = vrot.slane %v3248_v33, 1  ;;  %v4007_v19 = vunpack.i.h.bf16 %v4005_v5  ;;  %v4006_v30 = vunpack.i.l.bf16 %v4005_v5 }
0x1947   :  { %v3236_v52 = vadd.f32 %v3235_v23, %v3234_v14  ;;  %v3250_v58 = vadd.f32 %v3249_v15, %v3248_v33  ;;  %v3393_v11 = vsel %vm250_vm1, %v4006_v30, %v4007_v19 }
0x1948   :  { %v4015_v47 = vpop.permute.xlu0 %4014 }
0x1949   :  { %3941 = vpush %v3236_v52  ;;  %v4017_v22 = vunpack.i.h.bf16 %v4015_v47  ;;  %v4016_v62 = vunpack.i.l.bf16 %v4015_v47 }
0x194a   :  { %3943 = vpush %v3250_v58 }
0x194b   :  { %v3395_v33 = vsel %vm250_vm1, %v4016_v62, %v4017_v22 }
0x194c   :  { %v3289_v0 = vpop.permute.xlu0 %3288 }
0x1950   :  { %v3016_v4 = vpop.permute.xlu0 %3015 }
0x197a   :  { %s3942_s10 = spop %3941 }
0x197b   :  { %s3944_s11 = spop %3943  ;;  %v3238_v55 = vstv %s3942_s10 }
0x197c   :  { %v3252_v53 = vstv %s3944_s11 }
0x197d   :  { %v3253_v26 = vmul.f32 %v3252_v53, %v3238_v55  ;;  %v4439_v55 = vld [vmem:[%s5813_s3 + $0x1] ss:$0 sm:$0xff] }
0x197f   :  { %4409 = vrsqrt.f32 %v3253_v26  ;;  %vm3256_vm2 = vcmp.eq.f32.partialorder %v3253_v26, inf  ;;  %v3259_v28 = vand.u32 2147483648, %v3253_v26  ;;  %vm3258_vm5 = vcmp.eq.f32.partialorder %v3253_v26, 0.0 }
0x1989   :  { %v4410_v42 = vpop.eup %4409 }
0x198a   :  { %v3255_v7 = vmul.f32 %v4410_v42, %v3253_v26 }
0x198c   :  { %v3257_v3 = vsel %vm3256_vm2, %v3253_v26, %v3255_v7  ;;  %vm3581_vm2 = vcmask 15360  }
0x198d   :  { %v3260_v12 = vsel %vm3258_vm5, %v3259_v28, %v3257_v3  ;;  %vm3583_vm5 = vcmask 23552  }
0x198e   :  { %4411 = vrcp.f32 %v3260_v12 }
0x1998   :  { %v4412_v29 = vpop.eup %4411 }
0x19cf   :  { %v3223_v18 = vpop.xlane.xlu1 %3222 }
0x19d0   :  { %v3262_v31 = vmul.f32 %v4412_v29, %v3223_v18 }
0x19d2   :  { %v3263_v51 = vmax.f32 %v3262_v31, 0.0 }
0x19d4   :  { %v3264_v37 = vrot.slane %v3263_v51, 4 }
0x19d6   :  { %v3265_v40 = vadd.f32 %v3264_v37, %v3263_v51  ;;  %v3624_v37 = vld [vmem:[%s5813_s3 + $0x3] ss:$0 sm:$0xff] }
0x19d8   :  { %v3266_v36 = vrot.slane %v3265_v40, 2 }
0x19da   :  { %v3267_v6 = vadd.f32 %v3266_v36, %v3265_v40 }
0x19dc   :  { %v3268_v1 = vrot.slane %v3267_v6, 1 }
0x19de   :  { %v3269_v44 = vadd.f32 %v3268_v1, %v3267_v6  ;;  %v3404_v1 = vpop.permute.xlu0 %3403 }
0x19e0   :  { %4413 = vrcp.f32 %v3269_v44 }
0x19ea   :  { %v4414_v59 = vpop.eup %4413 }
0x19eb   :  { %v3271_v45 = vmul.f32 %v4414_v59, %v3263_v51 }
0x19ed   :  { %v3280_v25 = vmul.f32 %v3279_v8, %v3271_v45 }
0x19ef   :  { %3282 = vrot.lane.b32.xlu1 %v3280_v25, %s4493_s17 }
0x19f3   :  { %4009 = vrot.lane.b32.xlu1 %v4008_v16, %s4493_s17 }
0x19f7   :  { %4019 = vrot.lane.b32.xlu1 %v4018_v34, %s4493_s17 }
0x19fb   :  { %3006 = vperm.xlu1 %4023, %v3003_v63  }
0x19ff   :  { %3401 = vrot.lane.b32.xlu1 %v3370_v41, %s4493_s17  ;;  %v3171_v41 = vmul.f32 0.2, %v5694_v21 }
0x1a01   :  { %v3172_v5 = vsel %vm3170_vm10, %v5694_v21, %v3171_v41 }
0x1a61   :  { %v3283_v60 = vpop.permute.xlu1 %3282 }
0x1a62   :  { %3850 = vmatmul.mubr.msk.f32.vlgmr.msra.gmra.mrb[16].mxu1 %vm250_vm1, %v3283_v60  ;;  %v3198_v60 = vmul.f32 %v5707_v50, %v3172_v5 }
0x1a64   :  { %v3199_v19 = vsel %vm250_vm1, %v3198_v60, 0.0 }
0x1a65   :  { %v4010_v49 = vpop.permute.xlu1 %4009 }
0x1a66   :  { %v4012_v9 = vunpack.i.h.bf16 %v4010_v49  ;;  %v4011_v17 = vunpack.i.l.bf16 %v4010_v49 }
0x1a68   :  { %v3394_v39 = vsel %vm250_vm1, %v4011_v17, %v4012_v9 }
0x1a69   :  { %v3936_v14 = vpack.c.bf16 %v3394_v39, %v3393_v11  ;;  %v4020_v54 = vpop.permute.xlu1 %4019 }
0x1a6a   :  { %v4022_v23 = vunpack.i.h.bf16 %v4020_v54  ;;  %v4021_v15 = vunpack.i.l.bf16 %v4020_v54  ;;  %v3625_v54 = vld [vmem:[%s5813_s3 + $0x5] ss:$0 sm:$0xff]  ;;  %s4500_s3 = smov 98  }
0x1a6b   :  { %3937 = vmatpush3.bf16.msra.mxu0 %v3936_v14 }
0x1a6c   :  { %v3396_v52 = vsel %vm250_vm1, %v4021_v15, %v4022_v23  ;;  %3938 = vmatprep.subr.bf16.mxu0 %v4495_v20 }
0x1a6d   :  { %v3939_v58 = vpack.c.bf16 %v3396_v52, %v3395_v33 }
0x1a6f   :  { %3940 = vmatpush3.bf16.msra.mxu0 %v3939_v58 }
0x1a7a   :  { %v3007_v2 = vpop.permute.xlu1 %3006 }
0x1a7b   :  { %v3009_v53 = vmul.f32 %v4439_v55, %v3007_v2  ;;  %v3020_v26 = vmul.f32 %v5727_v32, %v3007_v2 }
0x1a7d   :  { %v5756_v42 = vadd.f32 %v3016_v4, %v3009_v53  ;;  %v3021_v7 = vadd.f32 %v3020_v26, %v3016_v4 }
0x1a7e   :  { %v3402_v44 = vpop.permute.xlu1 %3401 }
0x1a7f   :  { %v3023_v3 = vmin.f32 %v3021_v7, 20.0  ;;  %3489 = vrot.lane.b32.xlu1 %v5756_v42, %s4498_s24  ;;  %vm3022_vm7 = vcmp.gt.f32.partialorder %v3021_v7, 20.0  ;;  %v3405_v48 = vsel %vm250_vm1, %v3402_v44, %v3404_v1 }
0x1a81   :  { %v3024_v20 = vmul.f32 1.442695, %v3023_v3 }
0x1a83   :  { %4415 = vpow2.f32 %v3024_v20 }
0x1a8d   :  { %v4416_v28 = vpop.eup %4415 }
0x1a8e   :  { %v3026_v12 = vadd.f32 1.0, %v4416_v28 }
0x1a90   :  { %4417 = vlog2.f32 %v3026_v12 }
0x1a9a   :  { %v4418_v29 = vpop.eup %4417 }
0x1a9b   :  { %v3028_v18 = vmul.f32 0.6931472, %v4418_v29 }
0x1a9d   :  { %v5760_v31 = vsel %vm3022_vm7, %v3021_v7, %v3028_v18 }
0x1a9e   :  { %v3501_v32 = vmul.f32 %v5698_v13, %v5760_v31 }
0x1aa0   :  { %v3502_v51 = vmul.f32 %v3501_v32, %v5760_v31 }
0x1aa2   :  { %3504 = vrot.lane.b32.xlu1 %v3502_v51, %s4494_s2 }
0x1aa6   :  { %3178 = vrot.lane.b32.xlu1 %v3624_v37, %s4493_s17 }
0x1af1   :  { %v3490_v45 = vpop.permute.xlu1 %3489 }
0x1af2   :  { %v3492_v10 = vmul.f32 %v3490_v45, %v5694_v21 }
0x1b35   :  { %v3359_v40 = vpop.f32.mrb[16].mxu1 }
0x1b36   :  { %v3360_v46 = vadd.f32 %v3359_v40, %v3289_v0  ;;  %v3851_v36 = vpop.f32.mrb[17].mxu1 }
0x1b38   :  { %vm3363_vm8 = vcmp.ge.f32.partialorder %v3360_v46, 0.0  ;;  %v3364_v6 = vmul.f32 0.2, %v3360_v46 }
0x1b3a   :  { %v3365_v61 = vsel %vm3363_vm8, %v3360_v46, %v3364_v6 }
0x1b3b   :  { %3861 = vmatmul.mubr.msk.f32.vlgmr.msra.gmra.mrb[18].mxu0 %vm250_vm1, %v3365_v61 }
0x1c0e   :  { %v3476_v56 = vpop.f32.mrb[18].mxu0 }
0x1c0f   :  { %v3477_v57 = vadd.f32 %v3476_v56, %v3405_v48  ;;  %v3862_v59 = vpop.f32.mrb[19].mxu0 }
0x1c11   :  { %v3481_v35 = vmin.f32 %v3477_v57, 20.0  ;;  %3519 = vrot.lane.b32.xlu0 %v3477_v57, %s4493_s17  ;;  %vm3480_vm9 = vcmp.gt.f32.partialorder %v3477_v57, 20.0 }
0x1c13   :  { %v3482_v8 = vmul.f32 1.442695, %v3481_v35 }
0x1c15   :  { %4419 = vpow2.f32 %v3482_v8  ;;  %3494 = vrot.lane.b32.xlu0 %v3492_v10, %s4494_s2 }
0x1c1f   :  { %v4420_v25 = vpop.eup %4419 }
0x1c20   :  { %v3484_v24 = vadd.f32 1.0, %v4420_v25 }
0x1c22   :  { %4421 = vlog2.f32 %v3484_v24 }
0x1c2c   :  { %v4422_v16 = vpop.eup %4421 }
0x1c2d   :  { %v3486_v27 = vmul.f32 0.6931472, %v4422_v16 }
0x1c2f   :  { %v3487_v34 = vsel %vm3480_vm9, %v3477_v57, %v3486_v27 }
0x1c30   :  { %v3531_v63 = vmul.f32 %v3487_v34, %v5698_v13  ;;  %v3505_v13 = vpop.permute.xlu1 %3504 }
0x1c31   :  { %v3507_v62 = vsel %vm250_vm1, %v3505_v13, 0.0 }
0x1c32   :  { %v3532_v38 = vmul.f32 %v3531_v63, %v3487_v34 }
0x1c34   :  { %3534 = vrot.lane.b32.xlu0 %v3532_v38, %s4494_s2  ;;  %v3179_v47 = vpop.permute.xlu1 %3178 }
0x1c35   :  { %v3181_v17 = vmul.f32 %v3179_v47, %v3172_v5 }
0x1c37   :  { %v3182_v50 = vsel %vm250_vm1, %v3181_v17, 0.0 }
0x1c53   :  { %3200 = vadd.xlane.f32.xlu0 %v3199_v19 }
0x1c83   :  { %v3520_v30 = vpop.permute.xlu0 %3519 }
0x1c84   :  { %v3522_v11 = vmul.f32 %v3520_v30, %v5694_v21 }
0x1c86   :  { %3524 = vrot.lane.b32.xlu1 %v3522_v11, %s4494_s2 }
0x1c87   :  { %v3495_v49 = vpop.permute.xlu0 %3494 }
0x1c88   :  { %v3497_v39 = vsel %vm250_vm1, %v3495_v49, 0.0 }
0x1ca6   :  { %v3535_v9 = vpop.permute.xlu0 %3534 }
0x1ca7   :  { %v3537_v22 = vsel %vm250_vm1, %v3535_v9, 0.0 }
0x1ca8   :  { %3538 = vadd.xlane.f32.xlu0 %v3537_v22 }
0x1caa   :  { %3508 = vadd.xlane.f32.xlu1 %v3507_v62 }
0x1cac   :  { %3183 = vadd.xlane.f32.xlu0 %v3182_v50 }
0x1cae   :  { %3498 = vadd.xlane.f32.xlu1 %v3497_v39 }
0x1cbf   :  { %3548 = vrot.lane.b32.xlu1 %v5756_v42, %s4493_s17 }
0x1cc3   :  { %3555 = vrot.lane.b32.xlu1 %v3487_v34, %s4498_s24 }
0x1ce0   :  { %v3201_v33 = vpop.xlane.xlu0 %3200 }
0x1ce1   :  { %v3202_v23 = vadd.f32 %v3625_v54, %v3201_v33 }
0x1ce3   :  { %v3204_v15 = vmin.f32 %v3202_v23, 20.0  ;;  %vm3203_vm11 = vcmp.gt.f32.partialorder %v3202_v23, 20.0 }
0x1ce5   :  { %v3205_v52 = vmul.f32 1.442695, %v3204_v15 }
0x1ce7   :  { %4423 = vpow2.f32 %v3205_v52 }
0x1cf1   :  { %v4424_v58 = vpop.eup %4423 }
0x1cf2   :  { %v3207_v0 = vadd.f32 1.0, %v4424_v58 }
0x1cf4   :  { %4425 = vlog2.f32 %v3207_v0 }
0x1cf8   :  { %v3525_v21 = vpop.permute.xlu1 %3524 }
0x1cf9   :  { %v3527_v14 = vsel %vm250_vm1, %v3525_v21, 0.0 }
0x1cfa   :  { %3528 = vadd.xlane.f32.xlu0 %v3527_v14 }
0x1cfe   :  { %v4426_v2 = vpop.eup %4425 }
0x1cff   :  { %v3209_v4 = vmul.f32 0.6931472, %v4426_v2 }
0x1d01   :  { %v3210_v55 = vsel %vm3203_vm11, %v3202_v23, %v3209_v4 }
0x1d02   :  { %v3211_v53 = vmul.f32 %v3210_v55, %v3210_v55 }
0x1d10   :  { %3551 = vrot.lane.b32.xlu0 %v3477_v57, %s4498_s24 }
0x1d35   :  { %v3539_v26 = vpop.xlane.xlu0 %3538 }
0x1d36   :  { %v3540_v42 = vadd.f32 %v3539_v26, %v3211_v53 }
0x1d37   :  { %v3509_v7 = vpop.xlane.xlu1 %3508 }
0x1d38   :  { %4427 = vrsqrt.f32 %v3540_v42  ;;  %v3510_v3 = vadd.f32 %v3509_v7, %v3211_v53  ;;  %vm3543_vm14 = vcmp.eq.f32.partialorder %v3540_v42, inf  ;;  %v3546_v6 = vand.u32 2147483648, %v3540_v42 }
0x1d39   :  { %v3184_v20 = vpop.xlane.xlu0 %3183  ;;  %vm3545_vm15 = vcmp.eq.f32.partialorder %v3540_v42, 0.0 }
0x1d3a   :  { %4429 = vrsqrt.f32 %v3510_v3  ;;  %v3191_v28 = vadd.f32 %v3625_v54, %v3184_v20  ;;  %vm3513_vm12 = vcmp.eq.f32.partialorder %v3510_v3, inf  ;;  %v3516_v43 = vand.u32 2147483648, %v3510_v3 }
0x1d3b   :  { %v3499_v12 = vpop.xlane.xlu1 %3498  ;;  %vm3515_vm13 = vcmp.eq.f32.partialorder %v3510_v3, 0.0 }
0x1d3c   :  { %v3500_v29 = vadd.f32 %v3499_v12, %v3191_v28 }
0x1d3e   :  { %3564 = vrot.lane.b32.xlu1 %v3500_v29, %s4494_s2 }
0x1d3f   :  { %v3549_v1 = vpop.permute.xlu1 %3548 }
0x1d40   :  { %v3558_v56 = vsel %vm250_vm1, %v3549_v1, %v5760_v31 }
0x1d42   :  { %v4428_v18 = vpop.eup %4427 }
0x1d43   :  { %v3542_v37 = vmul.f32 %v4428_v18, %v3540_v42  ;;  %v3556_v59 = vpop.permute.xlu1 %3555 }
0x1d44   :  { %v4430_v32 = vpop.eup %4429 }
0x1d45   :  { %v3512_v51 = vmul.f32 %v4430_v32, %v3510_v3  ;;  %v3544_v36 = vsel %vm3543_vm14, %v3540_v42, %v3542_v37 }
0x1d46   :  { %v3547_v61 = vsel %vm3545_vm15, %v3546_v6, %v3544_v36 }
0x1d47   :  { %v3514_v40 = vsel %vm3513_vm12, %v3510_v3, %v3512_v51 }
0x1d48   :  { %v3517_v46 = vsel %vm3515_vm13, %v3516_v43, %v3514_v40 }
0x1d49   :  { %3568 = vrot.lane.b32.xlu0 %v3517_v46, %s4494_s2 }
0x1d4d   :  { %3576 = vrot.lane.b32.xlu0 %v3547_v61, %s4500_s3 }
0x1d87   :  { %v3529_v44 = vpop.xlane.xlu0 %3528 }
0x1d88   :  { %v3530_v48 = vadd.f32 %v3529_v44, %v3191_v28 }
0x1d8a   :  { %3572 = vrot.lane.b32.xlu1 %v3530_v48, %s4500_s3 }
0x1d8b   :  { %v3552_v57 = vpop.permute.xlu0 %3551 }
0x1d8c   :  { %v3559_v45 = vsel %vm3083_vm4, %v3558_v56, %v3552_v57 }
0x1d8d   :  { %v3561_v35 = vsel %vm3560_vm0, %v3559_v45, %v3556_v59 }
0x1d8e   :  { %3562 = vst [vmem:[%s5814_s4] sm:$0xff] %v3561_v35 }
0x1db0   :  { %v3565_v8 = vpop.permute.xlu1 %3564 }
0x1dbb   :  { %v3569_v10 = vpop.permute.xlu0 %3568 }
0x1dbc   :  { %v3580_v25 = vsel %vm3579_vm3, %v3565_v8, %v3569_v10 }
0x1dbf   :  { %v3577_v16 = vpop.permute.xlu0 %3576 }
0x1dfc   :  { %v3573_v24 = vpop.permute.xlu1 %3572 }
0x1dfd   :  { %v3582_v27 = vsel %vm3581_vm2, %v3580_v25, %v3573_v24 }
0x1dfe   :  { %v3584_v31 = vsel %vm3583_vm5, %v3582_v27, %v3577_v16 }
0x1dff   :  { %3586 = vst.msk [vmem:[%s5815_s5] sm:$0xff] %vm3585_vm6, %v3584_v31 }
0x1e00   :  { %3595 = vsyncpa [#allocation3], 1 }
0x1e01   :  { %3596 = vsyncpa [#allocation5], 1 }

</bundles_post_ra>
